<compile_context>
chip_gen: v7x
topology: tpu7x:2x2x1
jax: 0.10.0
libtpu: 0.0.40
codegen_flags: <defaults>
</compile_context>

<pallas_src>
import functools

import jax
import jax.numpy as jnp
from jax.experimental import pallas as pl
from jax.experimental.pallas import tpu as pltpu

INPUT_DIM = 385
INPUT_DIM_MXU = 384          # lane-aligned part of the input fed to the MXU
HIDDEN_DIM = 256
HIDDEN_DIM1 = 128
HIDDEN_DIM2 = 64
HIDDEN_DIM3 = 32
OUTPUT_DIM = 1
LN_EPS = 1e-5


def _sigmoid(h):
    # sigmoid(h) = 0.5 * (1 + tanh(h/2)): a single EUP pass (vs exp + recip)
    # and no overflow of exp(-h) for very negative h.
    return 0.5 * jnp.tanh(0.5 * h) + 0.5


def _silu(h):
    # All VPU/EUP math stays f32 (v5e has no bf16 VPU/EUP path).
    return h * _sigmoid(h)


def mlp_kernel(xa_ref, xb_ref,
               w1a_ref, w1b_ref, b1_ref,
               w2_ref, b2_ref,
               g_ref, beta_ref,
               w3_ref, b3_ref,
               w4_ref, b4_ref,
               w5t_ref, b5_ref,
               o_ref):
    # ---- fc1: K=384 bf16 MXU pass + rank-1 VPU update (column 384) + SiLU ----
    h = jnp.dot(xa_ref[...], w1a_ref[...], preferred_element_type=jnp.float32)
    h = h + xb_ref[...] * w1b_ref[...] + b1_ref[...]
    h = _silu(h)                                             # (TB, 256) f32

    # ---- fc2 + SiLU ----
    h = jnp.dot(h.astype(jnp.bfloat16), w2_ref[...],
                preferred_element_type=jnp.float32) + b2_ref[...]
    h = _silu(h)                                             # (TB, 128)

    # ---- LayerNorm over last dim (biased variance, like PyTorch) ----
    mu = jnp.mean(h, axis=-1, keepdims=True)
    d = h - mu
    var = jnp.mean(d * d, axis=-1, keepdims=True)
    h = d * jax.lax.rsqrt(var + LN_EPS) * g_ref[...] + beta_ref[...]

    # ---- fc3 + (dropout: identity) + SiLU ----
    h = jnp.dot(h.astype(jnp.bfloat16), w3_ref[...],
                preferred_element_type=jnp.float32) + b3_ref[...]
    h = _silu(h)                                             # (TB, 64)

    # ---- fc4 + SiLU ----
    h = jnp.dot(h.astype(jnp.bfloat16), w4_ref[...],
                preferred_element_type=jnp.float32) + b4_ref[...]
    h = _silu(h)                                             # (TB, 32)

    # ---- fc5 (N=1): VPU multiply + lane reduce, (dropout2: identity), sigmoid ----
    logits = jnp.sum(h * w5t_ref[...], axis=-1, keepdims=True) + b5_ref[...]
    o_ref[...] = _sigmoid(logits).astype(o_ref.dtype)        # (TB, 1)


def _pick_tile_b(B):
    """Largest tile (<= 2048, multiple of 8) giving >= 4 grid steps so each v7x
    TensorCore gets >= 2 steps (DMA/compute overlap); relax to fewer steps for
    small batches. Padding handles non-divisible batches."""
    b_pad8 = ((B + 7) // 8) * 8
    for steps in (4, 3, 2, 1):
        for t in (2048, 1024, 512, 256):
            if t <= b_pad8 and pl.cdiv(B, t) >= steps:
                return t
    return min(b_pad8, 256)          # tiny batch: one (padded) tile


def _vmem_budget_bytes(tile_b):
    xa_tile = 2 * tile_b * INPUT_DIM_MXU * 2       # double-buffered bf16 xa
    xb_tile = 2 * tile_b * 128 * 4                 # xb, lane-padded f32
    out_tile = 2 * tile_b * 128 * 4                # output, lane-padded
    weights = 2 * 2 * (INPUT_DIM_MXU * HIDDEN_DIM + HIDDEN_DIM * HIDDEN_DIM1 +
                       HIDDEN_DIM1 * HIDDEN_DIM2 + HIDDEN_DIM2 * HIDDEN_DIM3)  # bf16, x2 bufs
    interm = 6 * tile_b * HIDDEN_DIM * 4           # f32 activation headroom
    budget = xa_tile + xb_tile + out_tile + weights + interm + (4 << 20)
    # Cap at 48 MiB: leaves headroom on v7x (64 MiB VMEM per TensorCore).
    return int(min(max(budget, 16 << 20), 48 << 20))


@functools.partial(jax.jit, static_argnames=("tile_b",))
def mlp_forward(x, params, tile_b=None):
    B, D = x.shape
    assert D == INPUT_DIM
    if tile_b is None:
        tile_b = _pick_tile_b(B)
    assert tile_b % 8 == 0

    (w1, b1, w2, b2, g, beta, w3, b3, w4, b4, w5, b5) = params

    # Split x into a lane-dense bf16 MXU slab (384 = 3x128 lanes) and the f32
    # column 384 used for the rank-1 update.  (The cast/slice is a cheap XLA
    # streaming pass; the kernel's HBM read is halved vs f32 x.)
    xa = x[:, :INPUT_DIM_MXU].astype(jnp.bfloat16)    # (B, 384) bf16
    xb = x[:, INPUT_DIM_MXU:INPUT_DIM]                # (B, 1)   f32

    # Pad the batch so it divides evenly into tiles (result is sliced back).
    Bp = pl.cdiv(B, tile_b) * tile_b
    if Bp != B:
        xa = jnp.pad(xa, ((0, Bp - B), (0, 0)))
        xb = jnp.pad(xb, ((0, Bp - B), (0, 0)))

    # MXU operands in bf16 (f32 accumulation); VPU-touched tensors stay f32.
    w1a = w1[:INPUT_DIM_MXU].astype(jnp.bfloat16)     # (384, 256)
    w1b = w1[INPUT_DIM_MXU:]                          # (1, 256) f32, rank-1 update
    w2b = w2.astype(jnp.bfloat16)
    w3b = w3.astype(jnp.bfloat16)
    w4b = w4.astype(jnp.bfloat16)
    w5t = w5.T                                        # (1, 32) f32, VPU dot

    def bcast(arr):
        # Constant block replicated across the batch grid; Pallas skips the
        # re-DMA when the block index is unchanged, so it is fetched once.
        return pl.BlockSpec(arr.shape, lambda i: (0,) * arr.ndim)

    grid = (Bp // tile_b,)
    in_specs = [
        pl.BlockSpec((tile_b, INPUT_DIM_MXU), lambda i: (i, 0)),   # xa tile
        pl.BlockSpec((tile_b, 1), lambda i: (i, 0)),               # xb tile
        bcast(w1a), bcast(w1b), bcast(b1),
        bcast(w2b), bcast(b2),
        bcast(g), bcast(beta),
        bcast(w3b), bcast(b3),
        bcast(w4b), bcast(b4),
        bcast(w5t), bcast(b5),
    ]
    out_specs = pl.BlockSpec((tile_b, OUTPUT_DIM), lambda i: (i, 0))

    out = pl.pallas_call(
        mlp_kernel,
        out_shape=jax.ShapeDtypeStruct((Bp, OUTPUT_DIM), jnp.float32),
        grid=grid,
        in_specs=in_specs,
        out_specs=out_specs,
        compiler_params=pltpu.CompilerParams(
            dimension_semantics=("parallel",),
            vmem_limit_bytes=_vmem_budget_bytes(tile_b)),
    )(xa, xb, w1a, w1b, b1, w2b, b2, g, beta, w3b, b3, w4b, b4, w5t, b5)

    return out[:B]


def init_params(key):
    """Deterministic init matching the PyTorch module's parameter shapes.

    Linear weights are stored pre-transposed as (in, out); biases as (1, out).
    """
    dims = [(INPUT_DIM, HIDDEN_DIM), (HIDDEN_DIM, HIDDEN_DIM1),
            (HIDDEN_DIM1, HIDDEN_DIM2), (HIDDEN_DIM2, HIDDEN_DIM3),
            (HIDDEN_DIM3, OUTPUT_DIM)]
    keys = jax.random.split(key, 2 * len(dims))
    layers = []
    for idx, (fan_in, fan_out) in enumerate(dims):
        bound = 1.0 / jnp.sqrt(float(fan_in))
        w = jax.random.uniform(keys[2 * idx], (fan_in, fan_out),
                               jnp.float32, -bound, bound)
        b = jax.random.uniform(keys[2 * idx + 1], (1, fan_out),
                               jnp.float32, -bound, bound)
        layers.append((w, b))
    gamma = jnp.ones((1, HIDDEN_DIM1), jnp.float32)
    beta = jnp.zeros((1, HIDDEN_DIM1), jnp.float32)
    (w1, b1), (w2, b2), (w3, b3), (w4, b4), (w5, b5) = layers
    return (w1, b1, w2, b2, gamma, beta, w3, b3, w4, b4, w5, b5)


def reference_forward(x, params):
    (w1, b1, w2, b2, g, beta, w3, b3, w4, b4, w5, b5) = params
    silu = lambda t: t * jax.nn.sigmoid(t)
    h = silu(x @ w1 + b1)
    h = silu(h @ w2 + b2)
    mu = jnp.mean(h, axis=-1, keepdims=True)
    var = jnp.mean((h - mu) ** 2, axis=-1, keepdims=True)
    h = (h - mu) / jnp.sqrt(var + LN_EPS) * g + beta
    h = silu(h @ w3 + b3)
    h = silu(h @ w4 + b4)
    h = h @ w5 + b5
    return jax.nn.sigmoid(h)


if __name__ == "__main__":
    key = jax.random.PRNGKey(0)
    pkey, xkey = jax.random.split(key)
    params = init_params(pkey)

    # Main check: batch large enough to exercise real tiles + a multi-step grid.
    B = 512
    x = jax.random.normal(xkey, (B, INPUT_DIM), jnp.float32)
    out = jax.block_until_ready(mlp_forward(x, params))
    ref = reference_forward(x, params)
    assert out.shape == (B, OUTPUT_DIM)
    # bf16 MXU operands for fc1-fc4 are the reason for the loosened tolerance.
    assert jnp.allclose(out, ref, atol=2e-2, rtol=2e-2)

    # Ragged-batch check: exercises the pad-to-tile path (B not a tile multiple).
    B2 = 50
    out2 = jax.block_until_ready(mlp_forward(x[:B2], params))
    assert out2.shape == (B2, OUTPUT_DIM)
    assert jnp.allclose(out2, ref[:B2], atol=2e-2, rtol=2e-2)

    print("KERNEL_OK")
</pallas_src>

<mosaic_0001>
module attributes {stable_mosaic.version = 11 : i64} {
  func.func @mlp_kernel(%arg0: i32, %arg1: memref<256x384xbf16, #tpu.memory_space<vmem>>, %arg2: memref<256x1xf32, #tpu.memory_space<vmem>>, %arg3: memref<384x256xbf16, #tpu.memory_space<vmem>>, %arg4: memref<1x256xf32, #tpu.memory_space<vmem>>, %arg5: memref<1x256xf32, #tpu.memory_space<vmem>>, %arg6: memref<256x128xbf16, #tpu.memory_space<vmem>>, %arg7: memref<1x128xf32, #tpu.memory_space<vmem>>, %arg8: memref<1x128xf32, #tpu.memory_space<vmem>>, %arg9: memref<1x128xf32, #tpu.memory_space<vmem>>, %arg10: memref<128x64xbf16, #tpu.memory_space<vmem>>, %arg11: memref<1x64xf32, #tpu.memory_space<vmem>>, %arg12: memref<64x32xbf16, #tpu.memory_space<vmem>>, %arg13: memref<1x32xf32, #tpu.memory_space<vmem>>, %arg14: memref<1x32xf32, #tpu.memory_space<vmem>>, %arg15: memref<1x1xf32, #tpu.memory_space<vmem>>, %arg16: memref<256x1xf32, #tpu.memory_space<vmem>>) attributes {dimension_semantics = [#tpu.dimension_semantics<parallel>], iteration_bounds = array<i64: 2>, scalar_prefetch = 0 : i64, scratch_operands = 0 : i64, tpu.core_type = #tpu.core_type<tc>, window_params = [{transform_indices = @transform_0, window_bounds = array<i64: 256, 384>}, {transform_indices = @transform_1, window_bounds = array<i64: 256, 1>}, {pipeline_mode = #tpu.pipeline_mode<synchronous>, transform_indices = @transform_2, window_bounds = array<i64: 384, 256>}, {pipeline_mode = #tpu.pipeline_mode<synchronous>, transform_indices = @transform_3, window_bounds = array<i64: 1, 256>}, {pipeline_mode = #tpu.pipeline_mode<synchronous>, transform_indices = @transform_4, window_bounds = array<i64: 1, 256>}, {pipeline_mode = #tpu.pipeline_mode<synchronous>, transform_indices = @transform_5, window_bounds = array<i64: 256, 128>}, {pipeline_mode = #tpu.pipeline_mode<synchronous>, transform_indices = @transform_6, window_bounds = array<i64: 1, 128>}, {pipeline_mode = #tpu.pipeline_mode<synchronous>, transform_indices = @transform_7, window_bounds = array<i64: 1, 128>}, {pipeline_mode = #tpu.pipeline_mode<synchronous>, transform_indices = @transform_8, window_bounds = array<i64: 1, 128>}, {pipeline_mode = #tpu.pipeline_mode<synchronous>, transform_indices = @transform_9, window_bounds = array<i64: 128, 64>}, {pipeline_mode = #tpu.pipeline_mode<synchronous>, transform_indices = @transform_10, window_bounds = array<i64: 1, 64>}, {pipeline_mode = #tpu.pipeline_mode<synchronous>, transform_indices = @transform_11, window_bounds = array<i64: 64, 32>}, {pipeline_mode = #tpu.pipeline_mode<synchronous>, transform_indices = @transform_12, window_bounds = array<i64: 1, 32>}, {pipeline_mode = #tpu.pipeline_mode<synchronous>, transform_indices = @transform_13, window_bounds = array<i64: 1, 32>}, {pipeline_mode = #tpu.pipeline_mode<synchronous>, transform_indices = @transform_14, window_bounds = array<i64: 1, 1>}, {transform_indices = @transform_15, window_bounds = array<i64: 256, 1>}]} {
    %c0 = arith.constant 0 : index
    %c0_0 = arith.constant 0 : index
    %0 = vector.load %arg1[%c0, %c0_0] : memref<256x384xbf16, #tpu.memory_space<vmem>>, vector<256x384xbf16>
    %c0_1 = arith.constant 0 : index
    %c0_2 = arith.constant 0 : index
    %1 = vector.load %arg3[%c0_1, %c0_2] : memref<384x256xbf16, #tpu.memory_space<vmem>>, vector<384x256xbf16>
    %cst = arith.constant dense<0.000000e+00> : vector<256x256xf32>
    %2 = tpu.matmul %0, %1, %cst {dimension_numbers = #tpu.dot_dimension_numbers<[1], [0], [0], [1], [0, 0, 1, 1], [], []>} : vector<256x384xbf16>, vector<384x256xbf16>, vector<256x256xf32> -> vector<256x256xf32>
    %c0_3 = arith.constant 0 : index
    %c0_4 = arith.constant 0 : index
    %3 = vector.load %arg2[%c0_3, %c0_4] : memref<256x1xf32, #tpu.memory_space<vmem>>, vector<256x1xf32>
    %c0_5 = arith.constant 0 : index
    %c0_6 = arith.constant 0 : index
    %4 = vector.load %arg4[%c0_5, %c0_6] : memref<1x256xf32, #tpu.memory_space<vmem>>, vector<1x256xf32>
    %5 = vector.broadcast %3 : vector<256x1xf32> to vector<256x256xf32>
    %6 = vector.broadcast %4 : vector<1x256xf32> to vector<256x256xf32>
    %7 = arith.mulf %5, %6 : vector<256x256xf32>
    %8 = arith.addf %2, %7 : vector<256x256xf32>
    %c0_7 = arith.constant 0 : index
    %c0_8 = arith.constant 0 : index
    %9 = vector.load %arg5[%c0_7, %c0_8] : memref<1x256xf32, #tpu.memory_space<vmem>>, vector<1x256xf32>
    %10 = vector.broadcast %9 : vector<1x256xf32> to vector<256x256xf32>
    %11 = arith.addf %8, %10 : vector<256x256xf32>
    %cst_9 = arith.constant 5.000000e-01 : f32
    %12 = vector.broadcast %cst_9 : f32 to vector<256x256xf32>
    %13 = arith.mulf %12, %11 : vector<256x256xf32>
    %14 = math.tanh %13 : vector<256x256xf32>
    %cst_10 = arith.constant 5.000000e-01 : f32
    %15 = vector.broadcast %cst_10 : f32 to vector<256x256xf32>
    %16 = arith.mulf %15, %14 : vector<256x256xf32>
    %cst_11 = arith.constant 5.000000e-01 : f32
    %17 = vector.broadcast %cst_11 : f32 to vector<256x256xf32>
    %18 = arith.addf %16, %17 : vector<256x256xf32>
    %19 = arith.mulf %11, %18 : vector<256x256xf32>
    %20 = arith.truncf %19 : vector<256x256xf32> to vector<256x256xbf16>
    %c0_12 = arith.constant 0 : index
    %c0_13 = arith.constant 0 : index
    %21 = vector.load %arg6[%c0_12, %c0_13] : memref<256x128xbf16, #tpu.memory_space<vmem>>, vector<256x128xbf16>
    %cst_14 = arith.constant dense<0.000000e+00> : vector<256x128xf32>
    %22 = tpu.matmul %20, %21, %cst_14 {dimension_numbers = #tpu.dot_dimension_numbers<[1], [0], [0], [1], [0, 0, 1, 1], [], []>} : vector<256x256xbf16>, vector<256x128xbf16>, vector<256x128xf32> -> vector<256x128xf32>
    %c0_15 = arith.constant 0 : index
    %c0_16 = arith.constant 0 : index
    %23 = vector.load %arg7[%c0_15, %c0_16] : memref<1x128xf32, #tpu.memory_space<vmem>>, vector<1x128xf32>
    %24 = vector.broadcast %23 : vector<1x128xf32> to vector<256x128xf32>
    %25 = arith.addf %22, %24 : vector<256x128xf32>
    %cst_17 = arith.constant 5.000000e-01 : f32
    %26 = vector.broadcast %cst_17 : f32 to vector<256x128xf32>
    %27 = arith.mulf %26, %25 : vector<256x128xf32>
    %28 = math.tanh %27 : vector<256x128xf32>
    %cst_18 = arith.constant 5.000000e-01 : f32
    %29 = vector.broadcast %cst_18 : f32 to vector<256x128xf32>
    %30 = arith.mulf %29, %28 : vector<256x128xf32>
    %cst_19 = arith.constant 5.000000e-01 : f32
    %31 = vector.broadcast %cst_19 : f32 to vector<256x128xf32>
    %32 = arith.addf %30, %31 : vector<256x128xf32>
    %33 = arith.mulf %25, %32 : vector<256x128xf32>
    %cst_20 = arith.constant dense<0.000000e+00> : vector<256xf32>
    %34 = vector.multi_reduction <add>, %33, %cst_20 [1] : vector<256x128xf32> to vector<256xf32>
    %35 = vector.shape_cast %34 : vector<256xf32> to vector<256x1xf32>
    %cst_21 = arith.constant 1.280000e+02 : f32
    %36 = vector.broadcast %cst_21 : f32 to vector<256x1xf32>
    %37 = arith.divf %35, %36 : vector<256x1xf32>
    %38 = vector.broadcast %37 : vector<256x1xf32> to vector<256x128xf32>
    %39 = arith.subf %33, %38 : vector<256x128xf32>
    %40 = arith.mulf %39, %39 : vector<256x128xf32>
    %cst_22 = arith.constant dense<0.000000e+00> : vector<256xf32>
    %41 = vector.multi_reduction <add>, %40, %cst_22 [1] : vector<256x128xf32> to vector<256xf32>
    %42 = vector.shape_cast %41 : vector<256xf32> to vector<256x1xf32>
    %cst_23 = arith.constant 1.280000e+02 : f32
    %43 = vector.broadcast %cst_23 : f32 to vector<256x1xf32>
    %44 = arith.divf %42, %43 : vector<256x1xf32>
    %cst_24 = arith.constant 9.99999974E-6 : f32
    %45 = vector.broadcast %cst_24 : f32 to vector<256x1xf32>
    %46 = arith.addf %44, %45 : vector<256x1xf32>
    %47 = math.rsqrt %46 : vector<256x1xf32>
    %48 = vector.broadcast %47 : vector<256x1xf32> to vector<256x128xf32>
    %49 = arith.mulf %39, %48 : vector<256x128xf32>
    %c0_25 = arith.constant 0 : index
    %c0_26 = arith.constant 0 : index
    %50 = vector.load %arg8[%c0_25, %c0_26] : memref<1x128xf32, #tpu.memory_space<vmem>>, vector<1x128xf32>
    %51 = vector.broadcast %50 : vector<1x128xf32> to vector<256x128xf32>
    %52 = arith.mulf %49, %51 : vector<256x128xf32>
    %c0_27 = arith.constant 0 : index
    %c0_28 = arith.constant 0 : index
    %53 = vector.load %arg9[%c0_27, %c0_28] : memref<1x128xf32, #tpu.memory_space<vmem>>, vector<1x128xf32>
    %54 = vector.broadcast %53 : vector<1x128xf32> to vector<256x128xf32>
    %55 = arith.addf %52, %54 : vector<256x128xf32>
    %56 = arith.truncf %55 : vector<256x128xf32> to vector<256x128xbf16>
    %c0_29 = arith.constant 0 : index
    %c0_30 = arith.constant 0 : index
    %57 = vector.load %arg10[%c0_29, %c0_30] : memref<128x64xbf16, #tpu.memory_space<vmem>>, vector<128x64xbf16>
    %cst_31 = arith.constant dense<0.000000e+00> : vector<256x64xf32>
    %58 = tpu.matmul %56, %57, %cst_31 {dimension_numbers = #tpu.dot_dimension_numbers<[1], [0], [0], [1], [0, 0, 1, 1], [], []>} : vector<256x128xbf16>, vector<128x64xbf16>, vector<256x64xf32> -> vector<256x64xf32>
    %c0_32 = arith.constant 0 : index
    %c0_33 = arith.constant 0 : index
    %59 = vector.load %arg11[%c0_32, %c0_33] : memref<1x64xf32, #tpu.memory_space<vmem>>, vector<1x64xf32>
    %60 = vector.broadcast %59 : vector<1x64xf32> to vector<256x64xf32>
    %61 = arith.addf %58, %60 : vector<256x64xf32>
    %cst_34 = arith.constant 5.000000e-01 : f32
    %62 = vector.broadcast %cst_34 : f32 to vector<256x64xf32>
    %63 = arith.mulf %62, %61 : vector<256x64xf32>
    %64 = math.tanh %63 : vector<256x64xf32>
    %cst_35 = arith.constant 5.000000e-01 : f32
    %65 = vector.broadcast %cst_35 : f32 to vector<256x64xf32>
    %66 = arith.mulf %65, %64 : vector<256x64xf32>
    %cst_36 = arith.constant 5.000000e-01 : f32
    %67 = vector.broadcast %cst_36 : f32 to vector<256x64xf32>
    %68 = arith.addf %66, %67 : vector<256x64xf32>
    %69 = arith.mulf %61, %68 : vector<256x64xf32>
    %70 = arith.truncf %69 : vector<256x64xf32> to vector<256x64xbf16>
    %c0_37 = arith.constant 0 : index
    %c0_38 = arith.constant 0 : index
    %71 = vector.load %arg12[%c0_37, %c0_38] : memref<64x32xbf16, #tpu.memory_space<vmem>>, vector<64x32xbf16>
    %cst_39 = arith.constant dense<0.000000e+00> : vector<256x32xf32>
    %72 = tpu.matmul %70, %71, %cst_39 {dimension_numbers = #tpu.dot_dimension_numbers<[1], [0], [0], [1], [0, 0, 1, 1], [], []>} : vector<256x64xbf16>, vector<64x32xbf16>, vector<256x32xf32> -> vector<256x32xf32>
    %c0_40 = arith.constant 0 : index
    %c0_41 = arith.constant 0 : index
    %73 = vector.load %arg13[%c0_40, %c0_41] : memref<1x32xf32, #tpu.memory_space<vmem>>, vector<1x32xf32>
    %74 = vector.broadcast %73 : vector<1x32xf32> to vector<256x32xf32>
    %75 = arith.addf %72, %74 : vector<256x32xf32>
    %cst_42 = arith.constant 5.000000e-01 : f32
    %76 = vector.broadcast %cst_42 : f32 to vector<256x32xf32>
    %77 = arith.mulf %76, %75 : vector<256x32xf32>
    %78 = math.tanh %77 : vector<256x32xf32>
    %cst_43 = arith.constant 5.000000e-01 : f32
    %79 = vector.broadcast %cst_43 : f32 to vector<256x32xf32>
    %80 = arith.mulf %79, %78 : vector<256x32xf32>
    %cst_44 = arith.constant 5.000000e-01 : f32
    %81 = vector.broadcast %cst_44 : f32 to vector<256x32xf32>
    %82 = arith.addf %80, %81 : vector<256x32xf32>
    %83 = arith.mulf %75, %82 : vector<256x32xf32>
    %c0_45 = arith.constant 0 : index
    %c0_46 = arith.constant 0 : index
    %84 = vector.load %arg14[%c0_45, %c0_46] : memref<1x32xf32, #tpu.memory_space<vmem>>, vector<1x32xf32>
    %85 = vector.broadcast %84 : vector<1x32xf32> to vector<256x32xf32>
    %86 = arith.mulf %83, %85 : vector<256x32xf32>
    %cst_47 = arith.constant dense<0.000000e+00> : vector<256xf32>
    %87 = vector.multi_reduction <add>, %86, %cst_47 [1] : vector<256x32xf32> to vector<256xf32>
    %88 = vector.shape_cast %87 : vector<256xf32> to vector<256x1xf32>
    %c0_48 = arith.constant 0 : index
    %c0_49 = arith.constant 0 : index
    %89 = vector.load %arg15[%c0_48, %c0_49] : memref<1x1xf32, #tpu.memory_space<vmem>>, vector<1x1xf32>
    %90 = vector.broadcast %89 : vector<1x1xf32> to vector<256x1xf32>
    %91 = arith.addf %88, %90 : vector<256x1xf32>
    %cst_50 = arith.constant 5.000000e-01 : f32
    %92 = vector.broadcast %cst_50 : f32 to vector<256x1xf32>
    %93 = arith.mulf %92, %91 : vector<256x1xf32>
    %94 = math.tanh %93 : vector<256x1xf32>
    %cst_51 = arith.constant 5.000000e-01 : f32
    %95 = vector.broadcast %cst_51 : f32 to vector<256x1xf32>
    %96 = arith.mulf %95, %94 : vector<256x1xf32>
    %cst_52 = arith.constant 5.000000e-01 : f32
    %97 = vector.broadcast %cst_52 : f32 to vector<256x1xf32>
    %98 = arith.addf %96, %97 : vector<256x1xf32>
    %c0_53 = arith.constant 0 : index
    %c0_54 = arith.constant 0 : index
    %99 = vector.load %arg16[%c0_53, %c0_54] : memref<256x1xf32, #tpu.memory_space<vmem>>, vector<256x1xf32>
    tpu.vector_store %arg16[%c0_53, %c0_54], %98 {strides = array<i32>} : memref<256x1xf32, #tpu.memory_space<vmem>>, vector<256x1xf32>,
    return
  }
  func.func @transform_0(%arg0: i32) -> (i32, i32) {
    %c0_i32 = arith.constant 0 : i32
    %c0_i32_0 = arith.constant 0 : i32
    return %arg0, %c0_i32 : i32, i32
  }
  func.func @transform_1(%arg0: i32) -> (i32, i32) {
    %c0_i32 = arith.constant 0 : i32
    %c0_i32_0 = arith.constant 0 : i32
    return %arg0, %c0_i32 : i32, i32
  }
  func.func @transform_2(%arg0: i32) -> (i32, i32) {
    %c0_i32 = arith.constant 0 : i32
    %c0_i32_0 = arith.constant 0 : i32
    %c0_i32_1 = arith.constant 0 : i32
    return %c0_i32, %c0_i32_0 : i32, i32
  }
  func.func @transform_3(%arg0: i32) -> (i32, i32) {
    %c0_i32 = arith.constant 0 : i32
    %c0_i32_0 = arith.constant 0 : i32
    %c0_i32_1 = arith.constant 0 : i32
    return %c0_i32, %c0_i32_0 : i32, i32
  }
  func.func @transform_4(%arg0: i32) -> (i32, i32) {
    %c0_i32 = arith.constant 0 : i32
    %c0_i32_0 = arith.constant 0 : i32
    %c0_i32_1 = arith.constant 0 : i32
    return %c0_i32, %c0_i32_0 : i32, i32
  }
  func.func @transform_5(%arg0: i32) -> (i32, i32) {
    %c0_i32 = arith.constant 0 : i32
    %c0_i32_0 = arith.constant 0 : i32
    %c0_i32_1 = arith.constant 0 : i32
    return %c0_i32, %c0_i32_0 : i32, i32
  }
  func.func @transform_6(%arg0: i32) -> (i32, i32) {
    %c0_i32 = arith.constant 0 : i32
    %c0_i32_0 = arith.constant 0 : i32
    %c0_i32_1 = arith.constant 0 : i32
    return %c0_i32, %c0_i32_0 : i32, i32
  }
  func.func @transform_7(%arg0: i32) -> (i32, i32) {
    %c0_i32 = arith.constant 0 : i32
    %c0_i32_0 = arith.constant 0 : i32
    %c0_i32_1 = arith.constant 0 : i32
    return %c0_i32, %c0_i32_0 : i32, i32
  }
  func.func @transform_8(%arg0: i32) -> (i32, i32) {
    %c0_i32 = arith.constant 0 : i32
    %c0_i32_0 = arith.constant 0 : i32
    %c0_i32_1 = arith.constant 0 : i32
    return %c0_i32, %c0_i32_0 : i32, i32
  }
  func.func @transform_9(%arg0: i32) -> (i32, i32) {
    %c0_i32 = arith.constant 0 : i32
    %c0_i32_0 = arith.constant 0 : i32
    %c0_i32_1 = arith.constant 0 : i32
    return %c0_i32, %c0_i32_0 : i32, i32
  }
  func.func @transform_10(%arg0: i32) -> (i32, i32) {
    %c0_i32 = arith.constant 0 : i32
    %c0_i32_0 = arith.constant 0 : i32
    %c0_i32_1 = arith.constant 0 : i32
    return %c0_i32, %c0_i32_0 : i32, i32
  }
  func.func @transform_11(%arg0: i32) -> (i32, i32) {
    %c0_i32 = arith.constant 0 : i32
    %c0_i32_0 = arith.constant 0 : i32
    %c0_i32_1 = arith.constant 0 : i32
    return %c0_i32, %c0_i32_0 : i32, i32
  }
  func.func @transform_12(%arg0: i32) -> (i32, i32) {
    %c0_i32 = arith.constant 0 : i32
    %c0_i32_0 = arith.constant 0 : i32
    %c0_i32_1 = arith.constant 0 : i32
    return %c0_i32, %c0_i32_0 : i32, i32
  }
  func.func @transform_13(%arg0: i32) -> (i32, i32) {
    %c0_i32 = arith.constant 0 : i32
    %c0_i32_0 = arith.constant 0 : i32
    %c0_i32_1 = arith.constant 0 : i32
    return %c0_i32, %c0_i32_0 : i32, i32
  }
  func.func @transform_14(%arg0: i32) -> (i32, i32) {
    %c0_i32 = arith.constant 0 : i32
    %c0_i32_0 = arith.constant 0 : i32
    %c0_i32_1 = arith.constant 0 : i32
    return %c0_i32, %c0_i32_0 : i32, i32
  }
  func.func @transform_15(%arg0: i32) -> (i32, i32) {
    %c0_i32 = arith.constant 0 : i32
    %c0_i32_0 = arith.constant 0 : i32
    return %arg0, %c0_i32 : i32, i32
  }
}

</mosaic_0001>

<bundles_post_ra>
// kernel: mlp_forward.1
= control target key start
LH: loop header
LB: loop body
LE: loop exit
PB: predicated region body
PF: predicated region fallthrough
CT: control target
= control target key end

     0   :  { %s5588_s20 = smov 0   ;;  %s7165_s0 = inlined_call_operand.vmem [shape: bf16[512,384], index: 0, kind: input, shape index: {}]   ;;  %s7166_s1 = inlined_call_operand.vmem [shape: f32[512,1], index: 1, kind: input, shape index: {}]   ;;  %s7167_s2 = inlined_call_operand.vmem [shape: bf16[384,256], index: 2, kind: input, shape index: {}]   ;;  %s7168_s3 = inlined_call_operand.vmem [shape: f32[1,256], index: 3, kind: input, shape index: {}]   ;;  %s7169_s4 = inlined_call_operand.vmem [shape: f32[1,256], index: 4, kind: input, shape index: {}]   ;;  %s7170_s5 = inlined_call_operand.vmem [shape: bf16[256,128], index: 5, kind: input, shape index: {}]   ;;  %s7171_s6 = inlined_call_operand.vmem [shape: f32[1,128], index: 6, kind: input, shape index: {}]   ;;  %s7172_s7 = inlined_call_operand.vmem [shape: f32[1,128], index: 7, kind: input, shape index: {}]   ;;  %s7173_s8 = inlined_call_operand.vmem [shape: f32[1,128], index: 8, kind: input, shape index: {}]   ;;  %s7174_s9 = inlined_call_operand.vmem [shape: bf16[128,64], index: 9, kind: input, shape index: {}]   ;;  %s7175_s10 = inlined_call_operand.vmem [shape: f32[1,64], index: 10, kind: input, shape index: {}]   ;;  %s7176_s11 = inlined_call_operand.vmem [shape: bf16[64,32], index: 11, kind: input, shape index: {}]   ;;  %s7177_s12 = inlined_call_operand.vmem [shape: f32[1,32], index: 12, kind: input, shape index: {}]   ;;  %s7178_s13 = inlined_call_operand.vmem [shape: f32[1,32], index: 13, kind: input, shape index: {}]   ;;  %s7179_s14 = inlined_call_operand.<no memory space> [shape: f32[1,1], index: 14, kind: input, shape index: {}]   ;;  %s7180_s15 = inlined_call_operand.vmem [shape: f32[512,1], index: 15, kind: output, shape index: {}]  }
   0x1   :  { %v20_v0 = vstv %s7179_s14 }
   0x2   :  { %21 = vst [vmem:[#allocation2] sm:$0x1] %v20_v0 }
   0x3 LB: > { %s4340_s21 = sadd.s32 4294967295, %s5502_s20   ;;  %p4344_p0 = scmp.ge.s32.totalorder %s5502_s20, 1  ;;  %s5502_s20 = sphi %s5588_s20, %s27_s20  }
   0x4   : > { %p452_p1 = scmp.lt.s32.totalorder %s5502_s20, 3 }
   0x6   : > { %p453_p2 = pnand %p4344_p0, %p452_p1 }
   0x8   : > { %456 = sbr.rel (%p453_p2) target bundleno = 1764 (0x6e4), region = 80 }
   0xf   : > { %v4884_v1 = vld [vmem:[%s7167_s2 + $0x4] ss:$8 sps:$4 sm:$0xff]   ;;  %v4886_v2 = vld [vmem:[%s7167_s2] ss:$8 sps:$4 sm:$0xff]   ;;  %v4887_v3 = vld [vmem:[%s7167_s2 + $0x14] ss:$8 sps:$4 sm:$0xff]  }
  0x10   : > { %1402 = vmatprep.subr.bf16.mxu0 %v4884_v1  ;;  %v4889_v4 = vld [vmem:[%s7167_s2 + $0x10] ss:$8 sps:$4 sm:$0xff]   ;;  %v4890_v5 = vld [vmem:[%s7167_s2 + $0x24] ss:$8 sps:$4 sm:$0xff]   ;;  %s4345_s16 = sshll.u32 %s4340_s21, 5  ;;  %v5504_v35 = vmov 0  }
  0x11   : > { %1403 = vmatpush1.bf16.msra.mxu0 %v4886_v2  ;;  %v4892_v6 = vld [vmem:[%s7167_s2 + $0x20] ss:$8 sps:$4 sm:$0xff]   ;;  %p507_p3 = scmp.lt.s32.totalorder %s4345_s16, 63  ;;  %v4893_v7 = vld [vmem:[%s7167_s2 + $0x34] ss:$8 sps:$4 sm:$0xff]   ;;  %4882 = vset.pattern.permute.xlu0 %v5504_v35  ;;  %vm3566_vm0 = vcmask 523264  }
  0x12   : > { %1404 = vmatprep.subr.bf16.mxu0 %v4887_v3  ;;  %v4895_v8 = vld [vmem:[%s7167_s2 + $0x30] ss:$8 sps:$4 sm:$0xff]   ;;  %v4896_v9 = vld [vmem:[%s7167_s2 + $0x44] ss:$8 sps:$4 sm:$0xff]   ;;  %v4898_v10 = vld [vmem:[%s7167_s2 + $0x40] ss:$8 sps:$4 sm:$0xff]   ;;  %4883 = vset.pattern.permute.xlu1 %v5504_v35 }
  0x13   : > { %s7210_s16 = smov (!%p507_p3, %s4345_s16), 63  ;;  %v4899_v11 = vld [vmem:[%s7167_s2 + $0x54] ss:$8 sps:$4 sm:$0xff]   ;;  %v4901_v12 = vld [vmem:[%s7167_s2 + $0x50] ss:$8 sps:$4 sm:$0xff]   ;;  %vm3975_vm1 = vcmask 261120  }
  0x14   : > { %s4872_s27 = smul.u32 12, %s7210_s16  ;;  %v4902_v13 = vld [vmem:[%s7167_s2 + $0x64] ss:$8 sps:$4 sm:$0xff]   ;;  %v4904_v15 = vld [vmem:[%s7167_s2 + $0x60] ss:$8 sps:$4 sm:$0xff]   ;;  %s4348_s19 = sshll.u32 %s7210_s16, 3 }
  0x15   : > { %1405 = vmatpush1.bf16.msra.mxu0 %v4889_v4  ;;  %v4905_v16 = vld [vmem:[%s7167_s2 + $0x74] ss:$8 sps:$4 sm:$0xff]   ;;  %v4907_v17 = vld [vmem:[%s7167_s2 + $0x70] ss:$8 sps:$4 sm:$0xff]   ;;  %v4908_v18 = vld [vmem:[%s7167_s2 + $0x84] ss:$8 sps:$4 sm:$0xff]   ;;  %s5754_s25 = scalar_lea.vmem %s7166_s1, %s4348_s19  ;;  %s7069_s30 = scalar_lea.vmem %s7180_s15, %s4348_s19 }
  0x16   : > { %1406 = vmatprep.subr.bf16.mxu0 %v4890_v5  ;;  %s5638_s22 = scalar_lea.vmem %s7165_s0, %s4872_s27  ;;  %v4910_v19 = vld [vmem:[%s7167_s2 + $0x80] ss:$8 sps:$4 sm:$0xff]   ;;  %v4911_v20 = vld [vmem:[%s7167_s2 + $0x94] ss:$8 sps:$4 sm:$0xff]   ;;  %v4913_v21 = vld [vmem:[%s7167_s2 + $0x90] ss:$8 sps:$4 sm:$0xff]  }
  0x17   : > { %v4934_v14 = vld [vmem:[%s5638_s22 + $0x4] ss:$12 sps:$4 sm:$0xff]   ;;  %v4916_v23 = vld [vmem:[%s7167_s2 + $0xa0] ss:$8 sps:$4 sm:$0xff]   ;;  %v4917_v24 = vld [vmem:[%s7167_s2 + $0xb4] ss:$8 sps:$4 sm:$0xff]  }
  0x18   : > { %1434 = vmatprep.mubr.bf16.mxu0 %v4934_v14  ;;  %v4914_v22 = vld [vmem:[%s7167_s2 + $0xa4] ss:$8 sps:$4 sm:$0xff]   ;;  %v4919_v25 = vld [vmem:[%s7167_s2 + $0xb0] ss:$8 sps:$4 sm:$0xff]   ;;  %v4922_v27 = vld [vmem:[%s7167_s2 + $0xc0] ss:$8 sps:$4 sm:$0xff]  }
  0x19   : > { %1407 = vmatpush1.bf16.msra.mxu0 %v4892_v6  ;;  %v4920_v26 = vld [vmem:[%s7167_s2 + $0xc4] ss:$8 sps:$4 sm:$0xff]   ;;  %v4923_v28 = vld [vmem:[%s7167_s2 + $0xd4] ss:$8 sps:$4 sm:$0xff]   ;;  %v4925_v29 = vld [vmem:[%s7167_s2 + $0xd0] ss:$8 sps:$4 sm:$0xff]  }
  0x1a   : > { %1408 = vmatprep.subr.bf16.mxu0 %v4893_v7  ;;  %v4926_v30 = vld [vmem:[%s7167_s2 + $0xe4] ss:$8 sps:$4 sm:$0xff]   ;;  %v4928_v31 = vld [vmem:[%s7167_s2 + $0xe0] ss:$8 sps:$4 sm:$0xff]   ;;  %v4929_v32 = vld [vmem:[%s7167_s2 + $0xf4] ss:$8 sps:$4 sm:$0xff]  }
  0x1b   : > { %v4931_v33 = vld [vmem:[%s7167_s2 + $0xf0] ss:$8 sps:$4 sm:$0xff]   ;;  %v4937_v34 = vld [vmem:[%s7167_s2 + $0x104] ss:$8 sps:$4 sm:$0xff]   ;;  %v4935_v37 = vld [vmem:[%s7167_s2 + $0x100] ss:$8 sps:$4 sm:$0xff]  }
  0x1c   : > { %v4932_v36 = vld [vmem:[%s5638_s22] ss:$12 sps:$4 sm:$0xff]   ;;  %v4938_v38 = vld [vmem:[%s5638_s22 + $0x1c] ss:$12 sps:$4 sm:$0xff]   ;;  %v4944_v40 = vld [vmem:[%s7167_s2 + $0x110] ss:$8 sps:$4 sm:$0xff]  }
  0x1d   : > { %1409 = vmatpush1.bf16.msra.mxu0 %v4895_v8  ;;  %v4946_v39 = vld [vmem:[%s7167_s2 + $0x114] ss:$8 sps:$4 sm:$0xff]   ;;  %v4955_v41 = vld [vmem:[%s7167_s2 + $0x124] ss:$8 sps:$4 sm:$0xff]   ;;  %v4953_v44 = vld [vmem:[%s7167_s2 + $0x120] ss:$8 sps:$4 sm:$0xff]  }
  0x1e   : > { %1410 = vmatprep.subr.bf16.mxu0 %v4896_v9  ;;  %v4940_v42 = vld [vmem:[%s5638_s22 + $0x18] ss:$12 sps:$4 sm:$0xff]   ;;  %v4941_v43 = vld [vmem:[%s5638_s22 + $0x34] ss:$12 sps:$4 sm:$0xff]   ;;  %v4943_v48 = vld [vmem:[%s5638_s22 + $0x30] ss:$12 sps:$4 sm:$0xff]  }
  0x1f   : > { %v4964_v45 = vld [vmem:[%s7167_s2 + $0x134] ss:$8 sps:$4 sm:$0xff]   ;;  %v4962_v46 = vld [vmem:[%s7167_s2 + $0x130] ss:$8 sps:$4 sm:$0xff]   ;;  %v4973_v47 = vld [vmem:[%s7167_s2 + $0x144] ss:$8 sps:$4 sm:$0xff]  }
  0x20   : > { %v4947_v49 = vld [vmem:[%s5638_s22 + $0x4c] ss:$12 sps:$4 sm:$0xff]   ;;  %v4971_v50 = vld [vmem:[%s7167_s2 + $0x140] ss:$8 sps:$4 sm:$0xff]   ;;  %v4982_v51 = vld [vmem:[%s7167_s2 + $0x154] ss:$8 sps:$4 sm:$0xff]  }
  0x21   : > { %1411 = vmatpush1.bf16.msra.mxu0 %v4898_v10  ;;  %v4980_v52 = vld [vmem:[%s7167_s2 + $0x150] ss:$8 sps:$4 sm:$0xff]   ;;  %v4991_v53 = vld [vmem:[%s7167_s2 + $0x164] ss:$8 sps:$4 sm:$0xff]   ;;  %v4949_v55 = vld [vmem:[%s5638_s22 + $0x48] ss:$12 sps:$4 sm:$0xff]  }
  0x22   : > { %1412 = vmatprep.subr.bf16.mxu0 %v4899_v11  ;;  %v638_v54 = vld [vmem:[%s5754_s25] sm:$0xff]  ;;  %v5000_v58 = vld [vmem:[%s7167_s2 + $0x174] ss:$8 sps:$4 sm:$0xff]   ;;  %v639_v59 = vld [vmem:[%s5754_s25 + $0x8] sm:$0xff]  ;;  %vm4239_vm2 = vcmask 7168  }
  0x23   : > { %673 = vperm.xlu0 %4882, %v638_v54   ;;  %v4950_v56 = vld [vmem:[%s5638_s22 + $0x64] ss:$12 sps:$4 sm:$0xff]   ;;  %v4989_v57 = vld [vmem:[%s7167_s2 + $0x160] ss:$8 sps:$4 sm:$0xff]   ;;  %v641_v1 = vld [vmem:[%s5754_s25 + $0x18] sm:$0xff] }
  0x24   : > { %v640_v60 = vld [vmem:[%s5754_s25 + $0x10] sm:$0xff]  ;;  %v642_v62 = vld [vmem:[%s5754_s25 + $0x20] sm:$0xff]  ;;  %v4956_v0 = vld [vmem:[%s5638_s22 + $0x7c] ss:$12 sps:$4 sm:$0xff]  }
  0x25   : > { %1413 = vmatpush1.bf16.msra.mxu0 %v4901_v12  ;;  %v4998_v61 = vld [vmem:[%s7167_s2 + $0x170] ss:$8 sps:$4 sm:$0xff]   ;;  %683 = vperm.xlu1 %4883, %v640_v60   ;;  %v4952_v63 = vld [vmem:[%s5638_s22 + $0x60] ss:$12 sps:$4 sm:$0xff]  }
  0x26   : > { %1414 = vmatprep.subr.bf16.mxu0 %v4902_v13  ;;  %v644_v2 = vld [vmem:[%s5754_s25 + $0x30] sm:$0xff]  ;;  %v643_v3 = vld [vmem:[%s5754_s25 + $0x28] sm:$0xff]  ;;  %v646_v4 = vld [vmem:[%s5754_s25 + $0x40] sm:$0xff] }
  0x27   : > { %678 = vperm.xlu0 %4882, %v639_v59   ;;  %v4958_v5 = vld [vmem:[%s5638_s22 + $0x78] ss:$12 sps:$4 sm:$0xff]   ;;  %v4959_v6 = vld [vmem:[%s5638_s22 + $0x94] ss:$12 sps:$4 sm:$0xff]   ;;  %v647_v9 = vld [vmem:[%s5754_s25 + $0x48] sm:$0xff] }
  0x28   : > { %v645_v7 = vld [vmem:[%s5754_s25 + $0x38] sm:$0xff]  ;;  %v648_v8 = vld [vmem:[%s5754_s25 + $0x50] sm:$0xff]  ;;  %v650_v10 = vld [vmem:[%s5754_s25 + $0x60] sm:$0xff] }
  0x29   : > { %1415 = vmatpush1.bf16.msra.mxu0 %v4904_v15  ;;  %688 = vperm.xlu1 %4883, %v641_v1   ;;  %v4961_v11 = vld [vmem:[%s5638_s22 + $0x90] ss:$12 sps:$4 sm:$0xff]   ;;  %v4965_v12 = vld [vmem:[%s5638_s22 + $0xac] ss:$12 sps:$4 sm:$0xff]  }
  0x2a   : > { %1416 = vmatprep.subr.bf16.mxu0 %v4905_v16  ;;  %v649_v13 = vld [vmem:[%s5754_s25 + $0x58] sm:$0xff]  ;;  %v652_v14 = vld [vmem:[%s5754_s25 + $0x70] sm:$0xff]  ;;  %v651_v15 = vld [vmem:[%s5754_s25 + $0x68] sm:$0xff] }
  0x2b   : > { %693 = vperm.xlu0 %4882, %v642_v62   ;;  %v654_v16 = vld [vmem:[%s5754_s25 + $0x80] sm:$0xff]  ;;  %v5011_v60 = vld [vmem:[%s5638_s22 + $0xb0] ss:$12 sps:$4 sm:$0xff]  }
  0x2c   : > { %v5005_v54 = vld [vmem:[%s5638_s22 + $0x20] ss:$12 sps:$4 sm:$0xff]   ;;  %v5010_v59 = vld [vmem:[%s5638_s22 + $0x98] ss:$12 sps:$4 sm:$0xff]   ;;  %v5015_v1 = vld [vmem:[%s5638_s22 + $0x110] ss:$12 sps:$4 sm:$0xff]  }
  0x2d   : > { %1417 = vmatpush1.bf16.msra.mxu0 %v4907_v17  ;;  %698 = vperm.xlu1 %4883, %v643_v3   ;;  %v4967_v17 = vld [vmem:[%s5638_s22 + $0xa8] ss:$12 sps:$4 sm:$0xff]   ;;  %v5013_v62 = vld [vmem:[%s5638_s22 + $0xe0] ss:$12 sps:$4 sm:$0xff]  }
  0x2e   : > { %1418 = vmatprep.subr.bf16.mxu0 %v4908_v18  ;;  %v4968_v18 = vld [vmem:[%s5638_s22 + $0xc4] ss:$12 sps:$4 sm:$0xff]  }
  0x2f   : > { %703 = vperm.xlu0 %4882, %v644_v2   ;;  %v5023_v2 = vld [vmem:[%s7170_s5 + $0x8] sm:$0xff]   ;;  %v5024_v3 = vld [vmem:[%s7170_s5 + $0x50] sm:$0xff]  }
  0x31   : > { %1419 = vmatpush1.bf16.msra.mxu0 %v4910_v19  ;;  %708 = vperm.xlu1 %4883, %v645_v7   ;;  %v653_v19 = vld [vmem:[%s5754_s25 + $0x78] sm:$0xff] }
  0x32   : > { %1420 = vmatprep.subr.bf16.mxu0 %v4911_v20  ;;  %v656_v20 = vld [vmem:[%s5754_s25 + $0x90] sm:$0xff]  ;;  %v5027_v7 = vld [vmem:[%s7170_s5 + $0x18] sm:$0xff]  }
  0x33   : > { %713 = vperm.xlu0 %4882, %v646_v4   ;;  %v5025_v4 = vld [vmem:[%s7170_s5 + $0x10] sm:$0xff]  }
  0x35   : > { %1421 = vmatpush1.bf16.msra.mxu0 %v4913_v21  ;;  %718 = vperm.xlu1 %4883, %v647_v9   ;;  %v655_v21 = vld [vmem:[%s5754_s25 + $0x88] sm:$0xff]  ;;  %v5029_v9 = vld [vmem:[%s7170_s5 + $0x20] sm:$0xff]  }
  0x36   : > { %1422 = vmatprep.subr.bf16.mxu0 %v4914_v22  ;;  %v658_v22 = vld [vmem:[%s5754_s25 + $0xa0] sm:$0xff] }
  0x37   : > { %723 = vperm.xlu0 %4882, %v648_v8   ;;  %v5028_v8 = vld [vmem:[%s7170_s5 + $0x60] sm:$0xff]  }
  0x39   : > { %1423 = vmatpush1.bf16.msra.mxu0 %v4916_v23  ;;  %728 = vperm.xlu1 %4883, %v649_v13   ;;  %v4970_v23 = vld [vmem:[%s5638_s22 + $0xc0] ss:$12 sps:$4 sm:$0xff]   ;;  %v5032_v13 = vld [vmem:[%s7170_s5 + $0x70] sm:$0xff]  }
  0x3a   : > { %1424 = vmatprep.subr.bf16.mxu0 %v4917_v24  ;;  %v4974_v24 = vld [vmem:[%s5638_s22 + $0xdc] ss:$12 sps:$4 sm:$0xff]  }
  0x3b   : > { %733 = vperm.xlu0 %4882, %v650_v10   ;;  %v5030_v10 = vld [vmem:[%s7170_s5 + $0x68] sm:$0xff]  }
  0x3d   : > { %1425 = vmatpush1.bf16.msra.mxu0 %v4919_v25  ;;  %738 = vperm.xlu1 %4883, %v651_v15   ;;  %v657_v25 = vld [vmem:[%s5754_s25 + $0x98] sm:$0xff] }
  0x3e   : > { %1426 = vmatprep.subr.bf16.mxu0 %v4920_v26  ;;  %v660_v26 = vld [vmem:[%s5754_s25 + $0xb0] sm:$0xff]  ;;  %v5034_v15 = vld [vmem:[%s7170_s5 + $0x78] sm:$0xff]  }
  0x3f   : > { %743 = vperm.xlu0 %4882, %v652_v14   ;;  %v5033_v14 = vld [vmem:[%s7170_s5 + $0x30] sm:$0xff]  }
  0x41   : > { %1427 = vmatpush1.bf16.msra.mxu0 %v4922_v27  ;;  %748 = vperm.xlu1 %4883, %v653_v19   ;;  %v659_v27 = vld [vmem:[%s5754_s25 + $0xa8] sm:$0xff] }
  0x42   : > { %1428 = vmatprep.subr.bf16.mxu0 %v4923_v28  ;;  %v662_v28 = vld [vmem:[%s5754_s25 + $0xc0] sm:$0xff] }
  0x43   : > { %753 = vperm.xlu0 %4882, %v654_v16   ;;  %v5018_v16 = vld [vmem:[%s5638_s22 + $0x158] ss:$12 sps:$4 sm:$0xff]  }
  0x45   : > { %1429 = vmatpush1.bf16.msra.mxu0 %v4925_v29  ;;  %758 = vperm.xlu1 %4883, %v655_v21   ;;  %v4976_v29 = vld [vmem:[%s5638_s22 + $0xd8] ss:$12 sps:$4 sm:$0xff]  }
  0x46   : > { %1430 = vmatprep.subr.bf16.mxu0 %v4926_v30  ;;  %v4977_v30 = vld [vmem:[%s5638_s22 + $0xf4] ss:$12 sps:$4 sm:$0xff]  }
  0x47   : > { %763 = vperm.xlu0 %4882, %v656_v20  }
  0x49   : > { %1431 = vmatpush1.bf16.msra.mxu0 %v4928_v31  ;;  %768 = vperm.xlu1 %4883, %v657_v25   ;;  %v661_v31 = vld [vmem:[%s5754_s25 + $0xb8] sm:$0xff] }
  0x4a   : > { %1432 = vmatprep.subr.bf16.mxu0 %v4929_v32  ;;  %v664_v32 = vld [vmem:[%s5754_s25 + $0xd0] sm:$0xff] }
  0x4b   : > { %773 = vperm.xlu0 %4882, %v658_v22  }
  0x4d   : > { %1433 = vmatpush1.bf16.msra.mxu0 %v4931_v33  ;;  %778 = vperm.xlu1 %4883, %v659_v27   ;;  %v663_v33 = vld [vmem:[%s5754_s25 + $0xc8] sm:$0xff] }
  0x4e   : > { %1595 = vmatprep.subr.bf16.mxu0 %v4937_v34  ;;  %v666_v34 = vld [vmem:[%s5754_s25 + $0xe0] sm:$0xff] }
  0x4f   : > { %783 = vperm.xlu0 %4882, %v660_v26  }
  0x50   : > { %1435 = vmatmul.mubr.bf16.vlgmr.msra.gmra.mrb[0].mxu0 %v4932_v36  ;;  %v4979_v36 = vld [vmem:[%s5638_s22 + $0xf0] ss:$12 sps:$4 sm:$0xff]  }
  0x51   : > { %1596 = vmatpush1.bf16.msra.mxu0 %v4935_v37  ;;  %1444 = vmatprep.mubr.bf16.mxu0 %v4938_v38  ;;  %v4983_v37 = vld [vmem:[%s5638_s22 + $0x10c] ss:$12 sps:$4 sm:$0xff]  }
  0x52   : > { %1597 = vmatprep.subr.bf16.mxu0 %v4946_v39  ;;  %788 = vperm.xlu1 %4883, %v661_v31   ;;  %v665_v38 = vld [vmem:[%s5754_s25 + $0xd8] sm:$0xff]  ;;  %v668_v39 = vld [vmem:[%s5754_s25 + $0xf0] sm:$0xff] }
  0x53   : > { %793 = vperm.xlu0 %4882, %v662_v28  }
  0x55   : > { %1598 = vmatpush1.bf16.msra.mxu0 %v4944_v40  ;;  %v667_v40 = vld [vmem:[%s5754_s25 + $0xe8] sm:$0xff] }
  0x56   : > { %1599 = vmatprep.subr.bf16.mxu0 %v4955_v41  ;;  %798 = vperm.xlu1 %4883, %v663_v33   ;;  %v4985_v41 = vld [vmem:[%s5638_s22 + $0x108] ss:$12 sps:$4 sm:$0xff]  }
  0x57   : > { %803 = vperm.xlu0 %4882, %v664_v32  }
  0x58   : > { %1445 = vmatmul.mubr.bf16.gmra.mrb[4].mxu0 %v4940_v42  ;;  %v4986_v42 = vld [vmem:[%s5638_s22 + $0x124] ss:$12 sps:$4 sm:$0xff]  }
  0x59   : > { %1454 = vmatprep.mubr.bf16.mxu0 %v4941_v43  ;;  %1600 = vmatpush1.bf16.msra.mxu0 %v4953_v44  ;;  %v669_v43 = vld [vmem:[%s5754_s25 + $0xf8] sm:$0xff]  ;;  %v4988_v44 = vld [vmem:[%s5638_s22 + $0x120] ss:$12 sps:$4 sm:$0xff]  }
  0x5a   : > { %1601 = vmatprep.subr.bf16.mxu0 %v4964_v45  ;;  %808 = vperm.xlu1 %4883, %v665_v38   ;;  %v4992_v45 = vld [vmem:[%s5638_s22 + $0x13c] ss:$12 sps:$4 sm:$0xff]  }
  0x5b   : > { %813 = vperm.xlu0 %4882, %v666_v34  }
  0x5d   : > { %1602 = vmatpush1.bf16.msra.mxu0 %v4962_v46  ;;  %v4994_v46 = vld [vmem:[%s5638_s22 + $0x138] ss:$12 sps:$4 sm:$0xff]  }
  0x5e   : > { %1603 = vmatprep.subr.bf16.mxu0 %v4973_v47  ;;  %818 = vperm.xlu1 %4883, %v667_v40   ;;  %v4995_v47 = vld [vmem:[%s5638_s22 + $0x154] ss:$12 sps:$4 sm:$0xff]  }
  0x5f   : > { %823 = vperm.xlu0 %4882, %v668_v39  }
  0x60   : > { %1455 = vmatmul.mubr.bf16.gmra.mrb[8].mxu0 %v4943_v48  ;;  %v4997_v48 = vld [vmem:[%s5638_s22 + $0x150] ss:$12 sps:$4 sm:$0xff]  }
  0x61   : > { %1464 = vmatprep.mubr.bf16.mxu0 %v4947_v49  ;;  %1604 = vmatpush1.bf16.msra.mxu0 %v4971_v50  ;;  %v5001_v49 = vld [vmem:[%s5638_s22 + $0x16c] ss:$12 sps:$4 sm:$0xff]   ;;  %v5003_v50 = vld [vmem:[%s5638_s22 + $0x168] ss:$12 sps:$4 sm:$0xff]  }
  0x62   : > { %1605 = vmatprep.subr.bf16.mxu0 %v4982_v51  ;;  %828 = vperm.xlu1 %4883, %v669_v43   ;;  %v5020_v51 = vld [vmem:[%s7170_s5 + $0x40] sm:$0xff]  }
  0x63   : > { %4500 = vmatprep.subr.bf16.mxu1 %v5020_v51 }
  0x65   : > { %1606 = vmatpush1.bf16.msra.mxu0 %v4980_v52  ;;  %v5021_v52 = vld [vmem:[%s7170_s5] sm:$0xff]  }
  0x66   : > { %1607 = vmatprep.subr.bf16.mxu0 %v4991_v53  ;;  %4501 = vmatpush3.bf16.msra.mxu1 %v5021_v52  ;;  %v5004_v53 = vld [vmem:[%s5638_s22 + $0x8] ss:$12 sps:$4 sm:$0xff]  }
  0x68   : > { %1465 = vmatmul.mubr.bf16.gmra.mrb[12].mxu0 %v4949_v55  ;;  %v5006_v55 = vld [vmem:[%s5638_s22 + $0x38] ss:$12 sps:$4 sm:$0xff]  }
  0x69   : > { %1474 = vmatprep.mubr.bf16.mxu0 %v4950_v56  ;;  %1608 = vmatpush1.bf16.msra.mxu0 %v4989_v57  ;;  %v5007_v56 = vld [vmem:[%s5638_s22 + $0x50] ss:$12 sps:$4 sm:$0xff]   ;;  %v5008_v57 = vld [vmem:[%s5638_s22 + $0x68] ss:$12 sps:$4 sm:$0xff]  }
  0x6a   : > { %1609 = vmatprep.subr.bf16.mxu0 %v5000_v58  ;;  %v5009_v58 = vld [vmem:[%s5638_s22 + $0x80] ss:$12 sps:$4 sm:$0xff]  }
  0x6d   : > { %1610 = vmatpush1.bf16.msra.mxu0 %v4998_v61  ;;  %v5012_v61 = vld [vmem:[%s5638_s22 + $0xc8] ss:$12 sps:$4 sm:$0xff]  }
  0x70   : > { %1475 = vmatmul.mubr.bf16.gmra.mrb[16].mxu0 %v4952_v63  ;;  %v5014_v63 = vld [vmem:[%s5638_s22 + $0xf8] ss:$12 sps:$4 sm:$0xff]  }
  0x71   : > { %1484 = vmatprep.mubr.bf16.mxu0 %v4956_v0  ;;  %v5022_v0 = vld [vmem:[%s7170_s5 + $0x48] sm:$0xff]  }
  0x72   : > { %4502 = vmatprep.subr.bf16.mxu1 %v5022_v0 }
  0x73   : > { %4503 = vmatpush3.bf16.msra.mxu1 %v5023_v2 }
  0x74   : > { %4504 = vmatprep.subr.bf16.mxu1 %v5024_v3 }
  0x77   : > { %4505 = vmatpush3.bf16.msra.mxu1 %v5025_v4 }
  0x78   : > { %1485 = vmatmul.mubr.bf16.gmra.mrb[20].mxu0 %v4958_v5  ;;  %v5026_v5 = vld [vmem:[%s7170_s5 + $0x58] sm:$0xff]  }
  0x79   : > { %1494 = vmatprep.mubr.bf16.mxu0 %v4959_v6  ;;  %v5016_v6 = vld [vmem:[%s5638_s22 + $0x128] ss:$12 sps:$4 sm:$0xff]   ;;  %4506 = vmatprep.subr.bf16.mxu1 %v5026_v5 }
  0x7b   : > { %4507 = vmatpush3.bf16.msra.mxu1 %v5027_v7 }
  0x7c   : > { %4508 = vmatprep.subr.bf16.mxu1 %v5028_v8 }
  0x7f   : > { %4509 = vmatpush3.bf16.msra.mxu1 %v5029_v9 }
  0x80   : > { %1495 = vmatmul.mubr.bf16.gmra.mrb[24].mxu0 %v4961_v11  ;;  %v5017_v11 = vld [vmem:[%s5638_s22 + $0x140] ss:$12 sps:$4 sm:$0xff]   ;;  %4510 = vmatprep.subr.bf16.mxu1 %v5030_v10 }
  0x81   : > { %1504 = vmatprep.mubr.bf16.mxu0 %v4965_v12  ;;  %v5031_v12 = vld [vmem:[%s7170_s5 + $0x28] sm:$0xff]  }
  0x83   : > { %4511 = vmatpush3.bf16.msra.mxu1 %v5031_v12 }
  0x84   : > { %4512 = vmatprep.subr.bf16.mxu1 %v5032_v13 }
  0x87   : > { %4513 = vmatpush3.bf16.msra.mxu1 %v5033_v14 }
  0x88   : > { %1505 = vmatmul.mubr.bf16.gmra.mrb[28].mxu0 %v4967_v17  ;;  %v5035_v17 = vld [vmem:[%s7170_s5 + $0x38] sm:$0xff]   ;;  %4514 = vmatprep.subr.bf16.mxu1 %v5034_v15 }
  0x89   : > { %1514 = vmatprep.mubr.bf16.mxu0 %v4968_v18  ;;  %v5019_v18 = vld [vmem:[%s5638_s22 + $0x170] ss:$12 sps:$4 sm:$0xff]  }
  0x8b   : > { %4515 = vmatpush3.bf16.msra.mxu1 %v5035_v17 }
  0x90   : > { %1515 = vmatmul.mubr.bf16.gmra.mrb[32].mxu0 %v4970_v23 }
  0x91   : > { %1524 = vmatprep.mubr.bf16.mxu0 %v4974_v24 }
  0x98   : > { %1525 = vmatmul.mubr.bf16.gmra.mrb[36].mxu0 %v4976_v29 }
  0x99   : > { %1534 = vmatprep.mubr.bf16.mxu0 %v4977_v30 }
  0xa0   : > { %1535 = vmatmul.mubr.bf16.gmra.mrb[40].mxu0 %v4979_v36 }
  0xa1   : > { %1544 = vmatprep.mubr.bf16.mxu0 %v4983_v37  ;;  %v832_v37 = vlaneseq }
  0xa2   : > { %v674_v19 = vpop.permute.xlu0 %673 }
  0xa3   : > { %v833_v40 = vshrl.u32 %v832_v37, 7 }
  0xa4   : > { %v5902_v21 = vpop.permute.xlu1 %683 }
  0xa6   : > { %v679_v20 = vpop.permute.xlu0 %678 }
  0xa8   : > { %1545 = vmatmul.mubr.bf16.gmra.mrb[44].mxu0 %v4985_v41  ;;  %v5904_v23 = vpop.permute.xlu1 %688 }
  0xa9   : > { %1554 = vmatprep.mubr.bf16.mxu0 %v4986_v42  ;;  %v834_v42 = vsub.s32 0, %v833_v40 }
  0xaa   : > { %v694_v22 = vpop.permute.xlu0 %693 }
  0xac   : > { %v5906_v25 = vpop.permute.xlu1 %698 }
  0xae   : > { %v704_v24 = vpop.permute.xlu0 %703 }
  0xb0   : > { %1555 = vmatmul.mubr.bf16.gmra.mrb[48].mxu0 %v4988_v44  ;;  %v5908_v27 = vpop.permute.xlu1 %708  ;;  %v670_v44 = vld [vmem:[%s7168_s3] sm:$0x3] }
  0xb1   : > { %1564 = vmatprep.mubr.bf16.mxu0 %v4992_v45  ;;  %v838_v45 = vsub.s32 1, %v833_v40 }
  0xb2   : > { %v714_v26 = vpop.permute.xlu0 %713 }
  0xb4   : > { %v5910_v29 = vpop.permute.xlu1 %718 }
  0xb6   : > { %v724_v28 = vpop.permute.xlu0 %723 }
  0xb8   : > { %1565 = vmatmul.mubr.bf16.gmra.mrb[52].mxu0 %v4994_v46  ;;  %v5933_v46 = vrot.slane %v670_v44, %v834_v42 }
  0xb9   : > { %1574 = vmatprep.mubr.bf16.mxu0 %v4995_v47 }
  0xba   : > { %v734_v30 = vpop.permute.xlu0 %733  ;;  %v842_v51 = vmul.f32 %v5933_v46, %v674_v19  ;;  %v5957_v0 = vmul.f32 %v5933_v46, %v694_v22  ;;  %v5966_v5 = vmul.f32 %v5933_v46, %v704_v24  ;;  %v5975_v9 = vmul.f32 %v5933_v46, %v714_v26 }
  0xbb   : > { %v846_v13 = vmul.f32 %v5933_v46, %v5902_v21  ;;  %v5987_v14 = vmul.f32 %v5933_v46, %v724_v28 }
  0xbe   : > { %v744_v31 = vpop.permute.xlu0 %743 }
  0xc0   : > { %1575 = vmatmul.mubr.bf16.gmra.mrb[56].mxu0 %v4997_v48 }
  0xc1   : > { %1584 = vmatprep.mubr.bf16.mxu0 %v5001_v49  ;;  %v1788_v49 = vld [vmem:[%s7169_s4] sm:$0x3] }
  0xc2   : > { %v5916_v33 = vpop.permute.xlu0 %753  ;;  %v5945_v52 = vrot.slane %v1788_v49, %v834_v42 }
  0xc6   : > { %v5920_v36 = vpop.permute.xlu0 %763 }
  0xc8   : > { %1585 = vmatmul.mubr.bf16.gmra.mrb[60].mxu0 %v5003_v50  ;;  %v5942_v50 = vrot.slane %v670_v44, %v838_v45 }
  0xc9   : > { %1627 = vmatprep.mubr.bf16.mxu0 %v5504_v35 }
  0xca   : > { %v5924_v39 = vpop.permute.xlu0 %773  ;;  %v5978_v10 = vmul.f32 %v5942_v50, %v714_v26  ;;  %v6012_v42 = vmul.f32 %v5942_v50, %v744_v31 }
  0xce   : > { %v5928_v43 = vpop.permute.xlu0 %783 }
  0xd0   : > { %1628 = vmatmul.mubr.bf16.vlgmr.msra.gmra.mrb[0].mxu0 %v5004_v53 }
  0xd1   : > { %1637 = vmatprep.mubr.bf16.mxu0 %v5504_v35 }
  0xd2   : > { %v5937_v48 = vpop.permute.xlu0 %793 }
  0xd8   : > { %1638 = vmatmul.mubr.bf16.gmra.mrb[4].mxu0 %v5005_v54 }
  0xd9   : > { %1647 = vmatprep.mubr.bf16.mxu0 %v5504_v35 }
  0xe0   : > { %1648 = vmatmul.mubr.bf16.gmra.mrb[8].mxu0 %v5006_v55  ;;  %v843_v55 = vmul.f32 %v5942_v50, %v674_v19  ;;  %v5999_v19 = vmul.f32 %v5933_v46, %v734_v30 }
  0xe1   : > { %1657 = vmatprep.mubr.bf16.mxu0 %v5504_v35 }
  0xe8   : > { %1658 = vmatmul.mubr.bf16.gmra.mrb[12].mxu0 %v5007_v56  ;;  %v5950_v56 = vrot.slane %v1788_v49, %v838_v45  ;;  %v6018_v49 = vmul.f32 %v5933_v46, %v5916_v33 }
  0xe9   : > { %1667 = vmatprep.mubr.bf16.mxu0 %v5504_v35 }
  0xf0   : > { %1668 = vmatmul.mubr.bf16.gmra.mrb[16].mxu0 %v5008_v57 }
  0xf1   : > { %1677 = vmatprep.mubr.bf16.mxu0 %v5504_v35 }
  0xf8   : > { %1678 = vmatmul.mubr.bf16.gmra.mrb[20].mxu0 %v5009_v58 }
  0xf9   : > { %1687 = vmatprep.mubr.bf16.mxu0 %v5504_v35 }
 0x100   : > { %1688 = vmatmul.mubr.bf16.gmra.mrb[24].mxu0 %v5010_v59  ;;  %v844_v59 = vmul.f32 %v5933_v46, %v679_v20 }
 0x101   : > { %1697 = vmatprep.mubr.bf16.mxu0 %v5504_v35 }
 0x108   : > { %1698 = vmatmul.mubr.bf16.gmra.mrb[28].mxu0 %v5011_v60  ;;  %v5953_v60 = vpop.permute.xlu0 %803 }
 0x109   : > { %1707 = vmatprep.mubr.bf16.mxu0 %v5504_v35 }
 0x10c   : > { %v814_v26 = vpop.permute.xlu0 %813 }
 0x110   : > { %1708 = vmatmul.mubr.bf16.gmra.mrb[32].mxu0 %v5012_v61 }
 0x111   : > { %1717 = vmatprep.mubr.bf16.mxu0 %v5504_v35 }
 0x118   : > { %1718 = vmatmul.mubr.bf16.gmra.mrb[36].mxu0 %v5013_v62 }
 0x119   : > { %1727 = vmatprep.mubr.bf16.mxu0 %v5504_v35 }
 0x120   : > { %1728 = vmatmul.mubr.bf16.gmra.mrb[40].mxu0 %v5014_v63  ;;  %v845_v63 = vmul.f32 %v5942_v50, %v679_v20 }
 0x121   : > { %1737 = vmatprep.mubr.bf16.mxu0 %v5504_v35 }
 0x128   : > { %1738 = vmatmul.mubr.bf16.gmra.mrb[44].mxu0 %v5015_v1  ;;  %v5960_v1 = vmul.f32 %v5942_v50, %v694_v22  ;;  %v6003_v22 = vmul.f32 %v5942_v50, %v734_v30  ;;  %v848_v30 = vmul.f32 %v5933_v46, %v5904_v23 }
 0x129   : > { %1747 = vmatprep.mubr.bf16.mxu0 %v5504_v35 }
 0x130   : > { %1748 = vmatmul.mubr.bf16.gmra.mrb[48].mxu0 %v5016_v6  ;;  %v5969_v6 = vmul.f32 %v5942_v50, %v704_v24  ;;  %v6006_v24 = vmul.f32 %v5933_v46, %v744_v31 }
 0x131   : > { %1757 = vmatprep.mubr.bf16.mxu0 %v5504_v35 }
 0x138   : > { %1758 = vmatmul.mubr.bf16.gmra.mrb[52].mxu0 %v5017_v11 }
 0x139   : > { %1767 = vmatprep.mubr.bf16.mxu0 %v5504_v35 }
 0x140   : > { %1768 = vmatmul.mubr.bf16.gmra.mrb[56].mxu0 %v5018_v16 }
 0x141   : > { %1777 = vmatprep.mubr.bf16.mxu0 %v5504_v35  ;;  %v5912_v35 = vpop.permute.xlu1 %728 }
 0x145   : > { %v5914_v32 = vpop.permute.xlu1 %738 }
 0x148   : > { %1778 = vmatmul.mubr.bf16.gmra.mrb[60].mxu0 %v5019_v18  ;;  %v5996_v18 = vmul.f32 %v5942_v50, %v724_v28  ;;  %v847_v28 = vmul.f32 %v5942_v50, %v5902_v21  ;;  %v6024_v21 = vmul.f32 %v5942_v50, %v5916_v33 }
 0x149   : > { %v5918_v34 = vpop.permute.xlu1 %748 }
 0x14d   : > { %v5922_v38 = vpop.permute.xlu1 %758 }
 0x151   : > { %v5926_v41 = vpop.permute.xlu1 %768 }
 0x155   : > { %v5935_v47 = vpop.permute.xlu1 %778 }
 0x159   : > { %v5947_v53 = vpop.permute.xlu1 %788 }
 0x15d   : > { %v5989_v15 = vpop.permute.xlu1 %798 }
 0x15e   : > { %7185 = vst [vmem:[#allocation3_spill] sm:$0xff] %v5989_v15 }
 0x1a3   : > { %v1629_v54 = vpop.f32.mrb[0].mxu0 }
 0x1a4   : > { %v4744_v57 = vadd.f32 %v1629_v54, %v842_v51  ;;  %v1631_v58 = vpop.f32.mrb[1].mxu0 }
 0x1a5   : > { %v4745_v61 = vadd.f32 %v1631_v58, %v843_v55  ;;  %v1633_v62 = vpop.f32.mrb[2].mxu0  ;;  %v849_v55 = vmul.f32 %v5942_v50, %v5904_v23 }
 0x1a6   : > { %v5963_v2 = vadd.f32 %v4744_v57, %v5945_v52  ;;  %v4746_v3 = vadd.f32 %v1633_v62, %v844_v59  ;;  %v1635_v4 = vpop.f32.mrb[3].mxu0  ;;  %v6031_v59 = vmul.f32 %v5933_v46, %v5920_v36  ;;  %v6037_v62 = vpop.permute.xlu1 %808 }
 0x1a7   : > { %v5972_v7 = vadd.f32 %v4745_v61, %v5950_v56  ;;  %v4747_v8 = vadd.f32 %v1635_v4, %v845_v63  ;;  %v6035_v61 = vmul.f32 %v5942_v50, %v5920_v36  ;;  %7186 = vst [vmem:[#allocation4_spill] sm:$0xff] %v6037_v62  ;;  %v6044_v63 = vmul.f32 %v5933_v46, %v5924_v39 }
 0x1a8   : > { %v1864_v11 = vmul.f32 0.5, %v5963_v2  ;;  %v5982_v12 = vadd.f32 %v4746_v3, %v5945_v52  ;;  %v6048_v3 = vmul.f32 %v5942_v50, %v5924_v39  ;;  %v6056_v36 = vmul.f32 %v5933_v46, %v5928_v43 }
 0x1a9   : > { %v1865_v16 = vmul.f32 0.5, %v5972_v7  ;;  %v5993_v17 = vadd.f32 %v4747_v8, %v5950_v56 }
 0x1aa   : > { %5048 = vtanh.f32 %v1864_v11  ;;  %v1866_v20 = vmul.f32 0.5, %v5982_v12  ;;  %v6060_v11 = vmul.f32 %v5942_v50, %v5928_v43  ;;  %v6079_v43 = vmul.f32 %v5933_v46, %v5953_v60 }
 0x1ab   : > { %5050 = vtanh.f32 %v1865_v16  ;;  %v1867_v37 = vmul.f32 0.5, %v5993_v17  ;;  %v1639_v40 = vpop.f32.mrb[4].mxu0 }
 0x1ac   : > { %5052 = vtanh.f32 %v1866_v20  ;;  %v4748_v44 = vadd.f32 %v1639_v40, %v846_v13  ;;  %v1641_v45 = vpop.f32.mrb[5].mxu0  ;;  %v6062_v13 = vpop.permute.xlu0 %823  ;;  %v6070_v20 = vmul.f32 %v5933_v46, %v5937_v48  ;;  %7190 = vst [vmem:[#allocation8_spill] sm:$0xff] %v6079_v43 }
 0x1ad   : > { %5054 = vtanh.f32 %v1867_v37  ;;  %v4749_v51 = vadd.f32 %v1641_v45, %v847_v28  ;;  %v1643_v54 = vpop.f32.mrb[6].mxu0  ;;  %7187 = vst [vmem:[#allocation5_spill] sm:$0xff] %v6062_v13  ;;  %v6074_v37 = vmul.f32 %v5942_v50, %v5937_v48  ;;  %v6083_v28 = vmul.f32 %v5942_v50, %v5953_v60 }
 0x1ae   : > { %v6027_v31 = vadd.f32 %v4748_v44, %v5945_v52  ;;  %v4750_v57 = vadd.f32 %v1643_v54, %v848_v30  ;;  %v1645_v58 = vpop.f32.mrb[7].mxu0  ;;  %7188 = vst [vmem:[#allocation6_spill] sm:$0xff] %v6070_v20  ;;  %v6087_v30 = vmul.f32 %v5933_v46, %v814_v26  ;;  %v6090_v48 = vmul.f32 %v5942_v50, %v814_v26 }
 0x1af   : > { %v6040_v23 = vadd.f32 %v4749_v51, %v5950_v56  ;;  %v4751_v33 = vadd.f32 %v1645_v58, %v849_v55  ;;  %7189 = vst [vmem:[#allocation7_spill] sm:$0xff] %v6074_v37  ;;  %7191 = vst [vmem:[#allocation9_spill] sm:$0xff] %v6083_v28  ;;  %v6097_v60 = vmul.f32 %v5933_v46, %v6062_v13 }
 0x1b0   : > { %v1868_v4 = vmul.f32 0.5, %v6027_v31  ;;  %v6052_v8 = vadd.f32 %v4750_v57, %v5945_v52  ;;  %7192 = vst [vmem:[#allocation10_spill] sm:$0xff] %v6087_v30  ;;  %7193 = vst [vmem:[#allocation11_spill] sm:$0xff] %v6090_v48  ;;  %v852_v57 = vmul.f32 %v5933_v46, %v5906_v25 }
 0x1b1   : > { %v1869_v16 = vmul.f32 0.5, %v6040_v23  ;;  %v6066_v39 = vadd.f32 %v4751_v33, %v5950_v56  ;;  %7194 = vst [vmem:[#allocation12_spill] sm:$0xff] %v6097_v60 }
 0x1b2   : > { %5056 = vtanh.f32 %v1868_v4  ;;  %v1870_v40 = vmul.f32 0.5, %v6052_v8  ;;  %v6099_v4 = vpop.permute.xlu1 %818 }
 0x1b3   : > { %5058 = vtanh.f32 %v1869_v16  ;;  %v1871_v44 = vmul.f32 0.5, %v6066_v39  ;;  %v1649_v45 = vpop.f32.mrb[8].mxu0  ;;  %7195 = vst [vmem:[#allocation13_spill] sm:$0xff] %v6099_v4 }
 0x1b4   : > { %v5049_v51 = vpop.eup %5048  ;;  %5060 = vtanh.f32 %v1870_v40  ;;  %v4752_v54 = vadd.f32 %v1649_v45, %v5957_v0  ;;  %v1651_v55 = vpop.f32.mrb[9].mxu0  ;;  %v853_v40 = vmul.f32 %v5942_v50, %v5906_v25  ;;  %v6106_v45 = vmul.f32 %v5933_v46, %v6099_v4 }
 0x1b5   : > { %v5051_v58 = vpop.eup %5050  ;;  %v1992_v33 = vmul.f32 0.5, %v5049_v51  ;;  %5062 = vtanh.f32 %v1871_v44  ;;  %v4753_v26 = vadd.f32 %v1651_v55, %v5960_v1  ;;  %v1653_v16 = vpop.f32.mrb[10].mxu0 }
 0x1b6   : > { %v5053_v0 = vpop.eup %5052  ;;  %7196 = vst [vmem:[#allocation14_spill] sm:$0xff] %v6106_v45  ;;  %v6109_v48 = vadd.f32 %v4752_v54, %v5945_v52  ;;  %v4754_v60 = vadd.f32 %v1653_v16, %v852_v57  ;;  %v1655_v13 = vpop.f32.mrb[11].mxu0  ;;  %v1993_v51 = vmul.f32 0.5, %v5051_v58  ;;  %v856_v58 = vmul.f32 %v5933_v46, %v5908_v27 }
 0x1b7   : > { %v5055_v30 = vpop.eup %5054  ;;  %v2056_v28 = vadd.f32 0.5, %v1992_v33  ;;  %v1994_v44 = vmul.f32 0.5, %v5053_v0  ;;  %v6112_v1 = vadd.f32 %v4753_v26, %v5950_v56  ;;  %v4755_v55 = vadd.f32 %v1655_v13, %v853_v40 }
 0x1b8   : > { %v1872_v25 = vmul.f32 0.5, %v6109_v48  ;;  %v6116_v43 = vadd.f32 %v4754_v60, %v5945_v52  ;;  %v1995_v4 = vmul.f32 0.5, %v5055_v30  ;;  %v2057_v45 = vadd.f32 0.5, %v1993_v51 }
 0x1b9   : > { %v2058_v62 = vadd.f32 0.5, %v1994_v44  ;;  %v1873_v54 = vmul.f32 0.5, %v6112_v1  ;;  %v6120_v57 = vadd.f32 %v4755_v55, %v5950_v56  ;;  %v857_v13 = vmul.f32 %v5942_v50, %v5908_v27 }
 0x1ba   : > { %5064 = vtanh.f32 %v1872_v25  ;;  %v1874_v33 = vmul.f32 0.5, %v6116_v43  ;;  %v2059_v26 = vadd.f32 0.5, %v1995_v4  ;;  %v2120_v60 = vmul.f32 %v2056_v28, %v5963_v2 }
 0x1bb   : > { %v2122_v30 = vmul.f32 %v2058_v62, %v5982_v12  ;;  %5066 = vtanh.f32 %v1873_v54  ;;  %v1875_v16 = vmul.f32 0.5, %v6120_v57  ;;  %v1659_v40 = vpop.f32.mrb[12].mxu0  ;;  %v2121_v55 = vmul.f32 %v2057_v45, %v5972_v7 }
 0x1bc   : > { %v5057_v0 = vpop.eup %5056  ;;  %5068 = vtanh.f32 %v1874_v33  ;;  %v4756_v51 = vadd.f32 %v1659_v40, %v5966_v5  ;;  %v1661_v44 = vpop.f32.mrb[13].mxu0  ;;  %v2123_v25 = vmul.f32 %v2059_v26, %v5993_v17 }
 0x1bd   : > { %v5059_v37 = vpop.eup %5058  ;;  %v1996_v27 = vmul.f32 0.5, %v5057_v0  ;;  %5070 = vtanh.f32 %v1875_v16  ;;  %v4757_v2 = vadd.f32 %v1661_v44, %v5969_v6  ;;  %v1663_v28 = vpop.f32.mrb[14].mxu0  ;;  %v2184_v12 = vpack.c.bf16 %v2122_v30, %v2120_v60 }
 0x1be   : > { %v5061_v62 = vpop.eup %5060  ;;  %v1997_v4 = vmul.f32 0.5, %v5059_v37  ;;  %v6135_v54 = vadd.f32 %v4756_v51, %v5945_v52  ;;  %v4758_v33 = vadd.f32 %v1663_v28, %v856_v58  ;;  %v1665_v20 = vpop.f32.mrb[15].mxu0  ;;  %v2185_v5 = vpack.c.bf16 %v2123_v25, %v2121_v55 }
 0x1bf   : > { %v5063_v40 = vpop.eup %5062  ;;  %v2060_v15 = vadd.f32 0.5, %v1996_v27  ;;  %v1998_v7 = vmul.f32 0.5, %v5061_v62  ;;  %v6138_v17 = vadd.f32 %v4757_v2, %v5950_v56  ;;  %v4759_v45 = vadd.f32 %v1665_v20, %v857_v13 }
 0x1c0   : > { %v2061_v26 = vadd.f32 0.5, %v1997_v4  ;;  %v1999_v16 = vmul.f32 0.5, %v5063_v40  ;;  %v1876_v6 = vmul.f32 0.5, %v6135_v54  ;;  %v6142_v60 = vadd.f32 %v4758_v33, %v5945_v52  ;;  %2383 = vmatprep.mubr.bf16.mxu1 %v2185_v5 }
 0x1c1   : > { %v2062_v37 = vadd.f32 0.5, %v1998_v7  ;;  %v1877_v58 = vmul.f32 0.5, %v6138_v17  ;;  %v6146_v30 = vadd.f32 %v4759_v45, %v5950_v56  ;;  %2384 = vmatmul.mubr.bf16.vlgmr.msra.gmra.mrb[0].mxu1 %v2184_v12  ;;  %v860_v0 = vmul.f32 %v5933_v46, %v5910_v29 }
 0x1c2   : > { %v2063_v51 = vadd.f32 0.5, %v1999_v16  ;;  %5072 = vtanh.f32 %v1876_v6  ;;  %v1878_v20 = vmul.f32 0.5, %v6142_v60  ;;  %v861_v13 = vmul.f32 %v5942_v50, %v5910_v29 }
 0x1c3   : > { %v2124_v44 = vmul.f32 %v2060_v15, %v6027_v31  ;;  %v2126_v55 = vmul.f32 %v2062_v37, %v6052_v8  ;;  %5074 = vtanh.f32 %v1877_v58  ;;  %v1879_v25 = vmul.f32 0.5, %v6146_v30  ;;  %v1669_v27 = vpop.f32.mrb[16].mxu0 }
 0x1c4   : > { %v5065_v2 = vpop.eup %5064  ;;  %v2125_v28 = vmul.f32 %v2061_v26, %v6040_v23  ;;  %v2127_v12 = vmul.f32 %v2063_v51, %v6066_v39  ;;  %5076 = vtanh.f32 %v1878_v20  ;;  %v4760_v62 = vadd.f32 %v1669_v27, %v5975_v9  ;;  %v1671_v4 = vpop.f32.mrb[17].mxu0 }
 0x1c5   : > { %v5067_v33 = vpop.eup %5066  ;;  %v2000_v5 = vmul.f32 0.5, %v5065_v2  ;;  %5078 = vtanh.f32 %v1879_v25  ;;  %v4761_v29 = vadd.f32 %v1671_v4, %v5978_v10  ;;  %v1673_v15 = vpop.f32.mrb[18].mxu0  ;;  %v2186_v31 = vpack.c.bf16 %v2126_v55, %v2124_v44 }
 0x1c6   : > { %v5069_v8 = vpop.eup %5068  ;;  %v2001_v40 = vmul.f32 0.5, %v5067_v33  ;;  %v6161_v7 = vadd.f32 %v4760_v62, %v5945_v52  ;;  %v4762_v45 = vadd.f32 %v1673_v15, %v860_v0  ;;  %v1675_v23 = vpop.f32.mrb[19].mxu0  ;;  %v2187_v26 = vpack.c.bf16 %v2127_v12, %v2125_v28 }
 0x1c7   : > { %v5071_v39 = vpop.eup %5070  ;;  %v2064_v16 = vadd.f32 0.5, %v2000_v5  ;;  %v2002_v6 = vmul.f32 0.5, %v5069_v8  ;;  %v6164_v9 = vadd.f32 %v4761_v29, %v5950_v56  ;;  %v4763_v37 = vadd.f32 %v1675_v23, %v861_v13 }
 0x1c8   : > { %v2065_v58 = vadd.f32 0.5, %v2001_v40  ;;  %v2003_v51 = vmul.f32 0.5, %v5071_v39  ;;  %v1880_v10 = vmul.f32 0.5, %v6161_v7  ;;  %v6168_v20 = vadd.f32 %v4762_v45, %v5945_v52  ;;  %2391 = vmatprep.mubr.bf16.mxu1 %v2187_v26 }
 0x1c9   : > { %v2066_v44 = vadd.f32 0.5, %v2002_v6  ;;  %v1881_v0 = vmul.f32 0.5, %v6164_v9  ;;  %v6172_v55 = vadd.f32 %v4763_v37, %v5950_v56  ;;  %2392 = vmatmul.mubr.bf16.gmra.mrb[4].mxu1 %v2186_v31  ;;  %v864_v25 = vmul.f32 %v5933_v46, %v5912_v35 }
 0x1ca   : > { %v2067_v27 = vadd.f32 0.5, %v2003_v51  ;;  %5080 = vtanh.f32 %v1880_v10  ;;  %v1882_v13 = vmul.f32 0.5, %v6168_v20  ;;  %v865_v2 = vmul.f32 %v5942_v50, %v5912_v35 }
 0x1cb   : > { %v2128_v28 = vmul.f32 %v2064_v16, %v6109_v48  ;;  %v2130_v12 = vmul.f32 %v2066_v44, %v6116_v43  ;;  %5082 = vtanh.f32 %v1881_v0  ;;  %v1883_v62 = vmul.f32 0.5, %v6172_v55  ;;  %v1679_v4 = vpop.f32.mrb[20].mxu0 }
 0x1cc   : > { %v5073_v33 = vpop.eup %5072  ;;  %v2129_v5 = vmul.f32 %v2065_v58, %v6112_v1  ;;  %v2131_v29 = vmul.f32 %v2067_v27, %v6120_v57  ;;  %5084 = vtanh.f32 %v1882_v13  ;;  %v4764_v15 = vadd.f32 %v1679_v4, %v5987_v14  ;;  %v1681_v31 = vpop.f32.mrb[21].mxu0 }
 0x1cd   : > { %v5075_v8 = vpop.eup %5074  ;;  %v2004_v40 = vmul.f32 0.5, %v5073_v33  ;;  %5086 = vtanh.f32 %v1883_v62  ;;  %v4765_v35 = vadd.f32 %v1681_v31, %v5996_v18  ;;  %v1683_v48 = vpop.f32.mrb[22].mxu0  ;;  %v2188_v43 = vpack.c.bf16 %v2130_v12, %v2128_v28 }
 0x1ce   : > { %v5077_v45 = vpop.eup %5076  ;;  %v2005_v23 = vmul.f32 0.5, %v5075_v8  ;;  %v6187_v26 = vadd.f32 %v4764_v15, %v5945_v52  ;;  %v4766_v39 = vadd.f32 %v1683_v48, %v864_v25  ;;  %v1685_v1 = vpop.f32.mrb[23].mxu0  ;;  %v2189_v16 = vpack.c.bf16 %v2131_v29, %v2129_v5 }
 0x1cf   : > { %v5079_v57 = vpop.eup %5078  ;;  %v2068_v6 = vadd.f32 0.5, %v2004_v40  ;;  %v2006_v37 = vmul.f32 0.5, %v5077_v45  ;;  %v6190_v14 = vadd.f32 %v4765_v35, %v5950_v56  ;;  %v4767_v58 = vadd.f32 %v1685_v1, %v865_v2 }
 0x1d0   : > { %v2069_v51 = vadd.f32 0.5, %v2005_v23  ;;  %v2007_v10 = vmul.f32 0.5, %v5079_v57  ;;  %v1884_v18 = vmul.f32 0.5, %v6187_v26  ;;  %v6194_v44 = vadd.f32 %v4766_v39, %v5945_v52  ;;  %2399 = vmatprep.mubr.bf16.mxu1 %v2189_v16 }
 0x1d1   : > { %v2070_v0 = vadd.f32 0.5, %v2006_v37  ;;  %v1885_v25 = vmul.f32 0.5, %v6190_v14  ;;  %v6198_v27 = vadd.f32 %v4767_v58, %v5950_v56  ;;  %2400 = vmatmul.mubr.bf16.gmra.mrb[8].mxu1 %v2188_v43  ;;  %v868_v13 = vmul.f32 %v5933_v46, %v5914_v32 }
 0x1d2   : > { %v2071_v28 = vadd.f32 0.5, %v2007_v10  ;;  %5088 = vtanh.f32 %v1884_v18  ;;  %v1886_v2 = vmul.f32 0.5, %v6194_v44  ;;  %v869_v12 = vmul.f32 %v5942_v50, %v5914_v32 }
 0x1d3   : > { %v2132_v62 = vmul.f32 %v2068_v6, %v6135_v54  ;;  %v2134_v4 = vmul.f32 %v2070_v0, %v6142_v60  ;;  %5090 = vtanh.f32 %v1885_v25  ;;  %v1887_v33 = vmul.f32 0.5, %v6198_v27  ;;  %v1689_v5 = vpop.f32.mrb[24].mxu0 }
 0x1d4   : > { %v5081_v29 = vpop.eup %5080  ;;  %v2133_v15 = vmul.f32 %v2069_v51, %v6138_v17  ;;  %v2135_v31 = vmul.f32 %v2071_v28, %v6146_v30  ;;  %5092 = vtanh.f32 %v1886_v2  ;;  %v4768_v8 = vadd.f32 %v1689_v5, %v5999_v19  ;;  %v1691_v40 = vpop.f32.mrb[25].mxu0 }
 0x1d5   : > { %v5083_v35 = vpop.eup %5082  ;;  %v2008_v48 = vmul.f32 0.5, %v5081_v29  ;;  %5094 = vtanh.f32 %v1887_v33  ;;  %v4769_v32 = vadd.f32 %v1691_v40, %v6003_v22  ;;  %v1693_v54 = vpop.f32.mrb[26].mxu0  ;;  %v2190_v60 = vpack.c.bf16 %v2134_v4, %v2132_v62 }
 0x1d6   : > { %v5085_v43 = vpop.eup %5084  ;;  %v2009_v45 = vmul.f32 0.5, %v5083_v35  ;;  %v6213_v23 = vadd.f32 %v4768_v8, %v5945_v52  ;;  %v4770_v39 = vadd.f32 %v1693_v54, %v868_v13  ;;  %v1695_v17 = vpop.f32.mrb[27].mxu0  ;;  %v2191_v1 = vpack.c.bf16 %v2135_v31, %v2133_v15 }
 0x1d7   : > { %v5087_v30 = vpop.eup %5086  ;;  %v2072_v16 = vadd.f32 0.5, %v2008_v48  ;;  %v2010_v57 = vmul.f32 0.5, %v5085_v43  ;;  %v6216_v19 = vadd.f32 %v4769_v32, %v5950_v56  ;;  %v4771_v6 = vadd.f32 %v1695_v17, %v869_v12 }
 0x1d8   : > { %v2073_v37 = vadd.f32 0.5, %v2009_v45  ;;  %v2011_v58 = vmul.f32 0.5, %v5087_v30  ;;  %v1888_v22 = vmul.f32 0.5, %v6213_v23  ;;  %v6220_v51 = vadd.f32 %v4770_v39, %v5945_v52  ;;  %2407 = vmatprep.mubr.bf16.mxu1 %v2191_v1 }
 0x1d9   : > { %v2074_v10 = vadd.f32 0.5, %v2010_v57  ;;  %v1889_v18 = vmul.f32 0.5, %v6216_v19  ;;  %v6224_v0 = vadd.f32 %v4771_v6, %v5950_v56  ;;  %2408 = vmatmul.mubr.bf16.gmra.mrb[12].mxu1 %v2190_v60  ;;  %v872_v25 = vmul.f32 %v5933_v46, %v5918_v34 }
 0x1da   : > { %v2075_v13 = vadd.f32 0.5, %v2011_v58  ;;  %5096 = vtanh.f32 %v1888_v22  ;;  %v1890_v28 = vmul.f32 0.5, %v6220_v51  ;;  %v873_v2 = vmul.f32 %v5942_v50, %v5918_v34 }
 0x1db   : > { %v2136_v12 = vmul.f32 %v2072_v16, %v6161_v7  ;;  %v2138_v62 = vmul.f32 %v2074_v10, %v6168_v20  ;;  %5098 = vtanh.f32 %v1889_v18  ;;  %v1891_v4 = vmul.f32 0.5, %v6224_v0  ;;  %v1699_v33 = vpop.f32.mrb[28].mxu0 }
 0x1dc   : > { %v5089_v5 = vpop.eup %5088  ;;  %v2137_v29 = vmul.f32 %v2073_v37, %v6164_v9  ;;  %v2139_v15 = vmul.f32 %v2075_v13, %v6172_v55  ;;  %5100 = vtanh.f32 %v1890_v28  ;;  %v4772_v31 = vadd.f32 %v1699_v33, %v6006_v24  ;;  %v1701_v8 = vpop.f32.mrb[29].mxu0 }
 0x1dd   : > { %v5091_v40 = vpop.eup %5090  ;;  %v2012_v35 = vmul.f32 0.5, %v5089_v5  ;;  %5102 = vtanh.f32 %v1891_v4  ;;  %v4773_v34 = vadd.f32 %v1701_v8, %v6012_v42  ;;  %v1703_v7 = vpop.f32.mrb[30].mxu0  ;;  %v2192_v20 = vpack.c.bf16 %v2138_v62, %v2136_v12 }
 0x1de   : > { %v5093_v48 = vpop.eup %5092  ;;  %v2013_v32 = vmul.f32 0.5, %v5091_v40  ;;  %v6239_v54 = vadd.f32 %v4772_v31, %v5945_v52  ;;  %v4774_v60 = vadd.f32 %v1703_v7, %v872_v25  ;;  %v1705_v9 = vpop.f32.mrb[31].mxu0  ;;  %v2193_v43 = vpack.c.bf16 %v2139_v15, %v2137_v29 }
 0x1df   : > { %v5095_v55 = vpop.eup %5094  ;;  %v2076_v45 = vadd.f32 0.5, %v2012_v35  ;;  %v2014_v39 = vmul.f32 0.5, %v5093_v48  ;;  %v6242_v24 = vadd.f32 %v4773_v34, %v5950_v56  ;;  %v4775_v17 = vadd.f32 %v1705_v9, %v873_v2 }
 0x1e0   : > { %v2077_v1 = vadd.f32 0.5, %v2013_v32  ;;  %v2015_v30 = vmul.f32 0.5, %v5095_v55  ;;  %v1892_v42 = vmul.f32 0.5, %v6239_v54  ;;  %v6246_v16 = vadd.f32 %v4774_v60, %v5945_v52  ;;  %2415 = vmatprep.mubr.bf16.mxu1 %v2193_v43 }
 0x1e1   : > { %v2078_v57 = vadd.f32 0.5, %v2014_v39  ;;  %v1893_v6 = vmul.f32 0.5, %v6242_v24  ;;  %v6250_v37 = vadd.f32 %v4775_v17, %v5950_v56  ;;  %2416 = vmatmul.mubr.bf16.gmra.mrb[16].mxu1 %v2192_v20  ;;  %v876_v58 = vmul.f32 %v5933_v46, %v5922_v38 }
 0x1e2   : > { %v2079_v22 = vadd.f32 0.5, %v2015_v30  ;;  %5104 = vtanh.f32 %v1892_v42  ;;  %v1894_v10 = vmul.f32 0.5, %v6246_v16  ;;  %v877_v18 = vmul.f32 %v5942_v50, %v5922_v38 }
 0x1e3   : > { %v2140_v25 = vmul.f32 %v2076_v45, %v6187_v26  ;;  %v2142_v13 = vmul.f32 %v2078_v57, %v6194_v44  ;;  %5106 = vtanh.f32 %v1893_v6  ;;  %v1895_v28 = vmul.f32 0.5, %v6250_v37  ;;  %v1709_v2 = vpop.f32.mrb[32].mxu0 }
 0x1e4   : > { %v5097_v12 = vpop.eup %5096  ;;  %v2141_v62 = vmul.f32 %v2077_v1, %v6190_v14  ;;  %v2143_v4 = vmul.f32 %v2079_v22, %v6198_v27  ;;  %5108 = vtanh.f32 %v1894_v10  ;;  %v4776_v33 = vadd.f32 %v1709_v2, %v6018_v49  ;;  %v1711_v5 = vpop.f32.mrb[33].mxu0 }
 0x1e5   : > { %v5099_v29 = vpop.eup %5098  ;;  %v2016_v15 = vmul.f32 0.5, %v5097_v12  ;;  %5110 = vtanh.f32 %v1895_v28  ;;  %v4777_v38 = vadd.f32 %v1711_v5, %v6024_v21  ;;  %v1713_v26 = vpop.f32.mrb[34].mxu0  ;;  %v2194_v44 = vpack.c.bf16 %v2142_v13, %v2140_v25 }
 0x1e6   : > { %v5101_v31 = vpop.eup %5100  ;;  %v2017_v8 = vmul.f32 0.5, %v5099_v29  ;;  %v6265_v40 = vadd.f32 %v4776_v33, %v5945_v52  ;;  %v4778_v35 = vadd.f32 %v1713_v26, %v876_v58  ;;  %v1715_v14 = vpop.f32.mrb[35].mxu0  ;;  %v2195_v34 = vpack.c.bf16 %v2143_v4, %v2141_v62 }
 0x1e7   : > { %v5103_v27 = vpop.eup %5102  ;;  %v2080_v7 = vadd.f32 0.5, %v2016_v15  ;;  %v2018_v20 = vmul.f32 0.5, %v5101_v31  ;;  %v6268_v49 = vadd.f32 %v4777_v38, %v5950_v56  ;;  %v4779_v48 = vadd.f32 %v1715_v14, %v877_v18 }
 0x1e8   : > { %v2081_v32 = vadd.f32 0.5, %v2017_v8  ;;  %v2019_v60 = vmul.f32 0.5, %v5103_v27  ;;  %v1896_v21 = vmul.f32 0.5, %v6265_v40  ;;  %v6272_v9 = vadd.f32 %v4778_v35, %v5945_v52  ;;  %2423 = vmatprep.mubr.bf16.mxu1 %v2195_v34 }
 0x1e9   : > { %v2082_v43 = vadd.f32 0.5, %v2018_v20  ;;  %v1897_v55 = vmul.f32 0.5, %v6268_v49  ;;  %v6276_v45 = vadd.f32 %v4779_v48, %v5950_v56  ;;  %2424 = vmatmul.mubr.bf16.gmra.mrb[20].mxu1 %v2194_v44  ;;  %v880_v39 = vmul.f32 %v5933_v46, %v5926_v41 }
 0x1ea   : > { %v2083_v17 = vadd.f32 0.5, %v2019_v60  ;;  %5112 = vtanh.f32 %v1896_v21  ;;  %v1898_v1 = vmul.f32 0.5, %v6272_v9  ;;  %v881_v30 = vmul.f32 %v5942_v50, %v5926_v41 }
 0x1eb   : > { %v2144_v42 = vmul.f32 %v2080_v7, %v6213_v23  ;;  %v2146_v57 = vmul.f32 %v2082_v43, %v6220_v51  ;;  %5114 = vtanh.f32 %v1897_v55  ;;  %v1899_v6 = vmul.f32 0.5, %v6276_v45  ;;  %v1719_v58 = vpop.f32.mrb[36].mxu0 }
 0x1ec   : > { %v5105_v22 = vpop.eup %5104  ;;  %v2145_v10 = vmul.f32 %v2081_v32, %v6216_v19  ;;  %v2147_v18 = vmul.f32 %v2083_v17, %v6224_v0  ;;  %5116 = vtanh.f32 %v1898_v1  ;;  %v4780_v25 = vadd.f32 %v1719_v58, %v6031_v59  ;;  %v1721_v13 = vpop.f32.mrb[37].mxu0 }
 0x1ed   : > { %v5107_v28 = vpop.eup %5106  ;;  %v2020_v2 = vmul.f32 0.5, %v5105_v22  ;;  %5118 = vtanh.f32 %v1899_v6  ;;  %v4781_v41 = vadd.f32 %v1721_v13, %v6035_v61  ;;  %v1723_v23 = vpop.f32.mrb[38].mxu0  ;;  %v2196_v51 = vpack.c.bf16 %v2146_v57, %v2144_v42 }
 0x1ee   : > { %v5109_v12 = vpop.eup %5108  ;;  %v2021_v62 = vmul.f32 0.5, %v5107_v28  ;;  %v6291_v4 = vadd.f32 %v4780_v25, %v5945_v52  ;;  %v4782_v33 = vadd.f32 %v1723_v23, %v880_v39  ;;  %v1725_v19 = vpop.f32.mrb[39].mxu0  ;;  %v2197_v5 = vpack.c.bf16 %v2147_v18, %v2145_v10 }
 0x1ef   : > { %v5111_v0 = vpop.eup %5110  ;;  %v2084_v29 = vadd.f32 0.5, %v2020_v2  ;;  %v2022_v15 = vmul.f32 0.5, %v5109_v12  ;;  %v6294_v59 = vadd.f32 %v4781_v41, %v5950_v56  ;;  %v4783_v38 = vadd.f32 %v1725_v19, %v881_v30 }
 0x1f0   : > { %v2085_v26 = vadd.f32 0.5, %v2021_v62  ;;  %v2023_v44 = vmul.f32 0.5, %v5111_v0  ;;  %v1900_v61 = vmul.f32 0.5, %v6291_v4  ;;  %v6298_v31 = vadd.f32 %v4782_v33, %v5945_v52  ;;  %2431 = vmatprep.mubr.bf16.mxu1 %v2197_v5 }
 0x1f1   : > { %v2086_v8 = vadd.f32 0.5, %v2022_v15  ;;  %v1901_v35 = vmul.f32 0.5, %v6294_v59  ;;  %v6302_v14 = vadd.f32 %v4783_v38, %v5950_v56  ;;  %2432 = vmatmul.mubr.bf16.gmra.mrb[24].mxu1 %v2196_v51  ;;  %v884_v34 = vmul.f32 %v5933_v46, %v5935_v47 }
 0x1f2   : > { %v2087_v27 = vadd.f32 0.5, %v2023_v44  ;;  %5120 = vtanh.f32 %v1900_v61  ;;  %v1902_v7 = vmul.f32 0.5, %v6298_v31  ;;  %v885_v20 = vmul.f32 %v5942_v50, %v5935_v47 }
 0x1f3   : > { %v2148_v48 = vmul.f32 %v2084_v29, %v6239_v54  ;;  %v2150_v32 = vmul.f32 %v2086_v8, %v6246_v16  ;;  %5122 = vtanh.f32 %v1901_v35  ;;  %v1903_v60 = vmul.f32 0.5, %v6302_v14  ;;  %v1729_v21 = vpop.f32.mrb[40].mxu0 }
 0x1f4   : > { %v5113_v43 = vpop.eup %5112  ;;  %v2149_v55 = vmul.f32 %v2085_v26, %v6242_v24  ;;  %v2151_v39 = vmul.f32 %v2087_v27, %v6250_v37  ;;  %5124 = vtanh.f32 %v1902_v7  ;;  %v4784_v17 = vadd.f32 %v1729_v21, %v6044_v63  ;;  %v1731_v1 = vpop.f32.mrb[41].mxu0 }
 0x1f5   : > { %v5115_v30 = vpop.eup %5114  ;;  %v2024_v42 = vmul.f32 0.5, %v5113_v43  ;;  %5126 = vtanh.f32 %v1903_v60  ;;  %v4785_v47 = vadd.f32 %v1731_v1, %v6048_v3  ;;  %v1733_v54 = vpop.f32.mrb[42].mxu0  ;;  %v2198_v16 = vpack.c.bf16 %v2150_v32, %v2148_v48 }
 0x1f6   : > { %v5117_v57 = vpop.eup %5116  ;;  %v2025_v6 = vmul.f32 0.5, %v5115_v30  ;;  %v6317_v58 = vadd.f32 %v4784_v17, %v5945_v52  ;;  %v4786_v22 = vadd.f32 %v1733_v54, %v884_v34  ;;  %v1735_v24 = vpop.f32.mrb[43].mxu0  ;;  %v2199_v10 = vpack.c.bf16 %v2151_v39, %v2149_v55  ;;  %v7197_v54 = vld [vmem:[#allocation3_spill] sm:$0xff] }
 0x1f7   : > { %v5119_v37 = vpop.eup %5118  ;;  %v2088_v18 = vadd.f32 0.5, %v2024_v42  ;;  %v2026_v25 = vmul.f32 0.5, %v5117_v57  ;;  %v6320_v63 = vadd.f32 %v4785_v47, %v5950_v56  ;;  %v4787_v13 = vadd.f32 %v1735_v24, %v885_v20 }
 0x1f8   : > { %v2089_v28 = vadd.f32 0.5, %v2025_v6  ;;  %v2027_v2 = vmul.f32 0.5, %v5119_v37  ;;  %v1904_v3 = vmul.f32 0.5, %v6317_v58  ;;  %v6324_v41 = vadd.f32 %v4786_v22, %v5945_v52  ;;  %2439 = vmatprep.mubr.bf16.mxu1 %v2199_v10 }
 0x1f9   : > { %v2090_v23 = vadd.f32 0.5, %v2026_v25  ;;  %v1905_v51 = vmul.f32 0.5, %v6320_v63  ;;  %v6328_v12 = vadd.f32 %v4787_v13, %v5950_v56  ;;  %2440 = vmatmul.mubr.bf16.gmra.mrb[28].mxu1 %v2198_v16  ;;  %v888_v62 = vmul.f32 %v5933_v46, %v5947_v53 }
 0x1fa   : > { %v2091_v33 = vadd.f32 0.5, %v2027_v2  ;;  %5128 = vtanh.f32 %v1904_v3  ;;  %v1906_v19 = vmul.f32 0.5, %v6324_v41  ;;  %v889_v5 = vmul.f32 %v5942_v50, %v5947_v53  ;;  %v7198_v2 = vld [vmem:[#allocation6_spill] sm:$0xff] }
 0x1fb   : > { %v2152_v0 = vmul.f32 %v2088_v18, %v6265_v40  ;;  %v2154_v29 = vmul.f32 %v2090_v23, %v6272_v9  ;;  %5130 = vtanh.f32 %v1905_v51  ;;  %v1907_v15 = vmul.f32 0.5, %v6328_v12  ;;  %v1739_v38 = vpop.f32.mrb[44].mxu0 }
 0x1fc   : > { %v5121_v26 = vpop.eup %5120  ;;  %v2153_v44 = vmul.f32 %v2089_v28, %v6268_v49  ;;  %v2155_v61 = vmul.f32 %v2091_v33, %v6276_v45  ;;  %5132 = vtanh.f32 %v1906_v19  ;;  %v4788_v8 = vadd.f32 %v1739_v38, %v6056_v36  ;;  %v1741_v35 = vpop.f32.mrb[45].mxu0  ;;  %v7199_v33 = vld [vmem:[#allocation7_spill] sm:$0xff] }
 0x1fd   : > { %v5123_v34 = vpop.eup %5122  ;;  %v2028_v27 = vmul.f32 0.5, %v5121_v26  ;;  %5134 = vtanh.f32 %v1907_v15  ;;  %v4789_v53 = vadd.f32 %v1741_v35, %v6060_v11  ;;  %v1743_v40 = vpop.f32.mrb[46].mxu0  ;;  %v2200_v9 = vpack.c.bf16 %v2154_v29, %v2152_v0 }
 0x1fe   : > { %v5125_v7 = vpop.eup %5124  ;;  %v2029_v20 = vmul.f32 0.5, %v5123_v34  ;;  %v6343_v48 = vadd.f32 %v4788_v8, %v5945_v52  ;;  %v4790_v32 = vadd.f32 %v1743_v40, %v888_v62  ;;  %v1745_v49 = vpop.f32.mrb[47].mxu0  ;;  %v2201_v60 = vpack.c.bf16 %v2155_v61, %v2153_v44 }
 0x1ff   : > { %v5127_v45 = vpop.eup %5126  ;;  %v2092_v21 = vadd.f32 0.5, %v2028_v27  ;;  %v2030_v43 = vmul.f32 0.5, %v5125_v7  ;;  %v6346_v36 = vadd.f32 %v4789_v53, %v5950_v56  ;;  %v4791_v55 = vadd.f32 %v1745_v49, %v889_v5 }
 0x200   : > { %v2093_v39 = vadd.f32 0.5, %v2029_v20  ;;  %v2031_v17 = vmul.f32 0.5, %v5127_v45  ;;  %v1908_v11 = vmul.f32 0.5, %v6343_v48  ;;  %v6350_v1 = vadd.f32 %v4790_v32, %v5945_v52  ;;  %2447 = vmatprep.mubr.bf16.mxu1 %v2201_v60  ;;  %v7200_v20 = vld [vmem:[#allocation4_spill] sm:$0xff] }
 0x201   : > { %v2094_v30 = vadd.f32 0.5, %v2030_v43  ;;  %v1909_v42 = vmul.f32 0.5, %v6346_v36  ;;  %v6354_v47 = vadd.f32 %v4791_v55, %v5950_v56  ;;  %2448 = vmatmul.mubr.bf16.gmra.mrb[32].mxu1 %v2200_v9  ;;  %v892_v16 = vmul.f32 %v5933_v46, %v7197_v54 }
 0x202   : > { %v2095_v57 = vadd.f32 0.5, %v2031_v17  ;;  %5136 = vtanh.f32 %v1908_v11  ;;  %v1910_v6 = vmul.f32 0.5, %v6350_v1  ;;  %v893_v22 = vmul.f32 %v5942_v50, %v7197_v54 }
 0x203   : > { %v2156_v24 = vmul.f32 %v2092_v21, %v6291_v4  ;;  %v2158_v10 = vmul.f32 %v2094_v30, %v6298_v31  ;;  %5138 = vtanh.f32 %v1909_v42  ;;  %v1911_v37 = vmul.f32 0.5, %v6354_v47  ;;  %v1749_v18 = vpop.f32.mrb[48].mxu0  ;;  %v7201_v42 = vld [vmem:[#allocation8_spill] sm:$0xff] }
 0x204   : > { %v5129_v25 = vpop.eup %5128  ;;  %v2157_v13 = vmul.f32 %v2093_v39, %v6294_v59  ;;  %v2159_v28 = vmul.f32 %v2095_v57, %v6302_v14  ;;  %5140 = vtanh.f32 %v1910_v6  ;;  %v4792_v3 = vadd.f32 %v1749_v18, %v7198_v2  ;;  %v1751_v23 = vpop.f32.mrb[49].mxu0 }
 0x205   : > { %v5131_v51 = vpop.eup %5130  ;;  %v2032_v62 = vmul.f32 0.5, %v5129_v25  ;;  %5142 = vtanh.f32 %v1911_v37  ;;  %v4793_v4 = vadd.f32 %v1751_v23, %v7199_v33  ;;  %v1753_v19 = vpop.f32.mrb[50].mxu0  ;;  %v2202_v31 = vpack.c.bf16 %v2158_v10, %v2156_v24 }
 0x206   : > { %v5133_v5 = vpop.eup %5132  ;;  %v2033_v0 = vmul.f32 0.5, %v5131_v51  ;;  %v6369_v29 = vadd.f32 %v4792_v3, %v5945_v52  ;;  %v4794_v15 = vadd.f32 %v1753_v19, %v892_v16  ;;  %v1755_v59 = vpop.f32.mrb[51].mxu0  ;;  %v2203_v38 = vpack.c.bf16 %v2159_v28, %v2157_v13 }
 0x207   : > { %v5135_v14 = vpop.eup %5134  ;;  %v2096_v26 = vadd.f32 0.5, %v2032_v62  ;;  %v2034_v44 = vmul.f32 0.5, %v5133_v5  ;;  %v6372_v61 = vadd.f32 %v4793_v4, %v5950_v56  ;;  %v4795_v8 = vadd.f32 %v1755_v59, %v893_v22  ;;  %v7202_v22 = vld [vmem:[#allocation9_spill] sm:$0xff]  ;;  %v829_v28 = vpop.permute.xlu1 %828 }
 0x208   : > { %v2097_v35 = vadd.f32 0.5, %v2033_v0  ;;  %v2035_v34 = vmul.f32 0.5, %v5135_v14  ;;  %v1912_v27 = vmul.f32 0.5, %v6369_v29  ;;  %v6376_v53 = vadd.f32 %v4794_v15, %v5945_v52  ;;  %2455 = vmatprep.mubr.bf16.mxu1 %v2203_v38 }
 0x209   : > { %v2098_v40 = vadd.f32 0.5, %v2034_v44  ;;  %v1913_v9 = vmul.f32 0.5, %v6372_v61  ;;  %v6380_v7 = vadd.f32 %v4795_v8, %v5950_v56  ;;  %2456 = vmatmul.mubr.bf16.gmra.mrb[36].mxu1 %v2202_v31  ;;  %v896_v32 = vmul.f32 %v5933_v46, %v7200_v20  ;;  %v7203_v31 = vld [vmem:[#allocation13_spill] sm:$0xff] }
 0x20a   : > { %v2099_v49 = vadd.f32 0.5, %v2035_v34  ;;  %5144 = vtanh.f32 %v1912_v27  ;;  %v1914_v60 = vmul.f32 0.5, %v6376_v53  ;;  %v897_v45 = vmul.f32 %v5942_v50, %v7200_v20 }
 0x20b   : > { %v2160_v21 = vmul.f32 %v2096_v26, %v6317_v58  ;;  %v2162_v43 = vmul.f32 %v2098_v40, %v6324_v41  ;;  %5146 = vtanh.f32 %v1913_v9  ;;  %v1915_v55 = vmul.f32 0.5, %v6380_v7  ;;  %v1759_v39 = vpop.f32.mrb[52].mxu0 }
 0x20c   : > { %v5137_v17 = vpop.eup %5136  ;;  %v2161_v11 = vmul.f32 %v2097_v35, %v6320_v63  ;;  %v2163_v30 = vmul.f32 %v2099_v49, %v6328_v12  ;;  %5148 = vtanh.f32 %v1914_v60  ;;  %v4796_v54 = vadd.f32 %v1759_v39, %v7201_v42  ;;  %v1761_v16 = vpop.f32.mrb[53].mxu0 }
 0x20d   : > { %v5139_v57 = vpop.eup %5138  ;;  %v2036_v6 = vmul.f32 0.5, %v5137_v17  ;;  %5150 = vtanh.f32 %v1915_v55  ;;  %v4797_v58 = vadd.f32 %v1761_v16, %v7202_v22  ;;  %v1763_v24 = vpop.f32.mrb[54].mxu0  ;;  %v2204_v41 = vpack.c.bf16 %v2162_v43, %v2160_v21  ;;  %v7206_v17 = vld [vmem:[#allocation14_spill] sm:$0xff] }
 0x20e   : > { %v5141_v10 = vpop.eup %5140  ;;  %v2037_v37 = vmul.f32 0.5, %v5139_v57  ;;  %v6395_v18 = vadd.f32 %v4796_v54, %v5945_v52  ;;  %v4798_v25 = vadd.f32 %v1763_v24, %v896_v32  ;;  %v1765_v63 = vpop.f32.mrb[55].mxu0  ;;  %v2205_v13 = vpack.c.bf16 %v2163_v30, %v2161_v11 }
 0x20f   : > { %v5143_v12 = vpop.eup %5142  ;;  %v2100_v2 = vadd.f32 0.5, %v2036_v6  ;;  %v2038_v3 = vmul.f32 0.5, %v5141_v10  ;;  %v6398_v23 = vadd.f32 %v4797_v58, %v5950_v56  ;;  %v4799_v51 = vadd.f32 %v1765_v63, %v897_v45  ;;  %v7205_v45 = vld [vmem:[#allocation11_spill] sm:$0xff] }
 0x210   : > { %v2101_v62 = vadd.f32 0.5, %v2037_v37  ;;  %v2039_v33 = vmul.f32 0.5, %v5143_v12  ;;  %v1916_v4 = vmul.f32 0.5, %v6395_v18  ;;  %v6402_v19 = vadd.f32 %v4798_v25, %v5945_v52  ;;  %2463 = vmatprep.mubr.bf16.mxu1 %v2205_v13  ;;  %v7207_v12 = vld [vmem:[#allocation5_spill] sm:$0xff] }
 0x211   : > { %v901_v5 = vmul.f32 %v5942_v50, %v7203_v31  ;;  %v2102_v0 = vadd.f32 0.5, %v2038_v3  ;;  %v1917_v15 = vmul.f32 0.5, %v6398_v23  ;;  %v6408_v59 = vadd.f32 %v4799_v51, %v5950_v56  ;;  %2464 = vmatmul.mubr.bf16.gmra.mrb[40].mxu1 %v2204_v41 }
 0x212   : > { %v6411_v38 = vmul.f32 %v5933_v46, %v829_v28  ;;  %v2103_v14 = vadd.f32 0.5, %v2039_v33  ;;  %5152 = vtanh.f32 %v1916_v4  ;;  %v1918_v26 = vmul.f32 0.5, %v6402_v19  ;;  %v7204_v46 = vld [vmem:[#allocation10_spill] sm:$0xff] }
 0x213   : > { %v2164_v44 = vmul.f32 %v2100_v2, %v6343_v48  ;;  %v2166_v8 = vmul.f32 %v2102_v0, %v6350_v1  ;;  %5154 = vtanh.f32 %v1917_v15  ;;  %v1919_v35 = vmul.f32 0.5, %v6408_v59  ;;  %v1769_v34 = vpop.f32.mrb[56].mxu0 }
 0x214   : > { %v5145_v27 = vpop.eup %5144  ;;  %v2165_v40 = vmul.f32 %v2101_v62, %v6346_v36  ;;  %v2167_v9 = vmul.f32 %v2103_v14, %v6354_v47  ;;  %5156 = vtanh.f32 %v1918_v26  ;;  %v4800_v20 = vadd.f32 %v1769_v34, %v7204_v46  ;;  %v1771_v32 = vpop.f32.mrb[57].mxu0 }
 0x215   : > { %v5147_v49 = vpop.eup %5146  ;;  %v2040_v60 = vmul.f32 0.5, %v5145_v27  ;;  %5158 = vtanh.f32 %v1919_v35  ;;  %v4801_v48 = vadd.f32 %v1771_v32, %v7205_v45  ;;  %v1773_v21 = vpop.f32.mrb[58].mxu0  ;;  %v2206_v1 = vpack.c.bf16 %v2166_v8, %v2164_v44 }
 0x216   : > { %v5149_v43 = vpop.eup %5148  ;;  %v2041_v55 = vmul.f32 0.5, %v5147_v49  ;;  %v6422_v39 = vadd.f32 %v4800_v20, %v5945_v52  ;;  %v4802_v36 = vadd.f32 %v1773_v21, %v7206_v17  ;;  %v1775_v11 = vpop.f32.mrb[59].mxu0  ;;  %v2207_v47 = vpack.c.bf16 %v2167_v9, %v2165_v40 }
 0x217   : > { %v5151_v30 = vpop.eup %5150  ;;  %v2104_v42 = vadd.f32 0.5, %v2040_v60  ;;  %v2042_v54 = vmul.f32 0.5, %v5149_v43  ;;  %v6426_v16 = vadd.f32 %v4801_v48, %v5950_v56  ;;  %v4803_v57 = vadd.f32 %v1775_v11, %v901_v5  ;;  %v7208_v5 = vld [vmem:[#allocation12_spill] sm:$0xff] }
 0x218   : > { %v2105_v6 = vadd.f32 0.5, %v2041_v55  ;;  %v2043_v22 = vmul.f32 0.5, %v5151_v30  ;;  %v1920_v58 = vmul.f32 0.5, %v6422_v39  ;;  %v6430_v24 = vadd.f32 %v4802_v36, %v5945_v52  ;;  %2471 = vmatprep.mubr.bf16.mxu1 %v2207_v47 }
 0x219   : > { %v905_v41 = vmul.f32 %v5942_v50, %v829_v28  ;;  %v2106_v10 = vadd.f32 0.5, %v2042_v54  ;;  %v1921_v37 = vmul.f32 0.5, %v6426_v16  ;;  %v6435_v25 = vadd.f32 %v4803_v57, %v5950_v56  ;;  %2472 = vmatmul.mubr.bf16.gmra.mrb[44].mxu1 %v2206_v1 }
 0x21a   : > { %v2107_v63 = vadd.f32 0.5, %v2043_v22  ;;  %5160 = vtanh.f32 %v1920_v58  ;;  %v1922_v13 = vmul.f32 0.5, %v6430_v24  ;;  %v903_v2 = vmul.f32 %v5942_v50, %v7207_v12 }
 0x21b   : > { %v2168_v3 = vmul.f32 %v2104_v42, %v6369_v29  ;;  %v2170_v51 = vmul.f32 %v2106_v10, %v6376_v53  ;;  %5162 = vtanh.f32 %v1921_v37  ;;  %v1923_v28 = vmul.f32 0.5, %v6435_v25  ;;  %v1779_v62 = vpop.f32.mrb[60].mxu0 }
 0x21c   : > { %v5153_v33 = vpop.eup %5152  ;;  %v2169_v4 = vmul.f32 %v2105_v6, %v6372_v61  ;;  %v2171_v31 = vmul.f32 %v2107_v63, %v6380_v7  ;;  %5164 = vtanh.f32 %v1922_v13  ;;  %v4804_v0 = vadd.f32 %v1779_v62, %v7208_v5  ;;  %v1781_v15 = vpop.f32.mrb[61].mxu0 }
 0x21d   : > { %v5155_v14 = vpop.eup %5154  ;;  %v2044_v26 = vmul.f32 0.5, %v5153_v33  ;;  %5166 = vtanh.f32 %v1923_v28  ;;  %v4805_v50 = vadd.f32 %v1781_v15, %v903_v2  ;;  %v1783_v29 = vpop.f32.mrb[62].mxu0  ;;  %v2208_v44 = vpack.c.bf16 %v2170_v51, %v2168_v3 }
 0x21e   : > { %v5157_v53 = vpop.eup %5156  ;;  %v2045_v8 = vmul.f32 0.5, %v5155_v14  ;;  %v6447_v35 = vadd.f32 %v4804_v0, %v5945_v52  ;;  %v4806_v34 = vadd.f32 %v1783_v29, %v6411_v38  ;;  %v1785_v61 = vpop.f32.mrb[63].mxu0  ;;  %v2209_v27 = vpack.c.bf16 %v2171_v31, %v2169_v4 }
 0x21f   : > { %v5159_v7 = vpop.eup %5158  ;;  %v2108_v40 = vadd.f32 0.5, %v2044_v26  ;;  %v2046_v9 = vmul.f32 0.5, %v5157_v53  ;;  %v1861_v46 = vadd.f32 %v4805_v50, %v5950_v56  ;;  %v4807_v20 = vadd.f32 %v1785_v61, %v905_v41  ;;  %v6466_v53 = vld [vmem:[%s7171_s6] ss:$0 sm:$0xff] }
 0x220   : > { %v2109_v32 = vadd.f32 0.5, %v2045_v8  ;;  %v2047_v49 = vmul.f32 0.5, %v5159_v7  ;;  %v1924_v60 = vmul.f32 0.5, %v6447_v35  ;;  %v1862_v45 = vadd.f32 %v4806_v34, %v5945_v52  ;;  %2479 = vmatprep.mubr.bf16.mxu1 %v2209_v27 }
 0x221   : > { %v2110_v48 = vadd.f32 0.5, %v2046_v9  ;;  %v1925_v21 = vmul.f32 0.5, %v1861_v46  ;;  %v1863_v1 = vadd.f32 %v4807_v20, %v5950_v56  ;;  %2480 = vmatmul.mubr.bf16.gmra.mrb[48].mxu1 %v2208_v44  ;;  %v2172_v55 = vmul.f32 %v2108_v40, %v6395_v18 }
 0x222   : > { %v2111_v38 = vadd.f32 0.5, %v2047_v49  ;;  %5168 = vtanh.f32 %v1924_v60  ;;  %v1926_v43 = vmul.f32 0.5, %v1862_v45  ;;  %v2173_v47 = vmul.f32 %v2109_v32, %v6398_v23 }
 0x223   : > { %v2174_v17 = vmul.f32 %v2110_v48, %v6402_v19  ;;  %5170 = vtanh.f32 %v1925_v21  ;;  %v1927_v36 = vmul.f32 0.5, %v1863_v1 }
 0x224   : > { %v5161_v11 = vpop.eup %5160  ;;  %v2175_v52 = vmul.f32 %v2111_v38, %v6408_v59  ;;  %5172 = vtanh.f32 %v1926_v43 }
 0x225   : > { %v5163_v30 = vpop.eup %5162  ;;  %v2048_v42 = vmul.f32 0.5, %v5161_v11  ;;  %5174 = vtanh.f32 %v1927_v36  ;;  %v2210_v56 = vpack.c.bf16 %v2174_v17, %v2172_v55 }
 0x226   : > { %v5165_v54 = vpop.eup %5164  ;;  %v2049_v57 = vmul.f32 0.5, %v5163_v30  ;;  %v2211_v6 = vpack.c.bf16 %v2175_v52, %v2173_v47 }
 0x227   : > { %v5167_v22 = vpop.eup %5166  ;;  %v2112_v58 = vadd.f32 0.5, %v2048_v42  ;;  %v2050_v18 = vmul.f32 0.5, %v5165_v54 }
 0x228   : > { %v2113_v41 = vadd.f32 0.5, %v2049_v57  ;;  %v2051_v19 = vmul.f32 0.5, %v5167_v22  ;;  %2487 = vmatprep.mubr.bf16.mxu1 %v2211_v6 }
 0x229   : > { %v2114_v10 = vadd.f32 0.5, %v2050_v18  ;;  %2488 = vmatmul.mubr.bf16.gmra.mrb[52].mxu1 %v2210_v56  ;;  %v2176_v23 = vmul.f32 %v2112_v58, %v6422_v39 }
 0x22a   : > { %v2115_v37 = vadd.f32 0.5, %v2051_v19  ;;  %v2177_v13 = vmul.f32 %v2113_v41, %v6426_v16 }
 0x22b   : > { %v2178_v59 = vmul.f32 %v2114_v10, %v6430_v24 }
 0x22c   : > { %v5169_v63 = vpop.eup %5168  ;;  %v2179_v12 = vmul.f32 %v2115_v37, %v6435_v25 }
 0x22d   : > { %v5171_v2 = vpop.eup %5170  ;;  %v2052_v3 = vmul.f32 0.5, %v5169_v63  ;;  %v2212_v51 = vpack.c.bf16 %v2178_v59, %v2176_v23 }
 0x22e   : > { %v5173_v28 = vpop.eup %5172  ;;  %v2053_v62 = vmul.f32 0.5, %v5171_v2  ;;  %v2213_v33 = vpack.c.bf16 %v2179_v12, %v2177_v13 }
 0x22f   : > { %v5175_v4 = vpop.eup %5174  ;;  %v2116_v31 = vadd.f32 0.5, %v2052_v3  ;;  %v2054_v5 = vmul.f32 0.5, %v5173_v28 }
 0x230   : > { %v2117_v0 = vadd.f32 0.5, %v2053_v62  ;;  %v2055_v15 = vmul.f32 0.5, %v5175_v4  ;;  %2495 = vmatprep.mubr.bf16.mxu1 %v2213_v33 }
 0x231   : > { %v2118_v39 = vadd.f32 0.5, %v2054_v5  ;;  %2496 = vmatmul.mubr.bf16.gmra.mrb[56].mxu1 %v2212_v51  ;;  %v2180_v14 = vmul.f32 %v2116_v31, %v6447_v35 }
 0x232   : > { %v2119_v24 = vadd.f32 0.5, %v2055_v15  ;;  %v2181_v26 = vmul.f32 %v2117_v0, %v1861_v46 }
 0x233   : > { %v2182_v16 = vmul.f32 %v2118_v39, %v1862_v45 }
 0x234   : > { %v2183_v25 = vmul.f32 %v2119_v24, %v1863_v1 }
 0x235   : > { %v2214_v50 = vpack.c.bf16 %v2182_v16, %v2180_v14 }
 0x236   : > { %v2215_v29 = vpack.c.bf16 %v2183_v25, %v2181_v26 }
 0x238   : > { %2503 = vmatprep.mubr.bf16.mxu1 %v2215_v29 }
 0x239   : > { %2504 = vmatmul.mubr.bf16.gmra.mrb[60].mxu1 %v2214_v50 }
 0x294   : > { %v4516_v44 = vpop.f32.mrb[0].mxu1 }
 0x295   : > { %v4517_v8 = vpop.f32.mrb[1].mxu1 }
 0x296   : > { %v4518_v34 = vadd.f32 %v4517_v8, %v4516_v44  ;;  %v4519_v61 = vpop.f32.mrb[2].mxu1 }
 0x297   : > { %v4520_v27 = vpop.f32.mrb[3].mxu1 }
 0x298   : > { %v2386_v7 = vadd.f32 %v4518_v34, %v6466_v53  ;;  %v4521_v35 = vadd.f32 %v4520_v27, %v4519_v61 }
 0x29a   : > { %v2512_v40 = vmul.f32 0.5, %v2386_v7  ;;  %v2389_v9 = vadd.f32 %v4521_v35, %v6466_v53 }
 0x29c   : > { %5176 = vtanh.f32 %v2512_v40  ;;  %v2513_v46 = vmul.f32 0.5, %v2389_v9  ;;  %v4522_v20 = vpop.f32.mrb[4].mxu1 }
 0x29d   : > { %v4523_v32 = vpop.f32.mrb[5].mxu1 }
 0x29e   : > { %5178 = vtanh.f32 %v2513_v46  ;;  %v4524_v49 = vadd.f32 %v4523_v32, %v4522_v20  ;;  %v4525_v60 = vpop.f32.mrb[6].mxu1 }
 0x29f   : > { %v4526_v45 = vpop.f32.mrb[7].mxu1 }
 0x2a0   : > { %v2394_v48 = vadd.f32 %v4524_v49, %v6466_v53  ;;  %v4527_v21 = vadd.f32 %v4526_v45, %v4525_v60 }
 0x2a2   : > { %v2514_v1 = vmul.f32 0.5, %v2394_v48  ;;  %v2397_v38 = vadd.f32 %v4527_v21, %v6466_v53 }
 0x2a4   : > { %5180 = vtanh.f32 %v2514_v1  ;;  %v2515_v43 = vmul.f32 0.5, %v2397_v38  ;;  %v4528_v55 = vpop.f32.mrb[8].mxu1 }
 0x2a5   : > { %v4529_v17 = vpop.f32.mrb[9].mxu1 }
 0x2a6   : > { %v5177_v36 = vpop.eup %5176  ;;  %5182 = vtanh.f32 %v2515_v43  ;;  %v4530_v11 = vadd.f32 %v4529_v17, %v4528_v55  ;;  %v4531_v47 = vpop.f32.mrb[10].mxu1 }
 0x2a7   : > { %v4532_v52 = vpop.f32.mrb[11].mxu1  ;;  %v2576_v30 = vmul.f32 0.5, %v5177_v36 }
 0x2a8   : > { %v5179_v42 = vpop.eup %5178  ;;  %v2402_v56 = vadd.f32 %v4530_v11, %v6466_v53  ;;  %v4533_v54 = vadd.f32 %v4532_v52, %v4531_v47 }
 0x2a9   : > { %v2608_v57 = vadd.f32 0.5, %v2576_v30  ;;  %v2577_v6 = vmul.f32 0.5, %v5179_v42 }
 0x2aa   : > { %v2516_v22 = vmul.f32 0.5, %v2402_v56  ;;  %v2405_v58 = vadd.f32 %v4533_v54, %v6466_v53 }
 0x2ab   : > { %v6474_v18 = vmul.f32 %v2608_v57, %v2386_v7  ;;  %v2609_v41 = vadd.f32 0.5, %v2577_v6 }
 0x2ac   : > { %5184 = vtanh.f32 %v2516_v22  ;;  %v2517_v19 = vmul.f32 0.5, %v2405_v58  ;;  %v4534_v10 = vpop.f32.mrb[12].mxu1 }
 0x2ad   : > { %v4535_v37 = vpop.f32.mrb[13].mxu1  ;;  %2672 = vadd.xlane.f32.xlu0 %v6474_v18  ;;  %v6477_v23 = vmul.f32 %v2609_v41, %v2389_v9 }
 0x2ae   : > { %v5181_v59 = vpop.eup %5180  ;;  %5186 = vtanh.f32 %v2517_v19  ;;  %v4536_v63 = vadd.f32 %v4535_v37, %v4534_v10  ;;  %v4537_v13 = vpop.f32.mrb[14].mxu1 }
 0x2af   : > { %v4538_v12 = vpop.f32.mrb[15].mxu1  ;;  %2674 = vadd.xlane.f32.xlu1 %v6477_v23  ;;  %v2578_v2 = vmul.f32 0.5, %v5181_v59 }
 0x2b0   : > { %v5183_v3 = vpop.eup %5182  ;;  %v2410_v51 = vadd.f32 %v4536_v63, %v6466_v53  ;;  %v4539_v28 = vadd.f32 %v4538_v12, %v4537_v13 }
 0x2b1   : > { %v2610_v62 = vadd.f32 0.5, %v2578_v2  ;;  %v2579_v33 = vmul.f32 0.5, %v5183_v3 }
 0x2b2   : > { %v2518_v4 = vmul.f32 0.5, %v2410_v51  ;;  %v2413_v31 = vadd.f32 %v4539_v28, %v6466_v53 }
 0x2b3   : > { %v6482_v5 = vmul.f32 %v2610_v62, %v2394_v48  ;;  %v2611_v0 = vadd.f32 0.5, %v2579_v33 }
 0x2b4   : > { %5188 = vtanh.f32 %v2518_v4  ;;  %v2519_v15 = vmul.f32 0.5, %v2413_v31  ;;  %v4540_v39 = vpop.f32.mrb[16].mxu1 }
 0x2b5   : > { %v4541_v24 = vpop.f32.mrb[17].mxu1  ;;  %2676 = vadd.xlane.f32.xlu0 %v6482_v5  ;;  %v6485_v50 = vmul.f32 %v2611_v0, %v2397_v38 }
 0x2b6   : > { %v5185_v14 = vpop.eup %5184  ;;  %5190 = vtanh.f32 %v2519_v15  ;;  %v4542_v16 = vadd.f32 %v4541_v24, %v4540_v39  ;;  %v4543_v26 = vpop.f32.mrb[18].mxu1 }
 0x2b7   : > { %v4544_v25 = vpop.f32.mrb[19].mxu1  ;;  %v2580_v29 = vmul.f32 0.5, %v5185_v14 }
 0x2b8   : > { %v5187_v44 = vpop.eup %5186  ;;  %v2418_v8 = vadd.f32 %v4542_v16, %v6466_v53  ;;  %v4545_v34 = vadd.f32 %v4544_v25, %v4543_v26 }
 0x2b9   : > { %2678 = vadd.xlane.f32.xlu0 %v6485_v50  ;;  %v2612_v61 = vadd.f32 0.5, %v2580_v29  ;;  %v2581_v27 = vmul.f32 0.5, %v5187_v44 }
 0x2ba   : > { %v2520_v7 = vmul.f32 0.5, %v2418_v8  ;;  %v2421_v35 = vadd.f32 %v4545_v34, %v6466_v53 }
 0x2bb   : > { %v6490_v40 = vmul.f32 %v2612_v61, %v2402_v56  ;;  %v2613_v9 = vadd.f32 0.5, %v2581_v27 }
 0x2bc   : > { %5192 = vtanh.f32 %v2520_v7  ;;  %v2521_v46 = vmul.f32 0.5, %v2421_v35  ;;  %v4546_v20 = vpop.f32.mrb[20].mxu1 }
 0x2bd   : > { %v4547_v32 = vpop.f32.mrb[21].mxu1  ;;  %2680 = vadd.xlane.f32.xlu1 %v6490_v40  ;;  %v6493_v49 = vmul.f32 %v2613_v9, %v2405_v58 }
 0x2be   : > { %v5189_v60 = vpop.eup %5188  ;;  %5194 = vtanh.f32 %v2521_v46  ;;  %v4548_v45 = vadd.f32 %v4547_v32, %v4546_v20  ;;  %v4549_v48 = vpop.f32.mrb[22].mxu1 }
 0x2bf   : > { %v4550_v21 = vpop.f32.mrb[23].mxu1  ;;  %2682 = vadd.xlane.f32.xlu0 %v6493_v49  ;;  %v2582_v1 = vmul.f32 0.5, %v5189_v60 }
 0x2c0   : > { %v5191_v38 = vpop.eup %5190  ;;  %v2426_v43 = vadd.f32 %v4548_v45, %v6466_v53  ;;  %v4551_v55 = vadd.f32 %v4550_v21, %v4549_v48 }
 0x2c1   : > { %v2614_v17 = vadd.f32 0.5, %v2582_v1  ;;  %v2583_v36 = vmul.f32 0.5, %v5191_v38 }
 0x2c2   : > { %v2522_v11 = vmul.f32 0.5, %v2426_v43  ;;  %v2429_v47 = vadd.f32 %v4551_v55, %v6466_v53 }
 0x2c3   : > { %v6498_v52 = vmul.f32 %v2614_v17, %v2410_v51  ;;  %v2615_v30 = vadd.f32 0.5, %v2583_v36 }
 0x2c4   : > { %5196 = vtanh.f32 %v2522_v11  ;;  %v2523_v42 = vmul.f32 0.5, %v2429_v47  ;;  %v4552_v56 = vpop.f32.mrb[24].mxu1 }
 0x2c5   : > { %v4553_v54 = vpop.f32.mrb[25].mxu1  ;;  %2684 = vadd.xlane.f32.xlu1 %v6498_v52  ;;  %v6501_v57 = vmul.f32 %v2615_v30, %v2413_v31 }
 0x2c6   : > { %v5193_v6 = vpop.eup %5192  ;;  %5198 = vtanh.f32 %v2523_v42  ;;  %v4554_v22 = vadd.f32 %v4553_v54, %v4552_v56  ;;  %v4555_v58 = vpop.f32.mrb[26].mxu1 }
 0x2c7   : > { %v4556_v41 = vpop.f32.mrb[27].mxu1  ;;  %2686 = vadd.xlane.f32.xlu0 %v6501_v57  ;;  %v2584_v19 = vmul.f32 0.5, %v5193_v6 }
 0x2c8   : > { %v5195_v10 = vpop.eup %5194  ;;  %v2434_v37 = vadd.f32 %v4554_v22, %v6466_v53  ;;  %v4557_v59 = vadd.f32 %v4556_v41, %v4555_v58 }
 0x2c9   : > { %v2616_v63 = vadd.f32 0.5, %v2584_v19  ;;  %v2585_v13 = vmul.f32 0.5, %v5195_v10 }
 0x2ca   : > { %v2524_v12 = vmul.f32 0.5, %v2434_v37  ;;  %v2437_v2 = vadd.f32 %v4557_v59, %v6466_v53 }
 0x2cb   : > { %v6506_v3 = vmul.f32 %v2616_v63, %v2418_v8  ;;  %v2617_v51 = vadd.f32 0.5, %v2585_v13 }
 0x2cc   : > { %5200 = vtanh.f32 %v2524_v12  ;;  %v2525_v28 = vmul.f32 0.5, %v2437_v2  ;;  %v4558_v62 = vpop.f32.mrb[28].mxu1 }
 0x2cd   : > { %v4559_v33 = vpop.f32.mrb[29].mxu1  ;;  %2688 = vadd.xlane.f32.xlu1 %v6506_v3  ;;  %v6509_v4 = vmul.f32 %v2617_v51, %v2421_v35 }
 0x2ce   : > { %v5197_v31 = vpop.eup %5196  ;;  %5202 = vtanh.f32 %v2525_v28  ;;  %v4560_v0 = vadd.f32 %v4559_v33, %v4558_v62  ;;  %v4561_v15 = vpop.f32.mrb[30].mxu1 }
 0x2cf   : > { %v4562_v39 = vpop.f32.mrb[31].mxu1  ;;  %2690 = vadd.xlane.f32.xlu0 %v6509_v4  ;;  %v2586_v24 = vmul.f32 0.5, %v5197_v31 }
 0x2d0   : > { %v5199_v14 = vpop.eup %5198  ;;  %v2442_v16 = vadd.f32 %v4560_v0, %v6466_v53  ;;  %v4563_v26 = vadd.f32 %v4562_v39, %v4561_v15 }
 0x2d1   : > { %v2618_v25 = vadd.f32 0.5, %v2586_v24  ;;  %v2587_v29 = vmul.f32 0.5, %v5199_v14 }
 0x2d2   : > { %v2526_v44 = vmul.f32 0.5, %v2442_v16  ;;  %v2445_v8 = vadd.f32 %v4563_v26, %v6466_v53 }
 0x2d3   : > { %v6514_v34 = vmul.f32 %v2618_v25, %v2426_v43  ;;  %v2619_v61 = vadd.f32 0.5, %v2587_v29 }
 0x2d4   : > { %5204 = vtanh.f32 %v2526_v44  ;;  %v2527_v27 = vmul.f32 0.5, %v2445_v8  ;;  %v4564_v7 = vpop.f32.mrb[32].mxu1 }
 0x2d5   : > { %v4565_v35 = vpop.f32.mrb[33].mxu1  ;;  %2692 = vadd.xlane.f32.xlu1 %v6514_v34  ;;  %v6517_v9 = vmul.f32 %v2619_v61, %v2429_v47 }
 0x2d6   : > { %v5201_v46 = vpop.eup %5200  ;;  %5206 = vtanh.f32 %v2527_v27  ;;  %v4566_v20 = vadd.f32 %v4565_v35, %v4564_v7  ;;  %v4567_v32 = vpop.f32.mrb[34].mxu1 }
 0x2d7   : > { %v4568_v60 = vpop.f32.mrb[35].mxu1  ;;  %2694 = vadd.xlane.f32.xlu0 %v6517_v9  ;;  %v2588_v45 = vmul.f32 0.5, %v5201_v46 }
 0x2d8   : > { %v5203_v48 = vpop.eup %5202  ;;  %v2450_v21 = vadd.f32 %v4566_v20, %v6466_v53  ;;  %v4569_v1 = vadd.f32 %v4568_v60, %v4567_v32 }
 0x2d9   : > { %v2620_v38 = vadd.f32 0.5, %v2588_v45  ;;  %v2589_v43 = vmul.f32 0.5, %v5203_v48 }
 0x2da   : > { %v2528_v55 = vmul.f32 0.5, %v2450_v21  ;;  %v2453_v17 = vadd.f32 %v4569_v1, %v6466_v53 }
 0x2db   : > { %v6522_v36 = vmul.f32 %v2620_v38, %v2434_v37  ;;  %v2621_v11 = vadd.f32 0.5, %v2589_v43 }
 0x2dc   : > { %5208 = vtanh.f32 %v2528_v55  ;;  %v2529_v47 = vmul.f32 0.5, %v2453_v17  ;;  %v4570_v30 = vpop.f32.mrb[36].mxu1 }
 0x2dd   : > { %v4571_v42 = vpop.f32.mrb[37].mxu1  ;;  %2696 = vadd.xlane.f32.xlu1 %v6522_v36  ;;  %v6525_v56 = vmul.f32 %v2621_v11, %v2437_v2 }
 0x2de   : > { %v5205_v54 = vpop.eup %5204  ;;  %5210 = vtanh.f32 %v2529_v47  ;;  %v4572_v6 = vadd.f32 %v4571_v42, %v4570_v30  ;;  %v4573_v22 = vpop.f32.mrb[38].mxu1 }
 0x2df   : > { %v4574_v58 = vpop.f32.mrb[39].mxu1  ;;  %2698 = vadd.xlane.f32.xlu0 %v6525_v56  ;;  %v2590_v41 = vmul.f32 0.5, %v5205_v54 }
 0x2e0   : > { %v5207_v19 = vpop.eup %5206  ;;  %v2458_v10 = vadd.f32 %v4572_v6, %v6466_v53  ;;  %v4575_v37 = vadd.f32 %v4574_v58, %v4573_v22 }
 0x2e1   : > { %v2622_v59 = vadd.f32 0.5, %v2590_v41  ;;  %v2591_v63 = vmul.f32 0.5, %v5207_v19 }
 0x2e2   : > { %v2530_v13 = vmul.f32 0.5, %v2458_v10  ;;  %v2461_v12 = vadd.f32 %v4575_v37, %v6466_v53 }
 0x2e3   : > { %v6530_v51 = vmul.f32 %v2622_v59, %v2442_v16  ;;  %v2623_v2 = vadd.f32 0.5, %v2591_v63 }
 0x2e4   : > { %5212 = vtanh.f32 %v2530_v13  ;;  %v2531_v28 = vmul.f32 0.5, %v2461_v12  ;;  %v4576_v62 = vpop.f32.mrb[40].mxu1 }
 0x2e5   : > { %v4577_v33 = vpop.f32.mrb[41].mxu1  ;;  %2700 = vadd.xlane.f32.xlu1 %v6530_v51  ;;  %v6533_v31 = vmul.f32 %v2623_v2, %v2445_v8 }
 0x2e6   : > { %v5209_v0 = vpop.eup %5208  ;;  %5214 = vtanh.f32 %v2531_v28  ;;  %v4578_v15 = vadd.f32 %v4577_v33, %v4576_v62  ;;  %v4579_v39 = vpop.f32.mrb[42].mxu1 }
 0x2e7   : > { %v4580_v24 = vpop.f32.mrb[43].mxu1  ;;  %2702 = vadd.xlane.f32.xlu0 %v6533_v31  ;;  %v2592_v14 = vmul.f32 0.5, %v5209_v0 }
 0x2e8   : > { %v5211_v26 = vpop.eup %5210  ;;  %v2466_v16 = vadd.f32 %v4578_v15, %v6466_v53  ;;  %v4581_v25 = vadd.f32 %v4580_v24, %v4579_v39 }
 0x2e9   : > { %v2624_v29 = vadd.f32 0.5, %v2592_v14  ;;  %v2593_v44 = vmul.f32 0.5, %v5211_v26 }
 0x2ea   : > { %v2532_v61 = vmul.f32 0.5, %v2466_v16  ;;  %v2469_v27 = vadd.f32 %v4581_v25, %v6466_v53 }
 0x2eb   : > { %v6538_v7 = vmul.f32 %v2624_v29, %v2450_v21  ;;  %v2625_v8 = vadd.f32 0.5, %v2593_v44 }
 0x2ec   : > { %5216 = vtanh.f32 %v2532_v61  ;;  %v2533_v35 = vmul.f32 0.5, %v2469_v27  ;;  %v4582_v46 = vpop.f32.mrb[44].mxu1 }
 0x2ed   : > { %v4583_v20 = vpop.f32.mrb[45].mxu1  ;;  %2704 = vadd.xlane.f32.xlu1 %v6538_v7  ;;  %v6541_v32 = vmul.f32 %v2625_v8, %v2453_v17 }
 0x2ee   : > { %v5213_v60 = vpop.eup %5212  ;;  %5218 = vtanh.f32 %v2533_v35  ;;  %v4584_v45 = vadd.f32 %v4583_v20, %v4582_v46  ;;  %v4585_v48 = vpop.f32.mrb[46].mxu1 }
 0x2ef   : > { %v4586_v1 = vpop.f32.mrb[47].mxu1  ;;  %2706 = vadd.xlane.f32.xlu0 %v6541_v32  ;;  %v2594_v38 = vmul.f32 0.5, %v5213_v60 }
 0x2f0   : > { %v5215_v43 = vpop.eup %5214  ;;  %v2474_v21 = vadd.f32 %v4584_v45, %v6466_v53  ;;  %v4587_v55 = vadd.f32 %v4586_v1, %v4585_v48 }
 0x2f1   : > { %v2626_v11 = vadd.f32 0.5, %v2594_v38  ;;  %v2595_v47 = vmul.f32 0.5, %v5215_v43 }
 0x2f2   : > { %v2534_v30 = vmul.f32 0.5, %v2474_v21  ;;  %v2477_v42 = vadd.f32 %v4587_v55, %v6466_v53 }
 0x2f3   : > { %v6546_v54 = vmul.f32 %v2626_v11, %v2458_v10  ;;  %v2627_v17 = vadd.f32 0.5, %v2595_v47 }
 0x2f4   : > { %5220 = vtanh.f32 %v2534_v30  ;;  %v2535_v6 = vmul.f32 0.5, %v2477_v42  ;;  %v4588_v22 = vpop.f32.mrb[48].mxu1 }
 0x2f5   : > { %v4589_v58 = vpop.f32.mrb[49].mxu1  ;;  %2708 = vadd.xlane.f32.xlu1 %v6546_v54  ;;  %v6549_v41 = vmul.f32 %v2627_v17, %v2461_v12 }
 0x2f6   : > { %v5217_v19 = vpop.eup %5216  ;;  %5222 = vtanh.f32 %v2535_v6  ;;  %v4590_v37 = vadd.f32 %v4589_v58, %v4588_v22  ;;  %v4591_v59 = vpop.f32.mrb[50].mxu1 }
 0x2f7   : > { %v4592_v63 = vpop.f32.mrb[51].mxu1  ;;  %2710 = vadd.xlane.f32.xlu0 %v6549_v41  ;;  %v2596_v13 = vmul.f32 0.5, %v5217_v19 }
 0x2f8   : > { %v5219_v2 = vpop.eup %5218  ;;  %v2482_v10 = vadd.f32 %v4590_v37, %v6466_v53  ;;  %v4593_v28 = vadd.f32 %v4592_v63, %v4591_v59 }
 0x2f9   : > { %v2628_v62 = vadd.f32 0.5, %v2596_v13  ;;  %v2597_v33 = vmul.f32 0.5, %v5219_v2 }
 0x2fa   : > { %v2536_v0 = vmul.f32 0.5, %v2482_v10  ;;  %v2485_v15 = vadd.f32 %v4593_v28, %v6466_v53 }
 0x2fb   : > { %v6554_v39 = vmul.f32 %v2628_v62, %v2466_v16  ;;  %v2629_v12 = vadd.f32 0.5, %v2597_v33 }
 0x2fc   : > { %5224 = vtanh.f32 %v2536_v0  ;;  %v2537_v24 = vmul.f32 0.5, %v2485_v15  ;;  %v4594_v14 = vpop.f32.mrb[52].mxu1 }
 0x2fd   : > { %v4595_v26 = vpop.f32.mrb[53].mxu1  ;;  %2712 = vadd.xlane.f32.xlu1 %v6554_v39  ;;  %v6557_v25 = vmul.f32 %v2629_v12, %v2469_v27 }
 0x2fe   : > { %v5221_v29 = vpop.eup %5220  ;;  %5226 = vtanh.f32 %v2537_v24  ;;  %v4596_v44 = vadd.f32 %v4595_v26, %v4594_v14  ;;  %v4597_v61 = vpop.f32.mrb[54].mxu1 }
 0x2ff   : > { %v4598_v8 = vpop.f32.mrb[55].mxu1  ;;  %2714 = vadd.xlane.f32.xlu0 %v6557_v25  ;;  %v2598_v35 = vmul.f32 0.5, %v5221_v29 }
 0x300   : > { %v5223_v46 = vpop.eup %5222  ;;  %v2490_v16 = vadd.f32 %v4596_v44, %v6466_v53  ;;  %v4599_v20 = vadd.f32 %v4598_v8, %v4597_v61 }
 0x301   : > { %v2630_v60 = vadd.f32 0.5, %v2598_v35  ;;  %v2599_v45 = vmul.f32 0.5, %v5223_v46 }
 0x302   : > { %v2538_v48 = vmul.f32 0.5, %v2490_v16  ;;  %v2493_v1 = vadd.f32 %v4599_v20, %v6466_v53 }
 0x303   : > { %v6562_v38 = vmul.f32 %v2630_v60, %v2474_v21  ;;  %v2631_v27 = vadd.f32 0.5, %v2599_v45 }
 0x304   : > { %5228 = vtanh.f32 %v2538_v48  ;;  %v2539_v43 = vmul.f32 0.5, %v2493_v1  ;;  %v4600_v55 = vpop.f32.mrb[56].mxu1 }
 0x305   : > { %v4601_v11 = vpop.f32.mrb[57].mxu1  ;;  %2716 = vadd.xlane.f32.xlu1 %v6562_v38  ;;  %v6565_v47 = vmul.f32 %v2631_v27, %v2477_v42 }
 0x306   : > { %v5225_v30 = vpop.eup %5224  ;;  %5230 = vtanh.f32 %v2539_v43  ;;  %v4602_v17 = vadd.f32 %v4601_v11, %v4600_v55  ;;  %v4603_v6 = vpop.f32.mrb[58].mxu1 }
 0x307   : > { %v4604_v22 = vpop.f32.mrb[59].mxu1  ;;  %2718 = vadd.xlane.f32.xlu0 %v6565_v47  ;;  %v2600_v58 = vmul.f32 0.5, %v5225_v30 }
 0x308   : > { %v5227_v19 = vpop.eup %5226  ;;  %v2498_v21 = vadd.f32 %v4602_v17, %v6466_v53  ;;  %v4605_v37 = vadd.f32 %v4604_v22, %v4603_v6 }
 0x309   : > { %v2632_v59 = vadd.f32 0.5, %v2600_v58  ;;  %v2601_v63 = vmul.f32 0.5, %v5227_v19 }
 0x30a   : > { %v2540_v13 = vmul.f32 0.5, %v2498_v21  ;;  %v2501_v2 = vadd.f32 %v4605_v37, %v6466_v53 }
 0x30b   : > { %v6570_v28 = vmul.f32 %v2632_v59, %v2482_v10  ;;  %v2633_v42 = vadd.f32 0.5, %v2601_v63 }
 0x30c   : > { %5232 = vtanh.f32 %v2540_v13  ;;  %v2541_v62 = vmul.f32 0.5, %v2501_v2  ;;  %v4606_v33 = vpop.f32.mrb[60].mxu1 }
 0x30d   : > { %v4607_v0 = vpop.f32.mrb[61].mxu1  ;;  %2720 = vadd.xlane.f32.xlu1 %v6570_v28  ;;  %v6573_v12 = vmul.f32 %v2633_v42, %v2485_v15 }
 0x30e   : > { %v5229_v24 = vpop.eup %5228  ;;  %5234 = vtanh.f32 %v2541_v62  ;;  %v4608_v14 = vadd.f32 %v4607_v0, %v4606_v33  ;;  %v4609_v26 = vpop.f32.mrb[62].mxu1  ;;  %v5038_v33 = vld [vmem:[%s7174_s9 + $0x10] sm:$0xff]  }
 0x30f   : > { %v4610_v29 = vpop.f32.mrb[63].mxu1  ;;  %2722 = vadd.xlane.f32.xlu0 %v6573_v12  ;;  %v2602_v44 = vmul.f32 0.5, %v5229_v24 }
 0x310   : > { %v5231_v61 = vpop.eup %5230  ;;  %v2506_v10 = vadd.f32 %v4608_v14, %v6466_v53  ;;  %v4611_v8 = vadd.f32 %v4610_v29, %v4609_v26 }
 0x311   : > { %v2634_v35 = vadd.f32 0.5, %v2602_v44  ;;  %v2603_v46 = vmul.f32 0.5, %v5231_v61 }
 0x312   : > { %v2542_v20 = vmul.f32 0.5, %v2506_v10  ;;  %v2509_v60 = vadd.f32 %v4611_v8, %v6466_v53 }
 0x313   : > { %v6578_v45 = vmul.f32 %v2634_v35, %v2490_v16  ;;  %v2635_v15 = vadd.f32 0.5, %v2603_v46 }
 0x314   : > { %5236 = vtanh.f32 %v2542_v20  ;;  %v2543_v48 = vmul.f32 0.5, %v2509_v60 }
 0x315   : > { %2724 = vadd.xlane.f32.xlu1 %v6578_v45  ;;  %v6581_v27 = vmul.f32 %v2635_v15, %v2493_v1 }
 0x316   : > { %v5233_v43 = vpop.eup %5232  ;;  %5238 = vtanh.f32 %v2543_v48 }
 0x317   : > { %2726 = vadd.xlane.f32.xlu0 %v6581_v27  ;;  %v2604_v55 = vmul.f32 0.5, %v5233_v43 }
 0x318   : > { %v5235_v11 = vpop.eup %5234 }
 0x319   : > { %v2636_v30 = vadd.f32 0.5, %v2604_v55  ;;  %v2605_v17 = vmul.f32 0.5, %v5235_v11 }
 0x31b   : > { %v6584_v6 = vmul.f32 %v2636_v30, %v2498_v21  ;;  %v2637_v53 = vadd.f32 0.5, %v2605_v17  ;;  %v5036_v21 = vld [vmem:[%s7174_s9] sm:$0xff]  }
 0x31c   : > { %4656 = vmatprep.subr.bf16.mxu1 %v5036_v21 }
 0x31d   : > { %2728 = vadd.xlane.f32.xlu1 %v6584_v6  ;;  %v6587_v16 = vmul.f32 %v2637_v53, %v2501_v2  ;;  %4657 = vmatpush3.bf16.msra.mxu1 %v5036_v21  ;;  %v5037_v2 = vld [vmem:[%s7174_s9 + $0x8] sm:$0xff]  }
 0x31e   : > { %v5237_v22 = vpop.eup %5236  ;;  %4658 = vmatprep.subr.bf16.mxu1 %v5037_v2 }
 0x31f   : > { %2730 = vadd.xlane.f32.xlu0 %v6587_v16  ;;  %v2606_v1 = vmul.f32 0.5, %v5237_v22 }
 0x320   : > { %v5239_v58 = vpop.eup %5238 }
 0x321   : > { %v2638_v19 = vadd.f32 0.5, %v2606_v1  ;;  %v2607_v37 = vmul.f32 0.5, %v5239_v58  ;;  %4659 = vmatpush3.bf16.msra.mxu1 %v5037_v2 }
 0x322   : > { %4660 = vmatprep.subr.bf16.mxu1 %v5038_v33 }
 0x323   : > { %v6590_v59 = vmul.f32 %v2638_v19, %v2506_v10  ;;  %v2639_v63 = vadd.f32 0.5, %v2607_v37 }
 0x325   : > { %2732 = vadd.xlane.f32.xlu1 %v6590_v59  ;;  %v6593_v13 = vmul.f32 %v2639_v63, %v2509_v60  ;;  %4661 = vmatpush3.bf16.msra.mxu1 %v5038_v33 }
 0x327   : > { %2734 = vadd.xlane.f32.xlu0 %v6593_v13 }
 0x33a   : > { %v2673_v42 = vpop.xlane.xlu0 %2672 }
 0x33b   : > { %v2737_v62 = vmul.f32 0.0078125, %v2673_v42 }
 0x33c   : > { %v2675_v0 = vpop.xlane.xlu1 %2674 }
 0x33d   : > { %v6606_v24 = vsub.f32 %v6474_v18, %v2737_v62  ;;  %v2738_v14 = vmul.f32 0.0078125, %v2675_v0  ;;  %v5040_v62 = vld [vmem:[%s7174_s9 + $0x20] sm:$0xff]  }
 0x33f   : > { %v6609_v26 = vsub.f32 %v6477_v23, %v2738_v14  ;;  %v2801_v29 = vmul.f32 %v6606_v24, %v6606_v24 }
 0x341   : > { %2833 = vadd.xlane.f32.xlu1 %v2801_v29  ;;  %v2802_v44 = vmul.f32 %v6609_v26, %v6609_v26 }
 0x342   : > { %v2677_v61 = vpop.xlane.xlu0 %2676 }
 0x343   : > { %v2739_v10 = vmul.f32 0.0078125, %v2677_v61  ;;  %2835 = vadd.xlane.f32.xlu0 %v2802_v44 }
 0x345   : > { %v6616_v8 = vsub.f32 %v6482_v5, %v2739_v10 }
 0x346   : > { %v2679_v18 = vpop.xlane.xlu0 %2678 }
 0x347   : > { %v2740_v35 = vmul.f32 0.0078125, %v2679_v18  ;;  %v2803_v46 = vmul.f32 %v6616_v8, %v6616_v8  ;;  %v5042_v18 = vld [vmem:[%s7174_s9 + $0x30] sm:$0xff]  }
 0x349   : > { %v6621_v23 = vsub.f32 %v6485_v50, %v2740_v35  ;;  %2837 = vadd.xlane.f32.xlu1 %v2803_v46 }
 0x34a   : > { %v2681_v20 = vpop.xlane.xlu1 %2680 }
 0x34b   : > { %v2741_v60 = vmul.f32 0.0078125, %v2681_v20  ;;  %v2804_v15 = vmul.f32 %v6621_v23, %v6621_v23 }
 0x34c   : > { %v2683_v48 = vpop.xlane.xlu0 %2682 }
 0x34d   : > { %v6626_v43 = vsub.f32 %v6490_v40, %v2741_v60  ;;  %v2742_v5 = vmul.f32 0.0078125, %v2683_v48  ;;  %2839 = vadd.xlane.f32.xlu0 %v2804_v15 }
 0x34f   : > { %v6629_v55 = vsub.f32 %v6493_v49, %v2742_v5  ;;  %v2805_v11 = vmul.f32 %v6626_v43, %v6626_v43 }
 0x351   : > { %2841 = vadd.xlane.f32.xlu1 %v2805_v11  ;;  %v2806_v50 = vmul.f32 %v6629_v55, %v6629_v55 }
 0x352   : > { %v2685_v30 = vpop.xlane.xlu1 %2684 }
 0x353   : > { %v2743_v17 = vmul.f32 0.0078125, %v2685_v30  ;;  %2843 = vadd.xlane.f32.xlu0 %v2806_v50 }
 0x354   : > { %v2687_v53 = vpop.xlane.xlu0 %2686 }
 0x355   : > { %v6636_v22 = vsub.f32 %v6498_v52, %v2743_v17  ;;  %v2744_v40 = vmul.f32 0.0078125, %v2687_v53  ;;  %v5039_v52 = vld [vmem:[%s7174_s9 + $0x18] sm:$0xff]  }
 0x356   : > { %4662 = vmatprep.subr.bf16.mxu1 %v5039_v52 }
 0x357   : > { %v6639_v1 = vsub.f32 %v6501_v57, %v2744_v40  ;;  %v2807_v49 = vmul.f32 %v6636_v22, %v6636_v22  ;;  %4663 = vmatpush3.bf16.msra.mxu1 %v5039_v52 }
 0x358   : > { %4664 = vmatprep.subr.bf16.mxu1 %v5040_v62 }
 0x359   : > { %2845 = vadd.xlane.f32.xlu1 %v2807_v49  ;;  %v2808_v58 = vmul.f32 %v6639_v1, %v6639_v1 }
 0x35a   : > { %v2689_v19 = vpop.xlane.xlu1 %2688 }
 0x35b   : > { %v2745_v37 = vmul.f32 0.0078125, %v2689_v19  ;;  %2847 = vadd.xlane.f32.xlu0 %v2808_v58  ;;  %4665 = vmatpush3.bf16.msra.mxu1 %v5040_v62 }
 0x35c   : > { %v2691_v63 = vpop.xlane.xlu0 %2690 }
 0x35d   : > { %v6649_v21 = vsub.f32 %v6506_v3, %v2745_v37  ;;  %v2746_v57 = vmul.f32 0.0078125, %v2691_v63 }
 0x35f   : > { %v6652_v2 = vsub.f32 %v6509_v4, %v2746_v57  ;;  %v2809_v42 = vmul.f32 %v6649_v21, %v6649_v21  ;;  %v5041_v4 = vld [vmem:[%s7174_s9 + $0x28] sm:$0xff]  }
 0x360   : > { %4666 = vmatprep.subr.bf16.mxu1 %v5041_v4 }
 0x361   : > { %2849 = vadd.xlane.f32.xlu1 %v2809_v42  ;;  %v2810_v33 = vmul.f32 %v6652_v2, %v6652_v2  ;;  %4667 = vmatpush3.bf16.msra.mxu1 %v5041_v4 }
 0x362   : > { %v2693_v0 = vpop.xlane.xlu1 %2692  ;;  %4668 = vmatprep.subr.bf16.mxu1 %v5042_v18 }
 0x363   : > { %v2747_v3 = vmul.f32 0.0078125, %v2693_v0  ;;  %2851 = vadd.xlane.f32.xlu0 %v2810_v33 }
 0x364   : > { %v2695_v14 = vpop.xlane.xlu0 %2694 }
 0x365   : > { %v6665_v29 = vsub.f32 %v6514_v34, %v2747_v3  ;;  %v2748_v44 = vmul.f32 0.0078125, %v2695_v14  ;;  %4669 = vmatpush3.bf16.msra.mxu1 %v5042_v18 }
 0x367   : > { %v6668_v61 = vsub.f32 %v6517_v9, %v2748_v44  ;;  %v2811_v10 = vmul.f32 %v6665_v29, %v6665_v29  ;;  %v5043_v9 = vld [vmem:[%s7174_s9 + $0x38] sm:$0xff]  }
 0x368   : > { %4670 = vmatprep.subr.bf16.mxu1 %v5043_v9 }
 0x369   : > { %2853 = vadd.xlane.f32.xlu1 %v2811_v10  ;;  %v2812_v35 = vmul.f32 %v6668_v61, %v6668_v61  ;;  %4671 = vmatpush3.bf16.msra.mxu1 %v5043_v9 }
 0x36a   : > { %v2697_v46 = vpop.xlane.xlu1 %2696 }
 0x36b   : > { %v2749_v34 = vmul.f32 0.0078125, %v2697_v46  ;;  %2855 = vadd.xlane.f32.xlu0 %v2812_v35 }
 0x36c   : > { %v2699_v20 = vpop.xlane.xlu0 %2698 }
 0x36d   : > { %v6681_v60 = vsub.f32 %v6522_v36, %v2749_v34  ;;  %v2750_v15 = vmul.f32 0.0078125, %v2699_v20 }
 0x36f   : > { %v6684_v48 = vsub.f32 %v6525_v56, %v2750_v15  ;;  %v2813_v5 = vmul.f32 %v6681_v60, %v6681_v60 }
 0x371   : > { %2857 = vadd.xlane.f32.xlu1 %v2813_v5  ;;  %v2814_v11 = vmul.f32 %v6684_v48, %v6684_v48 }
 0x372   : > { %v2701_v50 = vpop.xlane.xlu1 %2700 }
 0x373   : > { %v2751_v30 = vmul.f32 0.0078125, %v2701_v50  ;;  %2859 = vadd.xlane.f32.xlu0 %v2814_v11 }
 0x374   : > { %v2703_v17 = vpop.xlane.xlu0 %2702 }
 0x375   : > { %v6691_v36 = vsub.f32 %v6530_v51, %v2751_v30  ;;  %v2752_v53 = vmul.f32 0.0078125, %v2703_v17 }
 0x377   : > { %v6694_v40 = vsub.f32 %v6533_v31, %v2752_v53  ;;  %v2815_v56 = vmul.f32 %v6691_v36, %v6691_v36 }
 0x379   : > { %2861 = vadd.xlane.f32.xlu1 %v2815_v56  ;;  %v2816_v49 = vmul.f32 %v6694_v40, %v6694_v40 }
 0x37a   : > { %v2705_v58 = vpop.xlane.xlu1 %2704 }
 0x37b   : > { %v2753_v19 = vmul.f32 0.0078125, %v2705_v58  ;;  %2863 = vadd.xlane.f32.xlu0 %v2816_v49 }
 0x37c   : > { %v2707_v37 = vpop.xlane.xlu0 %2706 }
 0x37d   : > { %v6701_v63 = vsub.f32 %v6538_v7, %v2753_v19  ;;  %v2754_v51 = vmul.f32 0.0078125, %v2707_v37 }
 0x37f   : > { %v6704_v52 = vsub.f32 %v6541_v32, %v2754_v51  ;;  %v2817_v31 = vmul.f32 %v6701_v63, %v6701_v63 }
 0x381   : > { %2865 = vadd.xlane.f32.xlu1 %v2817_v31  ;;  %v2818_v57 = vmul.f32 %v6704_v52, %v6704_v52 }
 0x382   : > { %v2709_v42 = vpop.xlane.xlu1 %2708 }
 0x383   : > { %v2755_v62 = vmul.f32 0.0078125, %v2709_v42  ;;  %2867 = vadd.xlane.f32.xlu0 %v2818_v57 }
 0x384   : > { %v2711_v33 = vpop.xlane.xlu0 %2710 }
 0x385   : > { %v6711_v0 = vsub.f32 %v6546_v54, %v2755_v62  ;;  %v2756_v7 = vmul.f32 0.0078125, %v2711_v33 }
 0x387   : > { %v6714_v3 = vsub.f32 %v6549_v41, %v2756_v7  ;;  %v2819_v32 = vmul.f32 %v6711_v0, %v6711_v0 }
 0x389   : > { %2869 = vadd.xlane.f32.xlu1 %v2819_v32  ;;  %v2820_v14 = vmul.f32 %v6714_v3, %v6714_v3 }
 0x38a   : > { %v2713_v4 = vpop.xlane.xlu1 %2712 }
 0x38b   : > { %v2757_v44 = vmul.f32 0.0078125, %v2713_v4  ;;  %2871 = vadd.xlane.f32.xlu0 %v2820_v14 }
 0x38c   : > { %v2715_v10 = vpop.xlane.xlu0 %2714 }
 0x38d   : > { %v6721_v18 = vsub.f32 %v6554_v39, %v2757_v44  ;;  %v2758_v54 = vmul.f32 0.0078125, %v2715_v10 }
 0x38f   : > { %v6724_v35 = vsub.f32 %v6557_v25, %v2758_v54  ;;  %v2821_v41 = vmul.f32 %v6721_v18, %v6721_v18 }
 0x391   : > { %2873 = vadd.xlane.f32.xlu1 %v2821_v41  ;;  %v2822_v46 = vmul.f32 %v6724_v35, %v6724_v35 }
 0x392   : > { %v2717_v34 = vpop.xlane.xlu1 %2716 }
 0x393   : > { %v2759_v20 = vmul.f32 0.0078125, %v2717_v34  ;;  %2875 = vadd.xlane.f32.xlu0 %v2822_v46 }
 0x394   : > { %v2719_v9 = vpop.xlane.xlu0 %2718 }
 0x395   : > { %v6731_v15 = vsub.f32 %v6562_v38, %v2759_v20  ;;  %v2760_v39 = vmul.f32 0.0078125, %v2719_v9 }
 0x397   : > { %v6734_v5 = vsub.f32 %v6565_v47, %v2760_v39  ;;  %v2823_v25 = vmul.f32 %v6731_v15, %v6731_v15 }
 0x399   : > { %2877 = vadd.xlane.f32.xlu1 %v2823_v25  ;;  %v2824_v11 = vmul.f32 %v6734_v5, %v6734_v5 }
 0x39a   : > { %v2721_v50 = vpop.xlane.xlu1 %2720 }
 0x39b   : > { %v2761_v30 = vmul.f32 0.0078125, %v2721_v50  ;;  %2879 = vadd.xlane.f32.xlu0 %v2824_v11 }
 0x39c   : > { %v2723_v17 = vpop.xlane.xlu0 %2722 }
 0x39d   : > { %v6741_v53 = vsub.f32 %v6570_v28, %v2761_v30  ;;  %v2762_v38 = vmul.f32 0.0078125, %v2723_v17 }
 0x39f   : > { %v6744_v56 = vsub.f32 %v6573_v12, %v2762_v38  ;;  %v2825_v47 = vmul.f32 %v6741_v53, %v6741_v53 }
 0x3a1   : > { %2881 = vadd.xlane.f32.xlu1 %v2825_v47  ;;  %v2826_v49 = vmul.f32 %v6744_v56, %v6744_v56  ;;  %v6783_v47 = vld [vmem:[%s7172_s7] ss:$0 sm:$0xff] }
 0x3a2   : > { %v2725_v58 = vpop.xlane.xlu1 %2724 }
 0x3a3   : > { %v2763_v19 = vmul.f32 0.0078125, %v2725_v58  ;;  %2883 = vadd.xlane.f32.xlu0 %v2826_v49 }
 0x3a4   : > { %v2727_v37 = vpop.xlane.xlu0 %2726 }
 0x3a5   : > { %v6751_v51 = vsub.f32 %v6578_v45, %v2763_v19  ;;  %v2764_v28 = vmul.f32 0.0078125, %v2727_v37 }
 0x3a7   : > { %v6754_v31 = vsub.f32 %v6581_v27, %v2764_v28  ;;  %v2827_v12 = vmul.f32 %v6751_v51, %v6751_v51 }
 0x3a9   : > { %2885 = vadd.xlane.f32.xlu1 %v2827_v12  ;;  %v2828_v57 = vmul.f32 %v6754_v31, %v6754_v31 }
 0x3aa   : > { %v2729_v42 = vpop.xlane.xlu1 %2728 }
 0x3ab   : > { %v2765_v62 = vmul.f32 0.0078125, %v2729_v42  ;;  %2887 = vadd.xlane.f32.xlu0 %v2828_v57 }
 0x3ac   : > { %v2731_v33 = vpop.xlane.xlu0 %2730 }
 0x3ad   : > { %v6761_v7 = vsub.f32 %v6584_v6, %v2765_v62  ;;  %v2766_v45 = vmul.f32 0.0078125, %v2731_v33 }
 0x3af   : > { %v6764_v32 = vsub.f32 %v6587_v16, %v2766_v45  ;;  %v2829_v27 = vmul.f32 %v6761_v7, %v6761_v7  ;;  %v6791_v45 = vld [vmem:[%s7173_s8] ss:$0 sm:$0xff] }
 0x3b1   : > { %2889 = vadd.xlane.f32.xlu1 %v2829_v27  ;;  %v2830_v14 = vmul.f32 %v6764_v32, %v6764_v32 }
 0x3b2   : > { %v2733_v4 = vpop.xlane.xlu1 %2732 }
 0x3b3   : > { %v2767_v44 = vmul.f32 0.0078125, %v2733_v4  ;;  %2891 = vadd.xlane.f32.xlu0 %v2830_v14 }
 0x3b4   : > { %v2735_v10 = vpop.xlane.xlu0 %2734 }
 0x3b5   : > { %v6771_v54 = vsub.f32 %v6590_v59, %v2767_v44  ;;  %v2768_v6 = vmul.f32 0.0078125, %v2735_v10 }
 0x3b7   : > { %v6774_v41 = vsub.f32 %v6593_v13, %v2768_v6  ;;  %v2831_v16 = vmul.f32 %v6771_v54, %v6771_v54 }
 0x3b9   : > { %2893 = vadd.xlane.f32.xlu1 %v2831_v16  ;;  %v2832_v46 = vmul.f32 %v6774_v41, %v6774_v41 }
 0x3bb   : > { %2895 = vadd.xlane.f32.xlu0 %v2832_v46 }
 0x3ce   : > { %v2834_v34 = vpop.xlane.xlu1 %2833 }
 0x3cf   : > { %v2897_v20 = vmul.f32 0.0078125, %v2834_v34 }
 0x3d0   : > { %v2836_v9 = vpop.xlane.xlu0 %2835 }
 0x3d1   : > { %v2929_v39 = vadd.f32 1e-05, %v2897_v20  ;;  %v2898_v25 = vmul.f32 0.0078125, %v2836_v9 }
 0x3d3   : > { %5240 = vrsqrt.f32 %v2929_v39  ;;  %v2930_v59 = vadd.f32 1e-05, %v2898_v25 }
 0x3d5   : > { %5242 = vrsqrt.f32 %v2930_v59 }
 0x3d6   : > { %v2838_v11 = vpop.xlane.xlu1 %2837 }
 0x3d7   : > { %v2899_v50 = vmul.f32 0.0078125, %v2838_v11 }
 0x3d9   : > { %v2931_v13 = vadd.f32 1e-05, %v2899_v50 }
 0x3da   : > { %v2840_v30 = vpop.xlane.xlu0 %2839 }
 0x3db   : > { %5244 = vrsqrt.f32 %v2931_v13  ;;  %v2900_v17 = vmul.f32 0.0078125, %v2840_v30 }
 0x3dd   : > { %v5241_v38 = vpop.eup %5240  ;;  %v2932_v49 = vadd.f32 1e-05, %v2900_v17 }
 0x3de   : > { %v2842_v58 = vpop.xlane.xlu1 %2841  ;;  %v2993_v19 = vmul.f32 %v5241_v38, %v6606_v24 }
 0x3df   : > { %v5243_v37 = vpop.eup %5242  ;;  %5246 = vrsqrt.f32 %v2932_v49  ;;  %v2901_v28 = vmul.f32 0.0078125, %v2842_v58 }
 0x3e0   : > { %v2844_v12 = vpop.xlane.xlu0 %2843  ;;  %v2994_v57 = vmul.f32 %v5243_v37, %v6609_v26  ;;  %v3032_v42 = vmul.f32 %v6783_v47, %v2993_v19 }
 0x3e1   : > { %v2933_v62 = vadd.f32 1e-05, %v2901_v28  ;;  %v2902_v33 = vmul.f32 0.0078125, %v2844_v12 }
 0x3e2   : > { %v3033_v27 = vmul.f32 %v6783_v47, %v2994_v57  ;;  %v3071_v24 = vadd.f32 %v6791_v45, %v3032_v42 }
 0x3e3   : > { %5248 = vrsqrt.f32 %v2933_v62  ;;  %v2934_v14 = vadd.f32 1e-05, %v2902_v33 }
 0x3e4   : > { %v3072_v4 = vadd.f32 %v6791_v45, %v3033_v27 }
 0x3e5   : > { %v5245_v44 = vpop.eup %5244  ;;  %5250 = vrsqrt.f32 %v2934_v14 }
 0x3e6   : > { %v2995_v26 = vmul.f32 %v5245_v44, %v6616_v8  ;;  %v2846_v10 = vpop.xlane.xlu1 %2845  ;;  %v3103_v6 = vpack.c.bf16 %v3072_v4, %v3071_v24 }
 0x3e7   : > { %v2903_v16 = vmul.f32 0.0078125, %v2846_v10 }
 0x3e8   : > { %4672 = vmatprep.mubr.bf16.mxu1 %v3103_v6  ;;  %v2848_v46 = vpop.xlane.xlu0 %2847  ;;  %v3034_v39 = vmul.f32 %v6783_v47, %v2995_v26 }
 0x3e9   : > { %v5247_v34 = vpop.eup %5246  ;;  %v2935_v20 = vadd.f32 1e-05, %v2903_v16  ;;  %v2904_v9 = vmul.f32 0.0078125, %v2848_v46 }
 0x3ea   : > { %v2996_v25 = vmul.f32 %v5247_v34, %v6621_v23  ;;  %v3073_v8 = vadd.f32 %v6791_v45, %v3034_v39 }
 0x3eb   : > { %5252 = vrsqrt.f32 %v2935_v20  ;;  %v2936_v59 = vadd.f32 1e-05, %v2904_v9 }
 0x3ec   : > { %v3035_v11 = vmul.f32 %v6783_v47, %v2996_v25 }
 0x3ed   : > { %v5249_v50 = vpop.eup %5248  ;;  %5254 = vrsqrt.f32 %v2936_v59 }
 0x3ee   : > { %v2850_v13 = vpop.xlane.xlu1 %2849  ;;  %v3074_v30 = vadd.f32 %v6791_v45, %v3035_v11  ;;  %v2997_v17 = vmul.f32 %v5249_v50, %v6626_v43 }
 0x3ef   : > { %v5251_v38 = vpop.eup %5250  ;;  %v2905_v49 = vmul.f32 0.0078125, %v2850_v13 }
 0x3f0   : > { %v2852_v58 = vpop.xlane.xlu0 %2851  ;;  %v3104_v19 = vpack.c.bf16 %v3074_v30, %v3073_v8  ;;  %v2998_v37 = vmul.f32 %v5251_v38, %v6629_v55  ;;  %v3036_v23 = vmul.f32 %v6783_v47, %v2997_v17 }
 0x3f1   : > { %v2937_v28 = vadd.f32 1e-05, %v2905_v49  ;;  %v2906_v12 = vmul.f32 0.0078125, %v2852_v58 }
 0x3f2   : > { %4673 = vmatmul.mubr.bf16.vlgmr.msra.gmra.mrb[64].mxu1 %v3104_v19  ;;  %v3037_v57 = vmul.f32 %v6783_v47, %v2998_v37  ;;  %v3075_v62 = vadd.f32 %v6791_v45, %v3036_v23 }
 0x3f3   : > { %5256 = vrsqrt.f32 %v2937_v28  ;;  %v2938_v42 = vadd.f32 1e-05, %v2906_v12 }
 0x3f4   : > { %v3076_v33 = vadd.f32 %v6791_v45, %v3037_v57 }
 0x3f5   : > { %v5253_v43 = vpop.eup %5252  ;;  %5258 = vrsqrt.f32 %v2938_v42 }
 0x3f6   : > { %v2854_v27 = vpop.xlane.xlu1 %2853  ;;  %v3105_v14 = vpack.c.bf16 %v3076_v33, %v3075_v62  ;;  %v2999_v24 = vmul.f32 %v5253_v43, %v6636_v22 }
 0x3f7   : > { %v5255_v55 = vpop.eup %5254  ;;  %v2907_v4 = vmul.f32 0.0078125, %v2854_v27 }
 0x3f8   : > { %4676 = vmatprep.mubr.bf16.mxu1 %v3105_v14  ;;  %v2856_v44 = vpop.xlane.xlu0 %2855  ;;  %v3000_v26 = vmul.f32 %v5255_v55, %v6639_v1  ;;  %v3038_v10 = vmul.f32 %v6783_v47, %v2999_v24 }
 0x3f9   : > { %v2939_v6 = vadd.f32 1e-05, %v2907_v4  ;;  %v2908_v16 = vmul.f32 0.0078125, %v2856_v44 }
 0x3fa   : > { %v3039_v46 = vmul.f32 %v6783_v47, %v3000_v26  ;;  %v3077_v20 = vadd.f32 %v6791_v45, %v3038_v10 }
 0x3fb   : > { %5260 = vrsqrt.f32 %v2939_v6  ;;  %v2940_v34 = vadd.f32 1e-05, %v2908_v16 }
 0x3fc   : > { %v3078_v9 = vadd.f32 %v6791_v45, %v3039_v46 }
 0x3fd   : > { %v5257_v39 = vpop.eup %5256  ;;  %5262 = vrsqrt.f32 %v2940_v34 }
 0x3fe   : > { %v2858_v22 = vpop.xlane.xlu1 %2857  ;;  %v3106_v25 = vpack.c.bf16 %v3078_v9, %v3077_v20  ;;  %v3001_v59 = vmul.f32 %v5257_v39, %v6649_v21 }
 0x3ff   : > { %v5259_v11 = vpop.eup %5258  ;;  %v2909_v1 = vmul.f32 0.0078125, %v2858_v22 }
 0x400   : > { %4677 = vmatmul.mubr.bf16.gmra.mrb[68].mxu1 %v3106_v25  ;;  %v2860_v50 = vpop.xlane.xlu0 %2859  ;;  %v3002_v13 = vmul.f32 %v5259_v11, %v6652_v2  ;;  %v3040_v8 = vmul.f32 %v6783_v47, %v3001_v59 }
 0x401   : > { %v2941_v30 = vadd.f32 1e-05, %v2909_v1  ;;  %v2910_v17 = vmul.f32 0.0078125, %v2860_v50 }
 0x402   : > { %v3041_v38 = vmul.f32 %v6783_v47, %v3002_v13  ;;  %v3079_v58 = vadd.f32 %v6791_v45, %v3040_v8 }
 0x403   : > { %5264 = vrsqrt.f32 %v2941_v30  ;;  %v2942_v49 = vadd.f32 1e-05, %v2910_v17 }
 0x404   : > { %v3080_v19 = vadd.f32 %v6791_v45, %v3041_v38 }
 0x405   : > { %v5261_v37 = vpop.eup %5260  ;;  %5266 = vrsqrt.f32 %v2942_v49 }
 0x406   : > { %v2862_v21 = vpop.xlane.xlu1 %2861  ;;  %v3107_v23 = vpack.c.bf16 %v3080_v19, %v3079_v58  ;;  %v3003_v28 = vmul.f32 %v5261_v37, %v6665_v29 }
 0x407   : > { %v5263_v12 = vpop.eup %5262  ;;  %v2911_v2 = vmul.f32 0.0078125, %v2862_v21 }
 0x408   : > { %4680 = vmatprep.mubr.bf16.mxu1 %v3107_v23  ;;  %v2864_v57 = vpop.xlane.xlu0 %2863  ;;  %v3004_v42 = vmul.f32 %v5263_v12, %v6668_v61  ;;  %v3042_v62 = vmul.f32 %v6783_v47, %v3003_v28 }
 0x409   : > { %v2943_v33 = vadd.f32 1e-05, %v2911_v2  ;;  %v2912_v43 = vmul.f32 0.0078125, %v2864_v57 }
 0x40a   : > { %v3043_v27 = vmul.f32 %v6783_v47, %v3004_v42  ;;  %v3081_v24 = vadd.f32 %v6791_v45, %v3042_v62 }
 0x40b   : > { %5268 = vrsqrt.f32 %v2943_v33  ;;  %v2944_v14 = vadd.f32 1e-05, %v2912_v43 }
 0x40c   : > { %v3082_v55 = vadd.f32 %v6791_v45, %v3043_v27 }
 0x40d   : > { %v5265_v4 = vpop.eup %5264  ;;  %5270 = vrsqrt.f32 %v2944_v14 }
 0x40e   : > { %v2866_v29 = vpop.xlane.xlu1 %2865  ;;  %v3108_v44 = vpack.c.bf16 %v3082_v55, %v3081_v24  ;;  %v3005_v26 = vmul.f32 %v5265_v4, %v6681_v60 }
 0x40f   : > { %v5267_v10 = vpop.eup %5266  ;;  %v2913_v61 = vmul.f32 0.0078125, %v2866_v29 }
 0x410   : > { %4681 = vmatmul.mubr.bf16.gmra.mrb[72].mxu1 %v3108_v44  ;;  %v2868_v6 = vpop.xlane.xlu0 %2867  ;;  %v3006_v16 = vmul.f32 %v5267_v10, %v6684_v48  ;;  %v3044_v46 = vmul.f32 %v6783_v47, %v3005_v26 }
 0x411   : > { %v2945_v34 = vadd.f32 1e-05, %v2913_v61  ;;  %v2914_v20 = vmul.f32 0.0078125, %v2868_v6 }
 0x412   : > { %v3045_v9 = vmul.f32 %v6783_v47, %v3006_v16  ;;  %v3083_v22 = vadd.f32 %v6791_v45, %v3044_v46 }
 0x413   : > { %5272 = vrsqrt.f32 %v2945_v34  ;;  %v2946_v39 = vadd.f32 1e-05, %v2914_v20 }
 0x414   : > { %v3084_v25 = vadd.f32 %v6791_v45, %v3045_v9 }
 0x415   : > { %v5269_v59 = vpop.eup %5268  ;;  %5274 = vrsqrt.f32 %v2946_v39 }
 0x416   : > { %v2870_v60 = vpop.xlane.xlu1 %2869  ;;  %v3109_v11 = vpack.c.bf16 %v3084_v25, %v3083_v22  ;;  %v3007_v1 = vmul.f32 %v5269_v59, %v6691_v36 }
 0x417   : > { %v5271_v50 = vpop.eup %5270  ;;  %v2915_v48 = vmul.f32 0.0078125, %v2870_v60 }
 0x418   : > { %4684 = vmatprep.mubr.bf16.mxu1 %v3109_v11  ;;  %v2872_v13 = vpop.xlane.xlu0 %2871  ;;  %v3008_v8 = vmul.f32 %v5271_v50, %v6694_v40  ;;  %v3046_v30 = vmul.f32 %v6783_v47, %v3007_v1 }
 0x419   : > { %v2947_v17 = vadd.f32 1e-05, %v2915_v48  ;;  %v2916_v38 = vmul.f32 0.0078125, %v2872_v13 }
 0x41a   : > { %v3047_v49 = vmul.f32 %v6783_v47, %v3008_v8  ;;  %v3085_v19 = vadd.f32 %v6791_v45, %v3046_v30 }
 0x41b   : > { %5276 = vrsqrt.f32 %v2947_v17  ;;  %v2948_v58 = vadd.f32 1e-05, %v2916_v38 }
 0x41c   : > { %v3086_v37 = vadd.f32 %v6791_v45, %v3047_v49 }
 0x41d   : > { %v5273_v21 = vpop.eup %5272  ;;  %5278 = vrsqrt.f32 %v2948_v58 }
 0x41e   : > { %v2874_v36 = vpop.xlane.xlu1 %2873  ;;  %v3110_v23 = vpack.c.bf16 %v3086_v37, %v3085_v19  ;;  %v3009_v28 = vmul.f32 %v5273_v21, %v6701_v63 }
 0x41f   : > { %v5275_v12 = vpop.eup %5274  ;;  %v2917_v40 = vmul.f32 0.0078125, %v2874_v36 }
 0x420   : > { %4685 = vmatmul.mubr.bf16.gmra.mrb[76].mxu1 %v3110_v23  ;;  %v2876_v2 = vpop.xlane.xlu0 %2875  ;;  %v3010_v57 = vmul.f32 %v5275_v12, %v6704_v52  ;;  %v3048_v42 = vmul.f32 %v6783_v47, %v3009_v28 }
 0x421   : > { %v2949_v62 = vadd.f32 1e-05, %v2917_v40  ;;  %v2918_v33 = vmul.f32 0.0078125, %v2876_v2 }
 0x422   : > { %v3049_v43 = vmul.f32 %v6783_v47, %v3010_v57  ;;  %v3087_v14 = vadd.f32 %v6791_v45, %v3048_v42 }
 0x423   : > { %5280 = vrsqrt.f32 %v2949_v62  ;;  %v2950_v27 = vadd.f32 1e-05, %v2918_v33 }
 0x424   : > { %v3088_v24 = vadd.f32 %v6791_v45, %v3049_v43 }
 0x425   : > { %v5277_v55 = vpop.eup %5276  ;;  %5282 = vrsqrt.f32 %v2950_v27 }
 0x426   : > { %v2878_v63 = vpop.xlane.xlu1 %2877  ;;  %v3111_v4 = vpack.c.bf16 %v3088_v24, %v3087_v14  ;;  %v3011_v29 = vmul.f32 %v5277_v55, %v6711_v0 }
 0x427   : > { %v5279_v44 = vpop.eup %5278  ;;  %v2919_v52 = vmul.f32 0.0078125, %v2878_v63 }
 0x428   : > { %4688 = vmatprep.mubr.bf16.mxu1 %v3111_v4  ;;  %v2880_v26 = vpop.xlane.xlu0 %2879  ;;  %v3012_v10 = vmul.f32 %v5279_v44, %v6714_v3  ;;  %v3050_v61 = vmul.f32 %v6783_v47, %v3011_v29 }
 0x429   : > { %v2951_v6 = vadd.f32 1e-05, %v2919_v52  ;;  %v2920_v16 = vmul.f32 0.0078125, %v2880_v26 }
 0x42a   : > { %v3051_v46 = vmul.f32 %v6783_v47, %v3012_v10  ;;  %v3089_v20 = vadd.f32 %v6791_v45, %v3050_v61 }
 0x42b   : > { %5284 = vrsqrt.f32 %v2951_v6  ;;  %v2952_v34 = vadd.f32 1e-05, %v2920_v16 }
 0x42c   : > { %v3090_v9 = vadd.f32 %v6791_v45, %v3051_v46 }
 0x42d   : > { %v5281_v39 = vpop.eup %5280  ;;  %5286 = vrsqrt.f32 %v2952_v34 }
 0x42e   : > { %v2882_v0 = vpop.xlane.xlu1 %2881  ;;  %v3112_v22 = vpack.c.bf16 %v3090_v9, %v3089_v20  ;;  %v3013_v25 = vmul.f32 %v5281_v39, %v6721_v18 }
 0x42f   : > { %v5283_v59 = vpop.eup %5282  ;;  %v2921_v3 = vmul.f32 0.0078125, %v2882_v0 }
 0x430   : > { %4689 = vmatmul.mubr.bf16.gmra.mrb[80].mxu1 %v3112_v22  ;;  %v2884_v60 = vpop.xlane.xlu0 %2883  ;;  %v3014_v11 = vmul.f32 %v5283_v59, %v6724_v35  ;;  %v3052_v1 = vmul.f32 %v6783_v47, %v3013_v25 }
 0x431   : > { %v2953_v50 = vadd.f32 1e-05, %v2921_v3  ;;  %v2922_v48 = vmul.f32 0.0078125, %v2884_v60 }
 0x432   : > { %v3053_v13 = vmul.f32 %v6783_v47, %v3014_v11  ;;  %v3091_v30 = vadd.f32 %v6791_v45, %v3052_v1 }
 0x433   : > { %5288 = vrsqrt.f32 %v2953_v50  ;;  %v2954_v8 = vadd.f32 1e-05, %v2922_v48  ;;  %v5045_v48 = vld [vmem:[%s7176_s11 + $0x8] sm:$0xff]  }
 0x434   : > { %v3092_v17 = vadd.f32 %v6791_v45, %v3053_v13 }
 0x435   : > { %v5285_v38 = vpop.eup %5284  ;;  %5290 = vrsqrt.f32 %v2954_v8 }
 0x436   : > { %v2886_v18 = vpop.xlane.xlu1 %2885  ;;  %v3113_v49 = vpack.c.bf16 %v3092_v17, %v3091_v30  ;;  %v3015_v58 = vmul.f32 %v5285_v38, %v6731_v15  ;;  %v5046_v38 = vld [vmem:[%s7176_s11 + $0x10] sm:$0xff]  }
 0x437   : > { %v5287_v19 = vpop.eup %5286  ;;  %v2923_v35 = vmul.f32 0.0078125, %v2886_v18 }
 0x438   : > { %4692 = vmatprep.mubr.bf16.mxu1 %v3113_v49  ;;  %v2888_v37 = vpop.xlane.xlu0 %2887  ;;  %v3016_v21 = vmul.f32 %v5287_v19, %v6734_v5  ;;  %v3054_v36 = vmul.f32 %v6783_v47, %v3015_v58  ;;  %v5047_v19 = vld [vmem:[%s7176_s11 + $0x18] sm:$0xff]  }
 0x439   : > { %v2955_v23 = vadd.f32 1e-05, %v2923_v35  ;;  %v2924_v28 = vmul.f32 0.0078125, %v2888_v37 }
 0x43a   : > { %v3055_v12 = vmul.f32 %v6783_v47, %v3016_v21  ;;  %v3093_v2 = vadd.f32 %v6791_v45, %v3054_v36 }
 0x43b   : > { %5292 = vrsqrt.f32 %v2955_v23  ;;  %v2956_v40 = vadd.f32 1e-05, %v2924_v28 }
 0x43c   : > { %v3094_v57 = vadd.f32 %v6791_v45, %v3055_v12 }
 0x43d   : > { %v5289_v42 = vpop.eup %5288  ;;  %5294 = vrsqrt.f32 %v2956_v40 }
 0x43e   : > { %v2890_v15 = vpop.xlane.xlu1 %2889  ;;  %v3114_v62 = vpack.c.bf16 %v3094_v57, %v3093_v2  ;;  %v3017_v33 = vmul.f32 %v5289_v42, %v6741_v53 }
 0x43f   : > { %v5291_v43 = vpop.eup %5290  ;;  %v2925_v5 = vmul.f32 0.0078125, %v2890_v15 }
 0x440   : > { %4693 = vmatmul.mubr.bf16.gmra.mrb[84].mxu1 %v3114_v62  ;;  %v2892_v27 = vpop.xlane.xlu0 %2891  ;;  %v3018_v14 = vmul.f32 %v5291_v43, %v6744_v56  ;;  %v3056_v24 = vmul.f32 %v6783_v47, %v3017_v33 }
 0x441   : > { %v2957_v55 = vadd.f32 1e-05, %v2925_v5  ;;  %v2926_v63 = vmul.f32 0.0078125, %v2892_v27 }
 0x442   : > { %v3057_v4 = vmul.f32 %v6783_v47, %v3018_v14  ;;  %v3095_v44 = vadd.f32 %v6791_v45, %v3056_v24 }
 0x443   : > { %5296 = vrsqrt.f32 %v2957_v55  ;;  %v2958_v29 = vadd.f32 1e-05, %v2926_v63 }
 0x444   : > { %v3096_v52 = vadd.f32 %v6791_v45, %v3057_v4 }
 0x445   : > { %v5293_v26 = vpop.eup %5292  ;;  %5298 = vrsqrt.f32 %v2958_v29 }
 0x446   : > { %v2894_v53 = vpop.xlane.xlu1 %2893  ;;  %v3115_v10 = vpack.c.bf16 %v3096_v52, %v3095_v44  ;;  %v3019_v61 = vmul.f32 %v5293_v26, %v6751_v51 }
 0x447   : > { %v5295_v6 = vpop.eup %5294  ;;  %v2927_v56 = vmul.f32 0.0078125, %v2894_v53 }
 0x448   : > { %4696 = vmatprep.mubr.bf16.mxu1 %v3115_v10  ;;  %v2896_v16 = vpop.xlane.xlu0 %2895  ;;  %v3020_v46 = vmul.f32 %v5295_v6, %v6754_v31  ;;  %v3058_v34 = vmul.f32 %v6783_v47, %v3019_v61  ;;  %v5044_v31 = vld [vmem:[%s7176_s11] sm:$0xff]  }
 0x449   : > { %v2959_v20 = vadd.f32 1e-05, %v2927_v56  ;;  %v2928_v9 = vmul.f32 0.0078125, %v2896_v16  ;;  %4704 = vmatprep.subr.bf16.mxu1 %v5044_v31 }
 0x44a   : > { %v3059_v39 = vmul.f32 %v6783_v47, %v3020_v46  ;;  %v3097_v22 = vadd.f32 %v6791_v45, %v3058_v34  ;;  %4705 = vmatpush3.bf16.msra.mxu1 %v5044_v31 }
 0x44b   : > { %5300 = vrsqrt.f32 %v2959_v20  ;;  %v2960_v0 = vadd.f32 1e-05, %v2928_v9  ;;  %4706 = vmatprep.subr.bf16.mxu1 %v5045_v48 }
 0x44c   : > { %v3098_v25 = vadd.f32 %v6791_v45, %v3059_v39 }
 0x44d   : > { %v5297_v59 = vpop.eup %5296  ;;  %5302 = vrsqrt.f32 %v2960_v0 }
 0x44e   : > { %v3116_v51 = vpack.c.bf16 %v3098_v25, %v3097_v22  ;;  %v3021_v3 = vmul.f32 %v5297_v59, %v6761_v7  ;;  %4707 = vmatpush3.bf16.msra.mxu1 %v5045_v48 }
 0x44f   : > { %v5299_v60 = vpop.eup %5298  ;;  %4708 = vmatprep.subr.bf16.mxu1 %v5046_v38 }
 0x450   : > { %4697 = vmatmul.mubr.bf16.gmra.mrb[88].mxu1 %v3116_v51  ;;  %v3022_v11 = vmul.f32 %v5299_v60, %v6764_v32  ;;  %v3060_v1 = vmul.f32 %v6783_v47, %v3021_v3 }
 0x452   : > { %v3061_v50 = vmul.f32 %v6783_v47, %v3022_v11  ;;  %v3099_v7 = vadd.f32 %v6791_v45, %v3060_v1  ;;  %4709 = vmatpush3.bf16.msra.mxu1 %v5046_v38 }
 0x453   : > { %4710 = vmatprep.subr.bf16.mxu1 %v5047_v19 }
 0x454   : > { %v3100_v13 = vadd.f32 %v6791_v45, %v3061_v50 }
 0x455   : > { %v5301_v8 = vpop.eup %5300 }
 0x456   : > { %v3117_v30 = vpack.c.bf16 %v3100_v13, %v3099_v7  ;;  %v3023_v17 = vmul.f32 %v5301_v8, %v6771_v54  ;;  %4711 = vmatpush3.bf16.msra.mxu1 %v5047_v19 }
 0x457   : > { %v5303_v32 = vpop.eup %5302 }
 0x458   : > { %4700 = vmatprep.mubr.bf16.mxu1 %v3117_v30  ;;  %v3024_v18 = vmul.f32 %v5303_v32, %v6774_v41  ;;  %v3062_v49 = vmul.f32 %v6783_v47, %v3023_v17  ;;  %v6901_v41 = vld [vmem:[%s7175_s10] ss:$0 sm:$0xff] }
 0x45a   : > { %v3063_v58 = vmul.f32 %v6783_v47, %v3024_v18  ;;  %v3101_v54 = vadd.f32 %v6791_v45, %v3062_v49 }
 0x45c   : > { %v3102_v35 = vadd.f32 %v6791_v45, %v3063_v58 }
 0x45e   : > { %v3118_v37 = vpack.c.bf16 %v3102_v35, %v3101_v54 }
 0x460   : > { %4701 = vmatmul.mubr.bf16.gmra.mrb[92].mxu1 %v3118_v37 }
 0x4c5   : > { %v4674_v21 = vpop.f32.mrb[64].mxu1 }
 0x4c6   : > { %v3233_v47 = vadd.f32 %v4674_v21, %v6901_v41  ;;  %v3224_v36 = vpop.f32.mrb[65].mxu1 }
 0x4c7   : > { %v3225_v23 = vadd.f32 %v6901_v41, %v3224_v36  ;;  %v4675_v28 = vpop.f32.mrb[66].mxu1 }
 0x4c8   : > { %v3353_v12 = vmul.f32 0.5, %v3233_v47  ;;  %v3236_v40 = vadd.f32 %v4675_v28, %v6901_v41  ;;  %v3227_v45 = vpop.f32.mrb[67].mxu1 }
 0x4c9   : > { %v3351_v2 = vmul.f32 0.5, %v3225_v23  ;;  %v3228_v57 = vadd.f32 %v6901_v41, %v3227_v45 }
 0x4ca   : > { %5304 = vtanh.f32 %v3353_v12  ;;  %v3354_v42 = vmul.f32 0.5, %v3236_v40 }
 0x4cb   : > { %5306 = vtanh.f32 %v3351_v2  ;;  %v3352_v15 = vmul.f32 0.5, %v3228_v57 }
 0x4cc   : > { %5308 = vtanh.f32 %v3354_v42 }
 0x4cd   : > { %5310 = vtanh.f32 %v3352_v15 }
 0x4d3   : > { %v4678_v62 = vpop.f32.mrb[68].mxu1 }
 0x4d4   : > { %v5305_v33 = vpop.eup %5304  ;;  %v3249_v43 = vadd.f32 %v4678_v62, %v6901_v41  ;;  %v3240_v5 = vpop.f32.mrb[69].mxu1 }
 0x4d5   : > { %v5307_v27 = vpop.eup %5306  ;;  %v3417_v14 = vmul.f32 0.5, %v5305_v33  ;;  %v3241_v24 = vadd.f32 %v6901_v41, %v3240_v5  ;;  %v4679_v55 = vpop.f32.mrb[70].mxu1 }
 0x4d6   : > { %v5309_v63 = vpop.eup %5308  ;;  %v3415_v4 = vmul.f32 0.5, %v5307_v27  ;;  %v3357_v29 = vmul.f32 0.5, %v3249_v43  ;;  %v3252_v44 = vadd.f32 %v4679_v55, %v6901_v41  ;;  %v3243_v52 = vpop.f32.mrb[71].mxu1 }
 0x4d7   : > { %v5311_v26 = vpop.eup %5310  ;;  %v3449_v53 = vadd.f32 0.5, %v3417_v14  ;;  %v3418_v10 = vmul.f32 0.5, %v5309_v63  ;;  %v3355_v61 = vmul.f32 0.5, %v3241_v24  ;;  %v3244_v6 = vadd.f32 %v6901_v41, %v3243_v52 }
 0x4d8   : > { %v3447_v56 = vadd.f32 0.5, %v3415_v4  ;;  %v3416_v16 = vmul.f32 0.5, %v5311_v26  ;;  %5312 = vtanh.f32 %v3357_v29  ;;  %v3358_v46 = vmul.f32 0.5, %v3252_v44 }
 0x4d9   : > { %v3450_v34 = vadd.f32 0.5, %v3418_v10  ;;  %5314 = vtanh.f32 %v3355_v61  ;;  %v3356_v20 = vmul.f32 0.5, %v3244_v6  ;;  %v3481_v39 = vmul.f32 %v3449_v53, %v3233_v47 }
 0x4da   : > { %v3448_v9 = vadd.f32 0.5, %v3416_v16  ;;  %5316 = vtanh.f32 %v3358_v46  ;;  %v3479_v22 = vmul.f32 %v3447_v56, %v3225_v23 }
 0x4db   : > { %v3482_v0 = vmul.f32 %v3450_v34, %v3236_v40  ;;  %5318 = vtanh.f32 %v3356_v20 }
 0x4dc   : > { %v3480_v25 = vmul.f32 %v3448_v9, %v3228_v57 }
 0x4dd   : > { %v3512_v59 = vpack.c.bf16 %v3482_v0, %v3481_v39 }
 0x4de   : > { %v3511_v51 = vpack.c.bf16 %v3480_v25, %v3479_v22 }
 0x4e0   : > { %4712 = vmatprep.mubr.msk.bf16.mxu1 %vm3566_vm0, %v3511_v51 }
 0x4e1   : > { %4713 = vmatmul.mubr.msk.bf16.vlgmr.msra.gmra.mrb[96].mxu1 %vm3566_vm0, %v3512_v59 }
 0x4e2   : > { %v5313_v3 = vpop.eup %5312 }
 0x4e3   : > { %v5315_v60 = vpop.eup %5314  ;;  %v3421_v31 = vmul.f32 0.5, %v5313_v3  ;;  %v4682_v11 = vpop.f32.mrb[72].mxu1 }
 0x4e4   : > { %v5317_v1 = vpop.eup %5316  ;;  %v3419_v50 = vmul.f32 0.5, %v5315_v60  ;;  %v3265_v48 = vadd.f32 %v4682_v11, %v6901_v41  ;;  %v3256_v7 = vpop.f32.mrb[73].mxu1 }
 0x4e5   : > { %v5319_v13 = vpop.eup %5318  ;;  %v3453_v8 = vadd.f32 0.5, %v3421_v31  ;;  %v3422_v30 = vmul.f32 0.5, %v5317_v1  ;;  %v3257_v17 = vadd.f32 %v6901_v41, %v3256_v7  ;;  %v4683_v32 = vpop.f32.mrb[74].mxu1 }
 0x4e6   : > { %v3451_v38 = vadd.f32 0.5, %v3419_v50  ;;  %v3420_v18 = vmul.f32 0.5, %v5319_v13  ;;  %v3361_v49 = vmul.f32 0.5, %v3265_v48  ;;  %v3268_v58 = vadd.f32 %v4683_v32, %v6901_v41  ;;  %v3259_v19 = vpop.f32.mrb[75].mxu1 }
 0x4e7   : > { %v3454_v54 = vadd.f32 0.5, %v3422_v30  ;;  %v3359_v35 = vmul.f32 0.5, %v3257_v17  ;;  %v3260_v37 = vadd.f32 %v6901_v41, %v3259_v19  ;;  %v3485_v36 = vmul.f32 %v3453_v8, %v3249_v43 }
 0x4e8   : > { %v3452_v21 = vadd.f32 0.5, %v3420_v18  ;;  %5320 = vtanh.f32 %v3361_v49  ;;  %v3362_v47 = vmul.f32 0.5, %v3268_v58  ;;  %v3483_v12 = vmul.f32 %v3451_v38, %v3241_v24 }
 0x4e9   : > { %v3486_v23 = vmul.f32 %v3454_v54, %v3252_v44  ;;  %5322 = vtanh.f32 %v3359_v35  ;;  %v3360_v28 = vmul.f32 0.5, %v3260_v37 }
 0x4ea   : > { %v3484_v40 = vmul.f32 %v3452_v21, %v3244_v6  ;;  %5324 = vtanh.f32 %v3362_v47 }
 0x4eb   : > { %v3514_v45 = vpack.c.bf16 %v3486_v23, %v3485_v36  ;;  %5326 = vtanh.f32 %v3360_v28 }
 0x4ec   : > { %v3513_v2 = vpack.c.bf16 %v3484_v40, %v3483_v12 }
 0x4ee   : > { %4716 = vmatprep.mubr.msk.bf16.mxu1 %vm3566_vm0, %v3513_v2 }
 0x4ef   : > { %4717 = vmatmul.mubr.msk.bf16.gmra.mrb[100].mxu1 %vm3566_vm0, %v3514_v45 }
 0x4f2   : > { %v5321_v57 = vpop.eup %5320 }
 0x4f3   : > { %v5323_v42 = vpop.eup %5322  ;;  %v3425_v15 = vmul.f32 0.5, %v5321_v57  ;;  %v4686_v62 = vpop.f32.mrb[76].mxu1 }
 0x4f4   : > { %v5325_v33 = vpop.eup %5324  ;;  %v3423_v5 = vmul.f32 0.5, %v5323_v42  ;;  %v3281_v43 = vadd.f32 %v4686_v62, %v6901_v41  ;;  %v3272_v27 = vpop.f32.mrb[77].mxu1 }
 0x4f5   : > { %v5327_v14 = vpop.eup %5326  ;;  %v3457_v24 = vadd.f32 0.5, %v3425_v15  ;;  %v3426_v55 = vmul.f32 0.5, %v5325_v33  ;;  %v3273_v63 = vadd.f32 %v6901_v41, %v3272_v27  ;;  %v4687_v4 = vpop.f32.mrb[78].mxu1 }
 0x4f6   : > { %v3455_v29 = vadd.f32 0.5, %v3423_v5  ;;  %v3424_v44 = vmul.f32 0.5, %v5327_v14  ;;  %v3365_v52 = vmul.f32 0.5, %v3281_v43  ;;  %v3284_v26 = vadd.f32 %v4687_v4, %v6901_v41  ;;  %v3275_v53 = vpop.f32.mrb[79].mxu1 }
 0x4f7   : > { %v3458_v10 = vadd.f32 0.5, %v3426_v55  ;;  %v3363_v61 = vmul.f32 0.5, %v3273_v63  ;;  %v3276_v6 = vadd.f32 %v6901_v41, %v3275_v53  ;;  %v3489_v46 = vmul.f32 %v3457_v24, %v3265_v48 }
 0x4f8   : > { %v3456_v56 = vadd.f32 0.5, %v3424_v44  ;;  %5328 = vtanh.f32 %v3365_v52  ;;  %v3366_v16 = vmul.f32 0.5, %v3284_v26  ;;  %v3487_v9 = vmul.f32 %v3455_v29, %v3257_v17 }
 0x4f9   : > { %v3490_v34 = vmul.f32 %v3458_v10, %v3268_v58  ;;  %5330 = vtanh.f32 %v3363_v61  ;;  %v3364_v20 = vmul.f32 0.5, %v3276_v6 }
 0x4fa   : > { %v3488_v39 = vmul.f32 %v3456_v56, %v3260_v37  ;;  %5332 = vtanh.f32 %v3366_v16 }
 0x4fb   : > { %v3516_v0 = vpack.c.bf16 %v3490_v34, %v3489_v46  ;;  %5334 = vtanh.f32 %v3364_v20 }
 0x4fc   : > { %v3515_v22 = vpack.c.bf16 %v3488_v39, %v3487_v9 }
 0x4fe   : > { %4720 = vmatprep.mubr.msk.bf16.mxu1 %vm3566_vm0, %v3515_v22 }
 0x4ff   : > { %4721 = vmatmul.mubr.msk.bf16.gmra.mrb[104].mxu1 %vm3566_vm0, %v3516_v0 }
 0x502   : > { %v5329_v25 = vpop.eup %5328 }
 0x503   : > { %v5331_v59 = vpop.eup %5330  ;;  %v3429_v51 = vmul.f32 0.5, %v5329_v25  ;;  %v4690_v3 = vpop.f32.mrb[80].mxu1 }
 0x504   : > { %v5333_v60 = vpop.eup %5332  ;;  %v3427_v31 = vmul.f32 0.5, %v5331_v59  ;;  %v3297_v11 = vadd.f32 %v4690_v3, %v6901_v41  ;;  %v3288_v1 = vpop.f32.mrb[81].mxu1 }
 0x505   : > { %v5335_v50 = vpop.eup %5334  ;;  %v3461_v48 = vadd.f32 0.5, %v3429_v51  ;;  %v3430_v7 = vmul.f32 0.5, %v5333_v60  ;;  %v3289_v13 = vadd.f32 %v6901_v41, %v3288_v1  ;;  %v4691_v8 = vpop.f32.mrb[82].mxu1 }
 0x506   : > { %v3459_v30 = vadd.f32 0.5, %v3427_v31  ;;  %v3428_v17 = vmul.f32 0.5, %v5335_v50  ;;  %v3369_v32 = vmul.f32 0.5, %v3297_v11  ;;  %v3300_v38 = vadd.f32 %v4691_v8, %v6901_v41  ;;  %v3291_v18 = vpop.f32.mrb[83].mxu1 }
 0x507   : > { %v3462_v49 = vadd.f32 0.5, %v3430_v7  ;;  %v3367_v58 = vmul.f32 0.5, %v3289_v13  ;;  %v3292_v19 = vadd.f32 %v6901_v41, %v3291_v18  ;;  %v3493_v37 = vmul.f32 %v3461_v48, %v3281_v43 }
 0x508   : > { %v3460_v54 = vadd.f32 0.5, %v3428_v17  ;;  %5336 = vtanh.f32 %v3369_v32  ;;  %v3370_v35 = vmul.f32 0.5, %v3300_v38  ;;  %v3491_v36 = vmul.f32 %v3459_v30, %v3273_v63 }
 0x509   : > { %v3494_v21 = vmul.f32 %v3462_v49, %v3284_v26  ;;  %5338 = vtanh.f32 %v3367_v58  ;;  %v3368_v47 = vmul.f32 0.5, %v3292_v19 }
 0x50a   : > { %v3492_v23 = vmul.f32 %v3460_v54, %v3276_v6  ;;  %5340 = vtanh.f32 %v3370_v35 }
 0x50b   : > { %v3518_v28 = vpack.c.bf16 %v3494_v21, %v3493_v37  ;;  %5342 = vtanh.f32 %v3368_v47 }
 0x50c   : > { %v3517_v12 = vpack.c.bf16 %v3492_v23, %v3491_v36 }
 0x50e   : > { %4724 = vmatprep.mubr.msk.bf16.mxu1 %vm3566_vm0, %v3517_v12 }
 0x50f   : > { %4725 = vmatmul.mubr.msk.bf16.gmra.mrb[108].mxu1 %vm3566_vm0, %v3518_v28 }
 0x512   : > { %v5337_v40 = vpop.eup %5336 }
 0x513   : > { %v5339_v45 = vpop.eup %5338  ;;  %v3433_v2 = vmul.f32 0.5, %v5337_v40  ;;  %v4694_v57 = vpop.f32.mrb[84].mxu1 }
 0x514   : > { %v5341_v42 = vpop.eup %5340  ;;  %v3431_v15 = vmul.f32 0.5, %v5339_v45  ;;  %v3313_v62 = vadd.f32 %v4694_v57, %v6901_v41  ;;  %v3304_v33 = vpop.f32.mrb[85].mxu1 }
 0x515   : > { %v5343_v5 = vpop.eup %5342  ;;  %v3465_v43 = vadd.f32 0.5, %v3433_v2  ;;  %v3434_v27 = vmul.f32 0.5, %v5341_v42  ;;  %v3305_v14 = vadd.f32 %v6901_v41, %v3304_v33  ;;  %v4695_v24 = vpop.f32.mrb[86].mxu1 }
 0x516   : > { %v3463_v55 = vadd.f32 0.5, %v3431_v15  ;;  %v3432_v63 = vmul.f32 0.5, %v5343_v5  ;;  %v3373_v4 = vmul.f32 0.5, %v3313_v62  ;;  %v3316_v29 = vadd.f32 %v4695_v24, %v6901_v41  ;;  %v3307_v44 = vpop.f32.mrb[87].mxu1 }
 0x517   : > { %v3466_v52 = vadd.f32 0.5, %v3434_v27  ;;  %v3371_v26 = vmul.f32 0.5, %v3305_v14  ;;  %v3308_v53 = vadd.f32 %v6901_v41, %v3307_v44  ;;  %v3497_v6 = vmul.f32 %v3465_v43, %v3297_v11 }
 0x518   : > { %v3464_v10 = vadd.f32 0.5, %v3432_v63  ;;  %5344 = vtanh.f32 %v3373_v4  ;;  %v3374_v61 = vmul.f32 0.5, %v3316_v29  ;;  %v3495_v46 = vmul.f32 %v3463_v55, %v3289_v13 }
 0x519   : > { %v3498_v56 = vmul.f32 %v3466_v52, %v3300_v38  ;;  %5346 = vtanh.f32 %v3371_v26  ;;  %v3372_v16 = vmul.f32 0.5, %v3308_v53 }
 0x51a   : > { %v3496_v34 = vmul.f32 %v3464_v10, %v3292_v19  ;;  %5348 = vtanh.f32 %v3374_v61 }
 0x51b   : > { %v3520_v20 = vpack.c.bf16 %v3498_v56, %v3497_v6  ;;  %5350 = vtanh.f32 %v3372_v16 }
 0x51c   : > { %v3519_v9 = vpack.c.bf16 %v3496_v34, %v3495_v46 }
 0x51e   : > { %4728 = vmatprep.mubr.msk.bf16.mxu1 %vm3566_vm0, %v3519_v9 }
 0x51f   : > { %4729 = vmatmul.mubr.msk.bf16.gmra.mrb[112].mxu1 %vm3566_vm0, %v3520_v20 }
 0x522   : > { %v5345_v39 = vpop.eup %5344 }
 0x523   : > { %v5347_v0 = vpop.eup %5346  ;;  %v3437_v22 = vmul.f32 0.5, %v5345_v39  ;;  %v4698_v25 = vpop.f32.mrb[88].mxu1 }
 0x524   : > { %v5349_v59 = vpop.eup %5348  ;;  %v3435_v51 = vmul.f32 0.5, %v5347_v0  ;;  %v3329_v3 = vadd.f32 %v4698_v25, %v6901_v41  ;;  %v3320_v60 = vpop.f32.mrb[89].mxu1 }
 0x525   : > { %v5351_v31 = vpop.eup %5350  ;;  %v3469_v11 = vadd.f32 0.5, %v3437_v22  ;;  %v3438_v1 = vmul.f32 0.5, %v5349_v59  ;;  %v3321_v50 = vadd.f32 %v6901_v41, %v3320_v60  ;;  %v4699_v48 = vpop.f32.mrb[90].mxu1 }
 0x526   : > { %v3467_v7 = vadd.f32 0.5, %v3435_v51  ;;  %v3436_v13 = vmul.f32 0.5, %v5351_v31  ;;  %v3377_v8 = vmul.f32 0.5, %v3329_v3  ;;  %v3332_v30 = vadd.f32 %v4699_v48, %v6901_v41  ;;  %v3323_v17 = vpop.f32.mrb[91].mxu1 }
 0x527   : > { %v3470_v32 = vadd.f32 0.5, %v3438_v1  ;;  %v3375_v38 = vmul.f32 0.5, %v3321_v50  ;;  %v3324_v18 = vadd.f32 %v6901_v41, %v3323_v17  ;;  %v3501_v19 = vmul.f32 %v3469_v11, %v3313_v62 }
 0x528   : > { %v3468_v49 = vadd.f32 0.5, %v3436_v13  ;;  %5352 = vtanh.f32 %v3377_v8  ;;  %v3378_v58 = vmul.f32 0.5, %v3332_v30  ;;  %v3499_v37 = vmul.f32 %v3467_v7, %v3305_v14  ;;  %v6954_v13 = vld [vmem:[%s7177_s12] ss:$0 sm:$0xff] }
 0x529   : > { %v3502_v54 = vmul.f32 %v3470_v32, %v3316_v29  ;;  %5354 = vtanh.f32 %v3375_v38  ;;  %v3376_v35 = vmul.f32 0.5, %v3324_v18 }
 0x52a   : > { %v3500_v21 = vmul.f32 %v3468_v49, %v3308_v53  ;;  %5356 = vtanh.f32 %v3378_v58 }
 0x52b   : > { %v3522_v47 = vpack.c.bf16 %v3502_v54, %v3501_v19  ;;  %5358 = vtanh.f32 %v3376_v35 }
 0x52c   : > { %v3521_v36 = vpack.c.bf16 %v3500_v21, %v3499_v37 }
 0x52e   : > { %4732 = vmatprep.mubr.msk.bf16.mxu1 %vm3566_vm0, %v3521_v36 }
 0x52f   : > { %4733 = vmatmul.mubr.msk.bf16.gmra.mrb[116].mxu1 %vm3566_vm0, %v3522_v47 }
 0x532   : > { %v5353_v23 = vpop.eup %5352 }
 0x533   : > { %v5355_v28 = vpop.eup %5354  ;;  %v3441_v12 = vmul.f32 0.5, %v5353_v23  ;;  %v4702_v40 = vpop.f32.mrb[92].mxu1 }
 0x534   : > { %v5357_v45 = vpop.eup %5356  ;;  %v3439_v2 = vmul.f32 0.5, %v5355_v28  ;;  %v3345_v57 = vadd.f32 %v4702_v40, %v6901_v41  ;;  %v3336_v42 = vpop.f32.mrb[93].mxu1 }
 0x535   : > { %v5359_v15 = vpop.eup %5358  ;;  %v3473_v62 = vadd.f32 0.5, %v3441_v12  ;;  %v3442_v33 = vmul.f32 0.5, %v5357_v45  ;;  %v3337_v5 = vadd.f32 %v6901_v41, %v3336_v42  ;;  %v4703_v43 = vpop.f32.mrb[94].mxu1 }
 0x536   : > { %v3471_v27 = vadd.f32 0.5, %v3439_v2  ;;  %v3440_v14 = vmul.f32 0.5, %v5359_v15  ;;  %v3381_v24 = vmul.f32 0.5, %v3345_v57  ;;  %v3348_v55 = vadd.f32 %v4703_v43, %v6901_v41  ;;  %v3339_v63 = vpop.f32.mrb[95].mxu1 }
 0x537   : > { %v3474_v4 = vadd.f32 0.5, %v3442_v33  ;;  %v3379_v29 = vmul.f32 0.5, %v3337_v5  ;;  %v3340_v44 = vadd.f32 %v6901_v41, %v3339_v63  ;;  %v3505_v53 = vmul.f32 %v3473_v62, %v3329_v3 }
 0x538   : > { %v3472_v52 = vadd.f32 0.5, %v3440_v14  ;;  %5360 = vtanh.f32 %v3381_v24  ;;  %v3382_v26 = vmul.f32 0.5, %v3348_v55  ;;  %v3503_v6 = vmul.f32 %v3471_v27, %v3321_v50 }
 0x539   : > { %v3506_v10 = vmul.f32 %v3474_v4, %v3332_v30  ;;  %5362 = vtanh.f32 %v3379_v29  ;;  %v3380_v61 = vmul.f32 0.5, %v3340_v44  ;;  %v6967_v4 = vld [vmem:[%s7178_s13] ss:$0 sm:$0xff] }
 0x53a   : > { %v3504_v56 = vmul.f32 %v3472_v52, %v3324_v18  ;;  %5364 = vtanh.f32 %v3382_v26 }
 0x53b   : > { %v3524_v16 = vpack.c.bf16 %v3506_v10, %v3505_v53  ;;  %5366 = vtanh.f32 %v3380_v61 }
 0x53c   : > { %v3523_v46 = vpack.c.bf16 %v3504_v56, %v3503_v6 }
 0x53e   : > { %4736 = vmatprep.mubr.msk.bf16.mxu1 %vm3566_vm0, %v3523_v46 }
 0x53f   : > { %4737 = vmatmul.mubr.msk.bf16.gmra.mrb[120].mxu1 %vm3566_vm0, %v3524_v16 }
 0x542   : > { %v5361_v34 = vpop.eup %5360 }
 0x543   : > { %v5363_v20 = vpop.eup %5362  ;;  %v3445_v41 = vmul.f32 0.5, %v5361_v34 }
 0x544   : > { %v5365_v9 = vpop.eup %5364  ;;  %v3443_v39 = vmul.f32 0.5, %v5363_v20 }
 0x545   : > { %v5367_v0 = vpop.eup %5366  ;;  %v3477_v22 = vadd.f32 0.5, %v3445_v41  ;;  %v3446_v25 = vmul.f32 0.5, %v5365_v9 }
 0x546   : > { %v3475_v59 = vadd.f32 0.5, %v3443_v39  ;;  %v3444_v51 = vmul.f32 0.5, %v5367_v0 }
 0x547   : > { %v3478_v3 = vadd.f32 0.5, %v3446_v25  ;;  %v3509_v31 = vmul.f32 %v3477_v22, %v3345_v57 }
 0x548   : > { %v3476_v60 = vadd.f32 0.5, %v3444_v51  ;;  %v3507_v1 = vmul.f32 %v3475_v59, %v3337_v5 }
 0x549   : > { %v3510_v11 = vmul.f32 %v3478_v3, %v3348_v55 }
 0x54a   : > { %v3508_v50 = vmul.f32 %v3476_v60, %v3340_v44 }
 0x54b   : > { %v3526_v48 = vpack.c.bf16 %v3510_v11, %v3509_v31 }
 0x54c   : > { %v3525_v7 = vpack.c.bf16 %v3508_v50, %v3507_v1 }
 0x54e   : > { %4740 = vmatprep.mubr.msk.bf16.mxu1 %vm3566_vm0, %v3525_v7 }
 0x54f   : > { %4741 = vmatmul.mubr.msk.bf16.gmra.mrb[124].mxu1 %vm3566_vm0, %v3526_v48 }
 0x5b4   : > { %v4714_v8 = vpop.f32.mrb[96].mxu1 }
 0x5b5   : > { %v3658_v30 = vadd.f32 %v4714_v8, %v6954_v13  ;;  %v3649_v17 = vpop.f32.mrb[97].mxu1 }
 0x5b6   : > { %v3650_v32 = vadd.f32 %v6954_v13, %v3649_v17  ;;  %v4715_v38 = vpop.f32.mrb[98].mxu1 }
 0x5b7   : > { %v3778_v18 = vmul.f32 0.5, %v3658_v30  ;;  %v3661_v49 = vadd.f32 %v4715_v38, %v6954_v13  ;;  %v3652_v58 = vpop.f32.mrb[99].mxu1 }
 0x5b8   : > { %v3776_v19 = vmul.f32 0.5, %v3650_v32  ;;  %v3653_v54 = vadd.f32 %v6954_v13, %v3652_v58 }
 0x5b9   : > { %5368 = vtanh.f32 %v3778_v18  ;;  %v3779_v35 = vmul.f32 0.5, %v3661_v49 }
 0x5ba   : > { %5370 = vtanh.f32 %v3776_v19  ;;  %v3777_v37 = vmul.f32 0.5, %v3653_v54 }
 0x5bb   : > { %5372 = vtanh.f32 %v3779_v35 }
 0x5bc   : > { %5374 = vtanh.f32 %v3777_v37 }
 0x5c2   : > { %v4718_v21 = vpop.f32.mrb[100].mxu1 }
 0x5c3   : > { %v5369_v47 = vpop.eup %5368  ;;  %v3674_v36 = vadd.f32 %v4718_v21, %v6954_v13  ;;  %v3665_v23 = vpop.f32.mrb[101].mxu1 }
 0x5c4   : > { %v5371_v28 = vpop.eup %5370  ;;  %v3842_v12 = vmul.f32 0.5, %v5369_v47  ;;  %v3666_v40 = vadd.f32 %v6954_v13, %v3665_v23  ;;  %v4719_v45 = vpop.f32.mrb[102].mxu1 }
 0x5c5   : > { %v5373_v2 = vpop.eup %5372  ;;  %v3840_v57 = vmul.f32 0.5, %v5371_v28  ;;  %v3782_v42 = vmul.f32 0.5, %v3674_v36  ;;  %v3677_v15 = vadd.f32 %v4719_v45, %v6954_v13  ;;  %v3668_v62 = vpop.f32.mrb[103].mxu1 }
 0x5c6   : > { %v5375_v33 = vpop.eup %5374  ;;  %v3874_v5 = vadd.f32 0.5, %v3842_v12  ;;  %v3843_v43 = vmul.f32 0.5, %v5373_v2  ;;  %v3780_v27 = vmul.f32 0.5, %v3666_v40  ;;  %v3669_v14 = vadd.f32 %v6954_v13, %v3668_v62 }
 0x5c7   : > { %v3872_v24 = vadd.f32 0.5, %v3840_v57  ;;  %v3841_v55 = vmul.f32 0.5, %v5375_v33  ;;  %5376 = vtanh.f32 %v3782_v42  ;;  %v3783_v63 = vmul.f32 0.5, %v3677_v15 }
 0x5c8   : > { %v3906_v29 = vmul.f32 %v3874_v5, %v3658_v30  ;;  %v3875_v44 = vadd.f32 0.5, %v3843_v43  ;;  %5378 = vtanh.f32 %v3780_v27  ;;  %v3781_v52 = vmul.f32 0.5, %v3669_v14 }
 0x5c9   : > { %v3904_v26 = vmul.f32 %v3872_v24, %v3650_v32  ;;  %v3873_v53 = vadd.f32 0.5, %v3841_v55  ;;  %5380 = vtanh.f32 %v3783_v63 }
 0x5ca   : > { %v3907_v10 = vmul.f32 %v3875_v44, %v3661_v49  ;;  %5382 = vtanh.f32 %v3781_v52  ;;  %v3945_v61 = vmul.f32 %v6967_v4, %v3906_v29 }
 0x5cb   : > { %v3905_v6 = vmul.f32 %v3873_v53, %v3653_v54  ;;  %v3943_v46 = vmul.f32 %v6967_v4, %v3904_v26 }
 0x5cc   : > { %v3982_v56 = vsel %vm3975_vm1, %v3945_v61, 0.0  ;;  %v3946_v16 = vmul.f32 %v6967_v4, %v3907_v10 }
 0x5cd   : > { %3983 = vadd.xlane.f32.xlu1 %v3982_v56  ;;  %v3944_v20 = vmul.f32 %v6967_v4, %v3905_v6  ;;  %v3976_v41 = vsel %vm3975_vm1, %v3943_v46, 0.0 }
 0x5ce   : > { %v3985_v34 = vsel %vm3975_vm1, %v3946_v16, 0.0 }
 0x5cf   : > { %3986 = vadd.xlane.f32.xlu0 %v3985_v34  ;;  %v3979_v25 = vsel %vm3975_vm1, %v3944_v20, 0.0 }
 0x5d1   : > { %v5377_v9 = vpop.eup %5376  ;;  %3977 = vadd.xlane.f32.xlu1 %v3976_v41 }
 0x5d2   : > { %v5379_v39 = vpop.eup %5378  ;;  %v3846_v0 = vmul.f32 0.5, %v5377_v9  ;;  %v4722_v22 = vpop.f32.mrb[104].mxu1 }
 0x5d3   : > { %v5381_v59 = vpop.eup %5380  ;;  %v3844_v51 = vmul.f32 0.5, %v5379_v39  ;;  %v3690_v3 = vadd.f32 %v4722_v22, %v6954_v13  ;;  %v3681_v60 = vpop.f32.mrb[105].mxu1  ;;  %3980 = vadd.xlane.f32.xlu0 %v3979_v25 }
 0x5d4   : > { %v5383_v31 = vpop.eup %5382  ;;  %v3878_v11 = vadd.f32 0.5, %v3846_v0  ;;  %v3847_v1 = vmul.f32 0.5, %v5381_v59  ;;  %v3682_v50 = vadd.f32 %v6954_v13, %v3681_v60  ;;  %v4723_v48 = vpop.f32.mrb[106].mxu1 }
 0x5d5   : > { %v3876_v7 = vadd.f32 0.5, %v3844_v51  ;;  %v3845_v8 = vmul.f32 0.5, %v5383_v31  ;;  %v3786_v30 = vmul.f32 0.5, %v3690_v3  ;;  %v3693_v17 = vadd.f32 %v4723_v48, %v6954_v13  ;;  %v3684_v32 = vpop.f32.mrb[107].mxu1 }
 0x5d6   : > { %v3910_v38 = vmul.f32 %v3878_v11, %v3674_v36  ;;  %v3879_v18 = vadd.f32 0.5, %v3847_v1  ;;  %v3784_v49 = vmul.f32 0.5, %v3682_v50  ;;  %v3685_v58 = vadd.f32 %v6954_v13, %v3684_v32 }
 0x5d7   : > { %v3908_v19 = vmul.f32 %v3876_v7, %v3666_v40  ;;  %v3877_v54 = vadd.f32 0.5, %v3845_v8  ;;  %5384 = vtanh.f32 %v3786_v30  ;;  %v3787_v35 = vmul.f32 0.5, %v3693_v17 }
 0x5d8   : > { %v3911_v37 = vmul.f32 %v3879_v18, %v3677_v15  ;;  %5386 = vtanh.f32 %v3784_v49  ;;  %v3785_v21 = vmul.f32 0.5, %v3685_v58  ;;  %v3949_v47 = vmul.f32 %v6967_v4, %v3910_v38 }
 0x5d9   : > { %v3909_v23 = vmul.f32 %v3877_v54, %v3669_v14  ;;  %5388 = vtanh.f32 %v3787_v35  ;;  %v3947_v12 = vmul.f32 %v6967_v4, %v3908_v19 }
 0x5da   : > { %5390 = vtanh.f32 %v3785_v21  ;;  %v3994_v28 = vsel %vm3975_vm1, %v3949_v47, 0.0  ;;  %v3950_v36 = vmul.f32 %v6967_v4, %v3911_v37 }
 0x5db   : > { %3995 = vadd.xlane.f32.xlu1 %v3994_v28  ;;  %v3948_v45 = vmul.f32 %v6967_v4, %v3909_v23  ;;  %v3988_v2 = vsel %vm3975_vm1, %v3947_v12, 0.0 }
 0x5dc   : > { %v3997_v40 = vsel %vm3975_vm1, %v3950_v36, 0.0 }
 0x5dd   : > { %3998 = vadd.xlane.f32.xlu0 %v3997_v40  ;;  %v3991_v57 = vsel %vm3975_vm1, %v3948_v45, 0.0 }
 0x5df   : > { %3989 = vadd.xlane.f32.xlu1 %v3988_v2 }
 0x5e1   : > { %v5385_v42 = vpop.eup %5384  ;;  %3992 = vadd.xlane.f32.xlu0 %v3991_v57 }
 0x5e2   : > { %v5387_v15 = vpop.eup %5386  ;;  %v3850_v62 = vmul.f32 0.5, %v5385_v42  ;;  %v4726_v33 = vpop.f32.mrb[108].mxu1 }
 0x5e3   : > { %v5389_v5 = vpop.eup %5388  ;;  %v3848_v43 = vmul.f32 0.5, %v5387_v15  ;;  %v3706_v27 = vadd.f32 %v4726_v33, %v6954_v13  ;;  %v3697_v14 = vpop.f32.mrb[109].mxu1 }
 0x5e4   : > { %v5391_v24 = vpop.eup %5390  ;;  %v3882_v55 = vadd.f32 0.5, %v3850_v62  ;;  %v3851_v63 = vmul.f32 0.5, %v5389_v5  ;;  %v3698_v29 = vadd.f32 %v6954_v13, %v3697_v14  ;;  %v4727_v44 = vpop.f32.mrb[110].mxu1 }
 0x5e5   : > { %v3880_v52 = vadd.f32 0.5, %v3848_v43  ;;  %v3849_v26 = vmul.f32 0.5, %v5391_v24  ;;  %v3790_v53 = vmul.f32 0.5, %v3706_v27  ;;  %v3709_v10 = vadd.f32 %v4727_v44, %v6954_v13  ;;  %v3700_v61 = vpop.f32.mrb[111].mxu1 }
 0x5e6   : > { %v3914_v6 = vmul.f32 %v3882_v55, %v3690_v3  ;;  %v3883_v56 = vadd.f32 0.5, %v3851_v63  ;;  %v3788_v16 = vmul.f32 0.5, %v3698_v29  ;;  %v3701_v46 = vadd.f32 %v6954_v13, %v3700_v61 }
 0x5e7   : > { %v3912_v34 = vmul.f32 %v3880_v52, %v3682_v50  ;;  %v3881_v20 = vadd.f32 0.5, %v3849_v26  ;;  %5392 = vtanh.f32 %v3790_v53  ;;  %v3791_v41 = vmul.f32 0.5, %v3709_v10 }
 0x5e8   : > { %v3915_v9 = vmul.f32 %v3883_v56, %v3693_v17  ;;  %5394 = vtanh.f32 %v3788_v16  ;;  %v3789_v39 = vmul.f32 0.5, %v3701_v46  ;;  %v3953_v0 = vmul.f32 %v6967_v4, %v3914_v6 }
 0x5e9   : > { %v3913_v22 = vmul.f32 %v3881_v20, %v3685_v58  ;;  %5396 = vtanh.f32 %v3791_v41  ;;  %v3951_v51 = vmul.f32 %v6967_v4, %v3912_v34 }
 0x5ea   : > { %5398 = vtanh.f32 %v3789_v39  ;;  %v4006_v25 = vsel %vm3975_vm1, %v3953_v0, 0.0  ;;  %v3954_v59 = vmul.f32 %v6967_v4, %v3915_v9 }
 0x5eb   : > { %4007 = vadd.xlane.f32.xlu1 %v4006_v25  ;;  %v3952_v60 = vmul.f32 %v6967_v4, %v3913_v22  ;;  %v4000_v31 = vsel %vm3975_vm1, %v3951_v51, 0.0 }
 0x5ec   : > { %v4009_v3 = vsel %vm3975_vm1, %v3954_v59, 0.0 }
 0x5ed   : > { %4010 = vadd.xlane.f32.xlu0 %v4009_v3  ;;  %v4003_v11 = vsel %vm3975_vm1, %v3952_v60, 0.0 }
 0x5ef   : > { %4001 = vadd.xlane.f32.xlu1 %v4000_v31 }
 0x5f1   : > { %v5393_v1 = vpop.eup %5392  ;;  %4004 = vadd.xlane.f32.xlu0 %v4003_v11 }
 0x5f2   : > { %v5395_v50 = vpop.eup %5394  ;;  %v3854_v48 = vmul.f32 0.5, %v5393_v1  ;;  %v4730_v7 = vpop.f32.mrb[112].mxu1 }
 0x5f3   : > { %v5397_v8 = vpop.eup %5396  ;;  %v3852_v30 = vmul.f32 0.5, %v5395_v50  ;;  %v3722_v17 = vadd.f32 %v4730_v7, %v6954_v13  ;;  %v3713_v32 = vpop.f32.mrb[113].mxu1 }
 0x5f4   : > { %v5399_v38 = vpop.eup %5398  ;;  %v3886_v18 = vadd.f32 0.5, %v3854_v48  ;;  %v3855_v49 = vmul.f32 0.5, %v5397_v8  ;;  %v3714_v58 = vadd.f32 %v6954_v13, %v3713_v32  ;;  %v4731_v19 = vpop.f32.mrb[114].mxu1 }
 0x5f5   : > { %v3884_v54 = vadd.f32 0.5, %v3852_v30  ;;  %v3853_v35 = vmul.f32 0.5, %v5399_v38  ;;  %v3794_v37 = vmul.f32 0.5, %v3722_v17  ;;  %v3725_v21 = vadd.f32 %v4731_v19, %v6954_v13  ;;  %v3716_v47 = vpop.f32.mrb[115].mxu1 }
 0x5f6   : > { %v3918_v23 = vmul.f32 %v3886_v18, %v3706_v27  ;;  %v3887_v28 = vadd.f32 0.5, %v3855_v49  ;;  %v3792_v36 = vmul.f32 0.5, %v3714_v58  ;;  %v3717_v12 = vadd.f32 %v6954_v13, %v3716_v47 }
 0x5f7   : > { %v3916_v40 = vmul.f32 %v3884_v54, %v3698_v29  ;;  %v3885_v45 = vadd.f32 0.5, %v3853_v35  ;;  %5400 = vtanh.f32 %v3794_v37  ;;  %v3795_v2 = vmul.f32 0.5, %v3725_v21 }
 0x5f8   : > { %v3919_v57 = vmul.f32 %v3887_v28, %v3709_v10  ;;  %5402 = vtanh.f32 %v3792_v36  ;;  %v3793_v42 = vmul.f32 0.5, %v3717_v12  ;;  %v3957_v15 = vmul.f32 %v6967_v4, %v3918_v23 }
 0x5f9   : > { %v3917_v62 = vmul.f32 %v3885_v45, %v3701_v46  ;;  %5404 = vtanh.f32 %v3795_v2  ;;  %v3955_v43 = vmul.f32 %v6967_v4, %v3916_v40 }
 0x5fa   : > { %5406 = vtanh.f32 %v3793_v42  ;;  %v4018_v33 = vsel %vm3975_vm1, %v3957_v15, 0.0  ;;  %v3958_v5 = vmul.f32 %v6967_v4, %v3919_v57 }
 0x5fb   : > { %4019 = vadd.xlane.f32.xlu1 %v4018_v33  ;;  %v3956_v14 = vmul.f32 %v6967_v4, %v3917_v62  ;;  %v4012_v24 = vsel %vm3975_vm1, %v3955_v43, 0.0 }
 0x5fc   : > { %v4021_v27 = vsel %vm3975_vm1, %v3958_v5, 0.0 }
 0x5fd   : > { %4022 = vadd.xlane.f32.xlu0 %v4021_v27  ;;  %v4015_v55 = vsel %vm3975_vm1, %v3956_v14, 0.0 }
 0x5ff   : > { %4013 = vadd.xlane.f32.xlu1 %v4012_v24 }
 0x601   : > { %v5401_v63 = vpop.eup %5400  ;;  %4016 = vadd.xlane.f32.xlu0 %v4015_v55 }
 0x602   : > { %v5403_v29 = vpop.eup %5402  ;;  %v3858_v44 = vmul.f32 0.5, %v5401_v63  ;;  %v4734_v52 = vpop.f32.mrb[116].mxu1 }
 0x603   : > { %v5405_v26 = vpop.eup %5404  ;;  %v3856_v53 = vmul.f32 0.5, %v5403_v29  ;;  %v3738_v10 = vadd.f32 %v4734_v52, %v6954_v13  ;;  %v3729_v61 = vpop.f32.mrb[117].mxu1 }
 0x604   : > { %v5407_v6 = vpop.eup %5406  ;;  %v3890_v56 = vadd.f32 0.5, %v3858_v44  ;;  %v3859_v16 = vmul.f32 0.5, %v5405_v26  ;;  %v3730_v46 = vadd.f32 %v6954_v13, %v3729_v61  ;;  %v4735_v34 = vpop.f32.mrb[118].mxu1 }
 0x605   : > { %v3888_v20 = vadd.f32 0.5, %v3856_v53  ;;  %v3857_v41 = vmul.f32 0.5, %v5407_v6  ;;  %v3798_v9 = vmul.f32 0.5, %v3738_v10  ;;  %v3741_v39 = vadd.f32 %v4735_v34, %v6954_v13  ;;  %v3732_v0 = vpop.f32.mrb[119].mxu1 }
 0x606   : > { %v3922_v22 = vmul.f32 %v3890_v56, %v3722_v17  ;;  %v3891_v25 = vadd.f32 0.5, %v3859_v16  ;;  %v3796_v59 = vmul.f32 0.5, %v3730_v46  ;;  %v3733_v51 = vadd.f32 %v6954_v13, %v3732_v0 }
 0x607   : > { %v3920_v3 = vmul.f32 %v3888_v20, %v3714_v58  ;;  %v3889_v60 = vadd.f32 0.5, %v3857_v41  ;;  %5408 = vtanh.f32 %v3798_v9  ;;  %v3799_v31 = vmul.f32 0.5, %v3741_v39 }
 0x608   : > { %v3923_v11 = vmul.f32 %v3891_v25, %v3725_v21  ;;  %5410 = vtanh.f32 %v3796_v59  ;;  %v3797_v1 = vmul.f32 0.5, %v3733_v51  ;;  %v3961_v50 = vmul.f32 %v6967_v4, %v3922_v22 }
 0x609   : > { %v3921_v48 = vmul.f32 %v3889_v60, %v3717_v12  ;;  %5412 = vtanh.f32 %v3799_v31  ;;  %v3959_v30 = vmul.f32 %v6967_v4, %v3920_v3 }
 0x60a   : > { %5414 = vtanh.f32 %v3797_v1  ;;  %v4030_v7 = vsel %vm3975_vm1, %v3961_v50, 0.0  ;;  %v3962_v8 = vmul.f32 %v6967_v4, %v3923_v11 }
 0x60b   : > { %4031 = vadd.xlane.f32.xlu1 %v4030_v7  ;;  %v3960_v32 = vmul.f32 %v6967_v4, %v3921_v48  ;;  %v4024_v38 = vsel %vm3975_vm1, %v3959_v30, 0.0 }
 0x60c   : > { %v4033_v17 = vsel %vm3975_vm1, %v3962_v8, 0.0 }
 0x60d   : > { %4034 = vadd.xlane.f32.xlu0 %v4033_v17  ;;  %v4027_v18 = vsel %vm3975_vm1, %v3960_v32, 0.0 }
 0x60f   : > { %4025 = vadd.xlane.f32.xlu1 %v4024_v38 }
 0x611   : > { %v5409_v49 = vpop.eup %5408  ;;  %4028 = vadd.xlane.f32.xlu0 %v4027_v18 }
 0x612   : > { %v5411_v58 = vpop.eup %5410  ;;  %v3862_v19 = vmul.f32 0.5, %v5409_v49  ;;  %v4738_v54 = vpop.f32.mrb[120].mxu1 }
 0x613   : > { %v5413_v35 = vpop.eup %5412  ;;  %v3860_v37 = vmul.f32 0.5, %v5411_v58  ;;  %v3754_v21 = vadd.f32 %v4738_v54, %v6954_v13  ;;  %v3745_v47 = vpop.f32.mrb[121].mxu1 }
 0x614   : > { %v5415_v23 = vpop.eup %5414  ;;  %v3894_v28 = vadd.f32 0.5, %v3862_v19  ;;  %v3863_v36 = vmul.f32 0.5, %v5413_v35  ;;  %v3746_v12 = vadd.f32 %v6954_v13, %v3745_v47  ;;  %v4739_v40 = vpop.f32.mrb[122].mxu1 }
 0x615   : > { %v3892_v45 = vadd.f32 0.5, %v3860_v37  ;;  %v3861_v2 = vmul.f32 0.5, %v5415_v23  ;;  %v3802_v57 = vmul.f32 0.5, %v3754_v21  ;;  %v3757_v42 = vadd.f32 %v4739_v40, %v6954_v13  ;;  %v3748_v15 = vpop.f32.mrb[123].mxu1 }
 0x616   : > { %v3926_v62 = vmul.f32 %v3894_v28, %v3738_v10  ;;  %v3895_v33 = vadd.f32 0.5, %v3863_v36  ;;  %v3800_v5 = vmul.f32 0.5, %v3746_v12  ;;  %v3749_v43 = vadd.f32 %v6954_v13, %v3748_v15 }
 0x617   : > { %v3924_v27 = vmul.f32 %v3892_v45, %v3730_v46  ;;  %v3893_v14 = vadd.f32 0.5, %v3861_v2  ;;  %5416 = vtanh.f32 %v3802_v57  ;;  %v3803_v24 = vmul.f32 0.5, %v3757_v42 }
 0x618   : > { %v3927_v55 = vmul.f32 %v3895_v33, %v3741_v39  ;;  %5418 = vtanh.f32 %v3800_v5  ;;  %v3801_v63 = vmul.f32 0.5, %v3749_v43  ;;  %v3965_v29 = vmul.f32 %v6967_v4, %v3926_v62 }
 0x619   : > { %v3925_v44 = vmul.f32 %v3893_v14, %v3733_v51  ;;  %5420 = vtanh.f32 %v3803_v24  ;;  %v3963_v53 = vmul.f32 %v6967_v4, %v3924_v27 }
 0x61a   : > { %5422 = vtanh.f32 %v3801_v63  ;;  %v4042_v52 = vsel %vm3975_vm1, %v3965_v29, 0.0  ;;  %v3966_v26 = vmul.f32 %v6967_v4, %v3927_v55 }
 0x61b   : > { %4043 = vadd.xlane.f32.xlu1 %v4042_v52  ;;  %v3964_v61 = vmul.f32 %v6967_v4, %v3925_v44  ;;  %v4036_v6 = vsel %vm3975_vm1, %v3963_v53, 0.0 }
 0x61c   : > { %v4045_v10 = vsel %vm3975_vm1, %v3966_v26, 0.0 }
 0x61d   : > { %4046 = vadd.xlane.f32.xlu0 %v4045_v10  ;;  %v4039_v56 = vsel %vm3975_vm1, %v3964_v61, 0.0  ;;  %v7057_v61 = vld [vmem:[#allocation2] ss:$0 sm:$0xff] }
 0x61f   : > { %4037 = vadd.xlane.f32.xlu1 %v4036_v6 }
 0x621   : > { %v5417_v16 = vpop.eup %5416  ;;  %4040 = vadd.xlane.f32.xlu0 %v4039_v56 }
 0x622   : > { %v5419_v46 = vpop.eup %5418  ;;  %v3866_v34 = vmul.f32 0.5, %v5417_v16  ;;  %v4742_v20 = vpop.f32.mrb[124].mxu1 }
 0x623   : > { %v5421_v41 = vpop.eup %5420  ;;  %v3864_v9 = vmul.f32 0.5, %v5419_v46  ;;  %v3770_v39 = vadd.f32 %v4742_v20, %v6954_v13  ;;  %v3761_v0 = vpop.f32.mrb[125].mxu1 }
 0x624   : > { %v5423_v22 = vpop.eup %5422  ;;  %v3898_v25 = vadd.f32 0.5, %v3866_v34  ;;  %v3867_v59 = vmul.f32 0.5, %v5421_v41  ;;  %v3762_v51 = vadd.f32 %v6954_v13, %v3761_v0  ;;  %v4743_v3 = vpop.f32.mrb[126].mxu1 }
 0x625   : > { %v3896_v60 = vadd.f32 0.5, %v3864_v9  ;;  %v3865_v31 = vmul.f32 0.5, %v5423_v22  ;;  %v3806_v11 = vmul.f32 0.5, %v3770_v39  ;;  %v3773_v1 = vadd.f32 %v4743_v3, %v6954_v13  ;;  %v3764_v50 = vpop.f32.mrb[127].mxu1 }
 0x626   : > { %v3930_v48 = vmul.f32 %v3898_v25, %v3754_v21  ;;  %v3899_v7 = vadd.f32 0.5, %v3867_v59  ;;  %v3804_v8 = vmul.f32 0.5, %v3762_v51  ;;  %v3765_v30 = vadd.f32 %v6954_v13, %v3764_v50 }
 0x627   : > { %v3928_v17 = vmul.f32 %v3896_v60, %v3746_v12  ;;  %v3897_v32 = vadd.f32 0.5, %v3865_v31  ;;  %5424 = vtanh.f32 %v3806_v11  ;;  %v3807_v38 = vmul.f32 0.5, %v3773_v1 }
 0x628   : > { %v3931_v18 = vmul.f32 %v3899_v7, %v3757_v42  ;;  %5426 = vtanh.f32 %v3804_v8  ;;  %v3805_v49 = vmul.f32 0.5, %v3765_v30  ;;  %v3969_v58 = vmul.f32 %v6967_v4, %v3930_v48 }
 0x629   : > { %v3929_v19 = vmul.f32 %v3897_v32, %v3749_v43  ;;  %5428 = vtanh.f32 %v3807_v38  ;;  %v3967_v37 = vmul.f32 %v6967_v4, %v3928_v17 }
 0x62a   : > { %5430 = vtanh.f32 %v3805_v49  ;;  %v4054_v54 = vsel %vm3975_vm1, %v3969_v58, 0.0  ;;  %v3970_v35 = vmul.f32 %v6967_v4, %v3931_v18 }
 0x62b   : > { %4055 = vadd.xlane.f32.xlu1 %v4054_v54  ;;  %v3968_v21 = vmul.f32 %v6967_v4, %v3929_v19  ;;  %v4048_v47 = vsel %vm3975_vm1, %v3967_v37, 0.0 }
 0x62c   : > { %v4057_v13 = vsel %vm3975_vm1, %v3970_v35, 0.0 }
 0x62d   : > { %4058 = vadd.xlane.f32.xlu0 %v4057_v13  ;;  %v4051_v23 = vsel %vm3975_vm1, %v3968_v21, 0.0 }
 0x62f   : > { %4049 = vadd.xlane.f32.xlu1 %v4048_v47 }
 0x631   : > { %v5425_v28 = vpop.eup %5424  ;;  %4052 = vadd.xlane.f32.xlu0 %v4051_v23 }
 0x632   : > { %v5427_v36 = vpop.eup %5426  ;;  %v3870_v12 = vmul.f32 0.5, %v5425_v28 }
 0x633   : > { %v5429_v40 = vpop.eup %5428  ;;  %v3868_v45 = vmul.f32 0.5, %v5427_v36 }
 0x634   : > { %v5431_v2 = vpop.eup %5430  ;;  %v3902_v57 = vadd.f32 0.5, %v3870_v12  ;;  %v3871_v42 = vmul.f32 0.5, %v5429_v40 }
 0x635   : > { %v3900_v15 = vadd.f32 0.5, %v3868_v45  ;;  %v3869_v62 = vmul.f32 0.5, %v5431_v2 }
 0x636   : > { %v3903_v33 = vadd.f32 0.5, %v3871_v42  ;;  %v3934_v5 = vmul.f32 %v3902_v57, %v3770_v39 }
 0x637   : > { %v3932_v43 = vmul.f32 %v3900_v15, %v3762_v51  ;;  %v3901_v27 = vadd.f32 0.5, %v3869_v62 }
 0x638   : > { %v3935_v14 = vmul.f32 %v3903_v33, %v3773_v1  ;;  %v3973_v44 = vmul.f32 %v6967_v4, %v3934_v5 }
 0x639   : > { %v3933_v24 = vmul.f32 %v3901_v27, %v3765_v30  ;;  %v3971_v55 = vmul.f32 %v6967_v4, %v3932_v43 }
 0x63a   : > { %v3974_v26 = vmul.f32 %v6967_v4, %v3935_v14  ;;  %v4066_v53 = vsel %vm3975_vm1, %v3973_v44, 0.0 }
 0x63b   : > { %v4060_v63 = vsel %vm3975_vm1, %v3971_v55, 0.0  ;;  %v3972_v29 = vmul.f32 %v6967_v4, %v3933_v24 }
 0x63c   : > { %4061 = vadd.xlane.f32.xlu1 %v4060_v63  ;;  %v4069_v10 = vsel %vm3975_vm1, %v3974_v26, 0.0 }
 0x63d   : > { %v4063_v52 = vsel %vm3975_vm1, %v3972_v29, 0.0 }
 0x63e   : > { %4064 = vadd.xlane.f32.xlu0 %v4063_v52 }
 0x640   : > { %4067 = vadd.xlane.f32.xlu1 %v4066_v53 }
 0x642   : > { %4070 = vadd.xlane.f32.xlu0 %v4069_v10 }
 0x65a   : > { %v3984_v6 = vpop.xlane.xlu1 %3983 }
 0x65b   : > { %v4081_v56 = vadd.f32 %v7057_v61, %v3984_v6 }
 0x65c   : > { %v3987_v16 = vpop.xlane.xlu0 %3986 }
 0x65d   : > { %v4113_v46 = vmul.f32 0.5, %v4081_v56  ;;  %v4082_v34 = vadd.f32 %v7057_v61, %v3987_v16 }
 0x65e   : > { %v3978_v20 = vpop.xlane.xlu1 %3977 }
 0x65f   : > { %5432 = vtanh.f32 %v4113_v46  ;;  %v4114_v4 = vmul.f32 0.5, %v4082_v34  ;;  %v4079_v41 = vadd.f32 %v7057_v61, %v3978_v20 }
 0x660   : > { %v3981_v9 = vpop.xlane.xlu0 %3980 }
 0x661   : > { %5434 = vtanh.f32 %v4114_v4  ;;  %v4111_v39 = vmul.f32 0.5, %v4079_v41  ;;  %v4080_v0 = vadd.f32 %v7057_v61, %v3981_v9 }
 0x663   : > { %5436 = vtanh.f32 %v4111_v39  ;;  %v4112_v22 = vmul.f32 0.5, %v4080_v0 }
 0x665   : > { %5438 = vtanh.f32 %v4112_v22 }
 0x668   : > { %v3996_v25 = vpop.xlane.xlu1 %3995 }
 0x669   : > { %v5433_v59 = vpop.eup %5432  ;;  %v4085_v51 = vadd.f32 %v7057_v61, %v3996_v25 }
 0x66a   : > { %v4177_v3 = vmul.f32 0.5, %v5433_v59  ;;  %v3999_v60 = vpop.xlane.xlu0 %3998 }
 0x66b   : > { %v5435_v31 = vpop.eup %5434  ;;  %v4117_v11 = vmul.f32 0.5, %v4085_v51  ;;  %v4086_v1 = vadd.f32 %v7057_v61, %v3999_v60 }
 0x66c   : > { %v4209_v50 = vadd.f32 0.5, %v4177_v3  ;;  %v4178_v48 = vmul.f32 0.5, %v5435_v31  ;;  %v3990_v7 = vpop.xlane.xlu1 %3989 }
 0x66d   : > { %v5437_v8 = vpop.eup %5436  ;;  %5440 = vtanh.f32 %v4117_v11  ;;  %v4118_v30 = vmul.f32 0.5, %v4086_v1  ;;  %v4083_v17 = vadd.f32 %v7057_v61, %v3990_v7 }
 0x66e   : > { %4242 = vst.msk [vmem:[%s7069_s30 + $0x10] sm:$0xff] %vm4239_vm2, %v4209_v50  ;;  %v4210_v32 = vadd.f32 0.5, %v4178_v48  ;;  %v4175_v38 = vmul.f32 0.5, %v5437_v8  ;;  %v3993_v18 = vpop.xlane.xlu0 %3992 }
 0x66f   : > { %v5439_v49 = vpop.eup %5438  ;;  %5442 = vtanh.f32 %v4118_v30  ;;  %v4115_v58 = vmul.f32 0.5, %v4083_v17  ;;  %v4084_v19 = vadd.f32 %v7057_v61, %v3993_v18 }
 0x670   : > { %4243 = vst.msk [vmem:[%s7069_s30 + $0x18] sm:$0xff] %vm4239_vm2, %v4210_v32  ;;  %v4207_v54 = vadd.f32 0.5, %v4175_v38  ;;  %v4176_v35 = vmul.f32 0.5, %v5439_v49 }
 0x671   : > { %5444 = vtanh.f32 %v4115_v58  ;;  %v4116_v37 = vmul.f32 0.5, %v4084_v19 }
 0x672   : > { %4240 = vst.msk [vmem:[%s7069_s30] sm:$0xff] %vm4239_vm2, %v4207_v54  ;;  %v4208_v13 = vadd.f32 0.5, %v4176_v35 }
 0x673   : > { %5446 = vtanh.f32 %v4116_v37 }
 0x674   : > { %4241 = vst.msk [vmem:[%s7069_s30 + $0x8] sm:$0xff] %vm4239_vm2, %v4208_v13 }
 0x677   : > { %v5441_v21 = vpop.eup %5440 }
 0x678   : > { %v4181_v47 = vmul.f32 0.5, %v5441_v21  ;;  %v4008_v23 = vpop.xlane.xlu1 %4007 }
 0x679   : > { %v5443_v28 = vpop.eup %5442  ;;  %v4089_v36 = vadd.f32 %v7057_v61, %v4008_v23 }
 0x67a   : > { %v4213_v12 = vadd.f32 0.5, %v4181_v47  ;;  %v4182_v40 = vmul.f32 0.5, %v5443_v28  ;;  %v4011_v45 = vpop.xlane.xlu0 %4010 }
 0x67b   : > { %v5445_v2 = vpop.eup %5444  ;;  %v4121_v57 = vmul.f32 0.5, %v4089_v36  ;;  %v4090_v42 = vadd.f32 %v7057_v61, %v4011_v45 }
 0x67c   : > { %4246 = vst.msk [vmem:[%s7069_s30 + $0x30] sm:$0xff] %vm4239_vm2, %v4213_v12  ;;  %v4214_v15 = vadd.f32 0.5, %v4182_v40  ;;  %v4179_v62 = vmul.f32 0.5, %v5445_v2  ;;  %v4002_v33 = vpop.xlane.xlu1 %4001 }
 0x67d   : > { %v5447_v5 = vpop.eup %5446  ;;  %5448 = vtanh.f32 %v4121_v57  ;;  %v4122_v43 = vmul.f32 0.5, %v4090_v42  ;;  %v4087_v27 = vadd.f32 %v7057_v61, %v4002_v33 }
 0x67e   : > { %4247 = vst.msk [vmem:[%s7069_s30 + $0x38] sm:$0xff] %vm4239_vm2, %v4214_v15  ;;  %v4211_v14 = vadd.f32 0.5, %v4179_v62  ;;  %v4180_v24 = vmul.f32 0.5, %v5447_v5  ;;  %v4005_v55 = vpop.xlane.xlu0 %4004 }
 0x67f   : > { %5450 = vtanh.f32 %v4122_v43  ;;  %v4119_v63 = vmul.f32 0.5, %v4087_v27  ;;  %v4088_v29 = vadd.f32 %v7057_v61, %v4005_v55 }
 0x680   : > { %4244 = vst.msk [vmem:[%s7069_s30 + $0x20] sm:$0xff] %vm4239_vm2, %v4211_v14  ;;  %v4212_v44 = vadd.f32 0.5, %v4180_v24 }
 0x681   : > { %5452 = vtanh.f32 %v4119_v63  ;;  %v4120_v52 = vmul.f32 0.5, %v4088_v29 }
 0x682   : > { %4245 = vst.msk [vmem:[%s7069_s30 + $0x28] sm:$0xff] %vm4239_vm2, %v4212_v44 }
 0x683   : > { %5454 = vtanh.f32 %v4120_v52 }
 0x687   : > { %v5449_v26 = vpop.eup %5448 }
 0x688   : > { %v4185_v53 = vmul.f32 0.5, %v5449_v26  ;;  %v4020_v10 = vpop.xlane.xlu1 %4019 }
 0x689   : > { %v5451_v6 = vpop.eup %5450  ;;  %v4093_v56 = vadd.f32 %v7057_v61, %v4020_v10 }
 0x68a   : > { %v4217_v16 = vadd.f32 0.5, %v4185_v53  ;;  %v4186_v46 = vmul.f32 0.5, %v5451_v6  ;;  %v4023_v34 = vpop.xlane.xlu0 %4022 }
 0x68b   : > { %v5453_v20 = vpop.eup %5452  ;;  %v4125_v4 = vmul.f32 0.5, %v4093_v56  ;;  %v4094_v41 = vadd.f32 %v7057_v61, %v4023_v34 }
 0x68c   : > { %4250 = vst.msk [vmem:[%s7069_s30 + $0x50] sm:$0xff] %vm4239_vm2, %v4217_v16  ;;  %v4218_v9 = vadd.f32 0.5, %v4186_v46  ;;  %v4183_v39 = vmul.f32 0.5, %v5453_v20  ;;  %v4014_v0 = vpop.xlane.xlu1 %4013 }
 0x68d   : > { %v5455_v22 = vpop.eup %5454  ;;  %5456 = vtanh.f32 %v4125_v4  ;;  %v4126_v25 = vmul.f32 0.5, %v4094_v41  ;;  %v4091_v59 = vadd.f32 %v7057_v61, %v4014_v0 }
 0x68e   : > { %4251 = vst.msk [vmem:[%s7069_s30 + $0x58] sm:$0xff] %vm4239_vm2, %v4218_v9  ;;  %v4215_v51 = vadd.f32 0.5, %v4183_v39  ;;  %v4184_v3 = vmul.f32 0.5, %v5455_v22  ;;  %v4017_v60 = vpop.xlane.xlu0 %4016 }
 0x68f   : > { %5458 = vtanh.f32 %v4126_v25  ;;  %v4123_v31 = vmul.f32 0.5, %v4091_v59  ;;  %v4092_v11 = vadd.f32 %v7057_v61, %v4017_v60 }
 0x690   : > { %4248 = vst.msk [vmem:[%s7069_s30 + $0x40] sm:$0xff] %vm4239_vm2, %v4215_v51  ;;  %v4216_v1 = vadd.f32 0.5, %v4184_v3 }
 0x691   : > { %5460 = vtanh.f32 %v4123_v31  ;;  %v4124_v50 = vmul.f32 0.5, %v4092_v11 }
 0x692   : > { %4249 = vst.msk [vmem:[%s7069_s30 + $0x48] sm:$0xff] %vm4239_vm2, %v4216_v1 }
 0x693   : > { %5462 = vtanh.f32 %v4124_v50 }
 0x697   : > { %v5457_v48 = vpop.eup %5456 }
 0x698   : > { %v4189_v7 = vmul.f32 0.5, %v5457_v48  ;;  %v4032_v8 = vpop.xlane.xlu1 %4031 }
 0x699   : > { %v5459_v30 = vpop.eup %5458  ;;  %v4097_v17 = vadd.f32 %v7057_v61, %v4032_v8 }
 0x69a   : > { %v4221_v32 = vadd.f32 0.5, %v4189_v7  ;;  %v4190_v38 = vmul.f32 0.5, %v5459_v30  ;;  %v4035_v18 = vpop.xlane.xlu0 %4034 }
 0x69b   : > { %v5461_v49 = vpop.eup %5460  ;;  %v4129_v58 = vmul.f32 0.5, %v4097_v17  ;;  %v4098_v19 = vadd.f32 %v7057_v61, %v4035_v18 }
 0x69c   : > { %4254 = vst.msk [vmem:[%s7069_s30 + $0x70] sm:$0xff] %vm4239_vm2, %v4221_v32  ;;  %v4222_v54 = vadd.f32 0.5, %v4190_v38  ;;  %v4187_v35 = vmul.f32 0.5, %v5461_v49  ;;  %v4026_v37 = vpop.xlane.xlu1 %4025 }
 0x69d   : > { %v5463_v13 = vpop.eup %5462  ;;  %5464 = vtanh.f32 %v4129_v58  ;;  %v4130_v21 = vmul.f32 0.5, %v4098_v19  ;;  %v4095_v47 = vadd.f32 %v7057_v61, %v4026_v37 }
 0x69e   : > { %4255 = vst.msk [vmem:[%s7069_s30 + $0x78] sm:$0xff] %vm4239_vm2, %v4222_v54  ;;  %v4219_v23 = vadd.f32 0.5, %v4187_v35  ;;  %v4188_v28 = vmul.f32 0.5, %v5463_v13  ;;  %v4029_v36 = vpop.xlane.xlu0 %4028 }
 0x69f   : > { %5466 = vtanh.f32 %v4130_v21  ;;  %v4127_v12 = vmul.f32 0.5, %v4095_v47  ;;  %v4096_v40 = vadd.f32 %v7057_v61, %v4029_v36 }
 0x6a0   : > { %4252 = vst.msk [vmem:[%s7069_s30 + $0x60] sm:$0xff] %vm4239_vm2, %v4219_v23  ;;  %v4220_v45 = vadd.f32 0.5, %v4188_v28 }
 0x6a1   : > { %5468 = vtanh.f32 %v4127_v12  ;;  %v4128_v2 = vmul.f32 0.5, %v4096_v40 }
 0x6a2   : > { %4253 = vst.msk [vmem:[%s7069_s30 + $0x68] sm:$0xff] %vm4239_vm2, %v4220_v45 }
 0x6a3   : > { %5470 = vtanh.f32 %v4128_v2 }
 0x6a7   : > { %v5465_v57 = vpop.eup %5464 }
 0x6a8   : > { %v4193_v42 = vmul.f32 0.5, %v5465_v57  ;;  %v4044_v15 = vpop.xlane.xlu1 %4043 }
 0x6a9   : > { %v5467_v62 = vpop.eup %5466  ;;  %v4101_v33 = vadd.f32 %v7057_v61, %v4044_v15 }
 0x6aa   : > { %v4225_v5 = vadd.f32 0.5, %v4193_v42  ;;  %v4194_v43 = vmul.f32 0.5, %v5467_v62  ;;  %v4047_v27 = vpop.xlane.xlu0 %4046 }
 0x6ab   : > { %v5469_v14 = vpop.eup %5468  ;;  %v4133_v24 = vmul.f32 0.5, %v4101_v33  ;;  %v4102_v55 = vadd.f32 %v7057_v61, %v4047_v27 }
 0x6ac   : > { %4258 = vst.msk [vmem:[%s7069_s30 + $0x90] sm:$0xff] %vm4239_vm2, %v4225_v5  ;;  %v4226_v63 = vadd.f32 0.5, %v4194_v43  ;;  %v4191_v29 = vmul.f32 0.5, %v5469_v14  ;;  %v4038_v44 = vpop.xlane.xlu1 %4037 }
 0x6ad   : > { %v5471_v52 = vpop.eup %5470  ;;  %5472 = vtanh.f32 %v4133_v24  ;;  %v4134_v26 = vmul.f32 0.5, %v4102_v55  ;;  %v4099_v53 = vadd.f32 %v7057_v61, %v4038_v44 }
 0x6ae   : > { %4259 = vst.msk [vmem:[%s7069_s30 + $0x98] sm:$0xff] %vm4239_vm2, %v4226_v63  ;;  %v4223_v10 = vadd.f32 0.5, %v4191_v29  ;;  %v4192_v6 = vmul.f32 0.5, %v5471_v52  ;;  %v4041_v56 = vpop.xlane.xlu0 %4040 }
 0x6af   : > { %5474 = vtanh.f32 %v4134_v26  ;;  %v4131_v16 = vmul.f32 0.5, %v4099_v53  ;;  %v4100_v46 = vadd.f32 %v7057_v61, %v4041_v56 }
 0x6b0   : > { %4256 = vst.msk [vmem:[%s7069_s30 + $0x80] sm:$0xff] %vm4239_vm2, %v4223_v10  ;;  %v4224_v34 = vadd.f32 0.5, %v4192_v6 }
 0x6b1   : > { %5476 = vtanh.f32 %v4131_v16  ;;  %v4132_v20 = vmul.f32 0.5, %v4100_v46 }
 0x6b2   : > { %4257 = vst.msk [vmem:[%s7069_s30 + $0x88] sm:$0xff] %vm4239_vm2, %v4224_v34 }
 0x6b3   : > { %5478 = vtanh.f32 %v4132_v20 }
 0x6b7   : > { %v5473_v4 = vpop.eup %5472 }
 0x6b8   : > { %v4197_v41 = vmul.f32 0.5, %v5473_v4  ;;  %v4056_v9 = vpop.xlane.xlu1 %4055 }
 0x6b9   : > { %v5475_v39 = vpop.eup %5474  ;;  %v4105_v0 = vadd.f32 %v7057_v61, %v4056_v9 }
 0x6ba   : > { %v4229_v22 = vadd.f32 0.5, %v4197_v41  ;;  %v4198_v25 = vmul.f32 0.5, %v5475_v39  ;;  %v4059_v59 = vpop.xlane.xlu0 %4058 }
 0x6bb   : > { %v5477_v51 = vpop.eup %5476  ;;  %v4137_v3 = vmul.f32 0.5, %v4105_v0  ;;  %v4106_v60 = vadd.f32 %v7057_v61, %v4059_v59 }
 0x6bc   : > { %4262 = vst.msk [vmem:[%s7069_s30 + $0xb0] sm:$0xff] %vm4239_vm2, %v4229_v22  ;;  %v4230_v31 = vadd.f32 0.5, %v4198_v25  ;;  %v4195_v11 = vmul.f32 0.5, %v5477_v51  ;;  %v4050_v1 = vpop.xlane.xlu1 %4049 }
 0x6bd   : > { %v5479_v50 = vpop.eup %5478  ;;  %5480 = vtanh.f32 %v4137_v3  ;;  %v4138_v48 = vmul.f32 0.5, %v4106_v60  ;;  %v4103_v7 = vadd.f32 %v7057_v61, %v4050_v1 }
 0x6be   : > { %4263 = vst.msk [vmem:[%s7069_s30 + $0xb8] sm:$0xff] %vm4239_vm2, %v4230_v31  ;;  %v4227_v8 = vadd.f32 0.5, %v4195_v11  ;;  %v4196_v30 = vmul.f32 0.5, %v5479_v50  ;;  %v4053_v17 = vpop.xlane.xlu0 %4052 }
 0x6bf   : > { %5482 = vtanh.f32 %v4138_v48  ;;  %v4135_v32 = vmul.f32 0.5, %v4103_v7  ;;  %v4104_v38 = vadd.f32 %v7057_v61, %v4053_v17 }
 0x6c0   : > { %4260 = vst.msk [vmem:[%s7069_s30 + $0xa0] sm:$0xff] %vm4239_vm2, %v4227_v8  ;;  %v4228_v18 = vadd.f32 0.5, %v4196_v30 }
 0x6c1   : > { %5484 = vtanh.f32 %v4135_v32  ;;  %v4136_v49 = vmul.f32 0.5, %v4104_v38 }
 0x6c2   : > { %4261 = vst.msk [vmem:[%s7069_s30 + $0xa8] sm:$0xff] %vm4239_vm2, %v4228_v18 }
 0x6c3   : > { %5486 = vtanh.f32 %v4136_v49 }
 0x6c7   : > { %v5481_v58 = vpop.eup %5480 }
 0x6c8   : > { %v4201_v19 = vmul.f32 0.5, %v5481_v58 }
 0x6c9   : > { %v5483_v54 = vpop.eup %5482  ;;  %v4062_v35 = vpop.xlane.xlu1 %4061 }
 0x6ca   : > { %v4233_v37 = vadd.f32 0.5, %v4201_v19  ;;  %v4202_v13 = vmul.f32 0.5, %v5483_v54  ;;  %v4107_v21 = vadd.f32 %v7057_v61, %v4062_v35 }
 0x6cb   : > { %v5485_v47 = vpop.eup %5484  ;;  %v4065_v23 = vpop.xlane.xlu0 %4064 }
 0x6cc   : > { %4266 = vst.msk [vmem:[%s7069_s30 + $0xd0] sm:$0xff] %vm4239_vm2, %v4233_v37  ;;  %v4234_v28 = vadd.f32 0.5, %v4202_v13  ;;  %v4199_v36 = vmul.f32 0.5, %v5485_v47  ;;  %v4139_v12 = vmul.f32 0.5, %v4107_v21  ;;  %v4108_v40 = vadd.f32 %v7057_v61, %v4065_v23 }
 0x6cd   : > { %v5487_v45 = vpop.eup %5486  ;;  %v4068_v2 = vpop.xlane.xlu1 %4067 }
 0x6ce   : > { %4267 = vst.msk [vmem:[%s7069_s30 + $0xd8] sm:$0xff] %vm4239_vm2, %v4234_v28  ;;  %v4231_v57 = vadd.f32 0.5, %v4199_v36  ;;  %v4200_v42 = vmul.f32 0.5, %v5487_v45  ;;  %5488 = vtanh.f32 %v4139_v12  ;;  %v4140_v15 = vmul.f32 0.5, %v4108_v40 }
 0x6cf   : > { %v4109_v62 = vadd.f32 %v7057_v61, %v4068_v2  ;;  %v4071_v33 = vpop.xlane.xlu0 %4070 }
 0x6d0   : > { %4264 = vst.msk [vmem:[%s7069_s30 + $0xc0] sm:$0xff] %vm4239_vm2, %v4231_v57  ;;  %v4232_v5 = vadd.f32 0.5, %v4200_v42  ;;  %5490 = vtanh.f32 %v4140_v15  ;;  %v4110_v43 = vadd.f32 %v7057_v61, %v4071_v33 }
 0x6d1   : > { %v4141_v27 = vmul.f32 0.5, %v4109_v62 }
 0x6d2   : > { %4265 = vst.msk [vmem:[%s7069_s30 + $0xc8] sm:$0xff] %vm4239_vm2, %v4232_v5  ;;  %v4142_v14 = vmul.f32 0.5, %v4110_v43 }
 0x6d3   : > { %5492 = vtanh.f32 %v4141_v27 }
 0x6d4   : > { %5494 = vtanh.f32 %v4142_v14 }
 0x6d8   : > { %v5489_v24 = vpop.eup %5488 }
 0x6d9   : > { %v4203_v55 = vmul.f32 0.5, %v5489_v24 }
 0x6da   : > { %v5491_v63 = vpop.eup %5490 }
 0x6db   : > { %v4235_v29 = vadd.f32 0.5, %v4203_v55  ;;  %v4204_v44 = vmul.f32 0.5, %v5491_v63 }
 0x6dd   : > { %v5493_v52 = vpop.eup %5492  ;;  %4268 = vst.msk [vmem:[%s7069_s30 + $0xe0] sm:$0xff] %vm4239_vm2, %v4235_v29  ;;  %v4236_v26 = vadd.f32 0.5, %v4204_v44 }
 0x6de   : > { %v5495_v53 = vpop.eup %5494  ;;  %v4205_v61 = vmul.f32 0.5, %v5493_v52 }
 0x6df   : > { %4269 = vst.msk [vmem:[%s7069_s30 + $0xe8] sm:$0xff] %vm4239_vm2, %v4236_v26  ;;  %v4206_v10 = vmul.f32 0.5, %v5495_v53 }
 0x6e0   : > { %v4237_v6 = vadd.f32 0.5, %v4205_v61 }
 0x6e1   : > { %v4238_v56 = vadd.f32 0.5, %v4206_v10 }
 0x6e2   : > { %4270 = vst.msk [vmem:[%s7069_s30 + $0xf0] sm:$0xff] %vm4239_vm2, %v4237_v6 }
 0x6e3   : > { %4271 = vst.msk [vmem:[%s7069_s30 + $0xf8] sm:$0xff] %vm4239_vm2, %v4238_v56 }
 0x6e4 PF: > { %s27_s20 = sadd.s32 1, %s5502_s20  }
 0x6e5   : > { %p24_p4 = scmp.ge.s32.totalorder %s27_s20, 4  }
 0x6e7   :  { %26 = sbr.rel (!%p24_p4) target bundleno = 3 (0x3), region = 113 }

</bundles_post_ra>
